<compile_context>
chip_gen: v5e
topology: v5e:2x2
jax: 0.10.0
libtpu: 0.0.40
codegen_flags: <defaults>
</compile_context>

<pallas_src>
import functools
import math

import jax
import jax.numpy as jnp
from jax import lax
from jax.experimental import pallas as pl
from jax.experimental.pallas import tpu as pltpu


_BLOCK_KEYS = ("wq", "bq", "wkv", "bkv", "wo_r", "bo", "ln1",
               "wf1", "bf1", "wf2", "bf2", "ln2")
_DENSE_KEYS = ("wd3", "bd3", "wd4", "bd4", "wd5", "bd5", "wd6", "bd6",
               "whead", "bhead")


# ------------------------- in-kernel building blocks ------------------------

def _layernorm(x, gamma, beta, eps):
    mu = jnp.mean(x, axis=-1, keepdims=True)
    var = jnp.mean(jnp.square(x - mu), axis=-1, keepdims=True)
    return (x - mu) * lax.rsqrt(var + eps) * gamma + beta


def _cross_attn_block(x, kv, mask_bias, p, num_heads, eps, need_scores):
    """One post-LN cross-attention transformer block for one batch element.

    x: (Lq, E) f32, kv: (Lk, E) f32, mask_bias: (1, Lk) additive score bias.
    Returns (out (Lq, E) f32, head-averaged probs (Lq, Lk) f32 or None).
    """
    wq, bq, wkv, bkv, wo_r, bo, ln1, wf1, bf1, wf2, bf2, ln2 = p
    Lq, E = x.shape
    Lk = kv.shape[0]
    Dh = E // num_heads
    scale = 1.0 / math.sqrt(Dh)

    # Lane-dense projections (K and V fused into one widened matmul).
    qp = jnp.dot(x, wq, preferred_element_type=jnp.float32) + bq          # (Lq, E)
    kvp = jnp.dot(kv, wkv, preferred_element_type=jnp.float32) + bkv      # (Lk, 2E)
    kp = kvp[:, :E]
    vp = kvp[:, E:]

    # Split heads once (head-major), then do everything head-batched.
    qh = jnp.swapaxes(qp.reshape(Lq, num_heads, Dh), 0, 1)                # (H, Lq, Dh)
    kh = jnp.swapaxes(kp.reshape(Lk, num_heads, Dh), 0, 1)                # (H, Lk, Dh)
    vh = jnp.swapaxes(vp.reshape(Lk, num_heads, Dh), 0, 1)                # (H, Lk, Dh)

    s = jnp.einsum("hqd,hkd->hqk", qh, kh,
                   preferred_element_type=jnp.float32) * scale            # (H, Lq, Lk)
    s = s + mask_bias[None, :, :]                                         # key-padding bias
    m = jnp.max(s, axis=-1, keepdims=True)
    e = jnp.exp(s - m)
    probs = e / jnp.sum(e, axis=-1, keepdims=True)                        # exact softmax

    ctx = jnp.einsum("hqk,hkd->hqd", probs, vh,
                     preferred_element_type=jnp.float32)                  # (H, Lq, Dh)
    # Output projection batched over heads + head-sum (no merge transpose).
    attn = jnp.sum(jnp.einsum("hqd,hde->hqe", ctx, wo_r,
                              preferred_element_type=jnp.float32), axis=0) + bo

    # Attention dropout: identity (inference). Residual + LayerNorm.
    out1 = _layernorm(x + attn, ln1[0:1, :], ln1[1:2, :], eps)

    # FFN (relu), dropout identity, residual + LayerNorm.
    ffn = jnp.maximum(jnp.dot(out1, wf1, preferred_element_type=jnp.float32) + bf1, 0.0)
    ffn = jnp.dot(ffn, wf2, preferred_element_type=jnp.float32) + bf2
    out2 = _layernorm(out1 + ffn, ln2[0:1, :], ln2[1:2, :], eps)

    scores = jnp.mean(probs, axis=0) if need_scores else None             # (Lq, Lk)
    return out2, scores


# ------------------------------ fused kernel --------------------------------

def _decoder_kernel(*refs, heads, eps):
    q_ref, kv_ref, mb_ref = refs[0], refs[1], refs[2]
    out_ref = refs[-1]
    wrefs = refs[3:-1]

    x = q_ref[0].astype(jnp.float32)       # (Lq, E)
    kv = kv_ref[0].astype(jnp.float32)     # (Lk, E)
    mb = mb_ref[0].astype(jnp.float32)     # (1, Lk)

    scores = None
    off = 0
    for i, h in enumerate(heads):
        p = [wrefs[off + j][...] for j in range(len(_BLOCK_KEYS))]
        off += len(_BLOCK_KEYS)
        x, sc = _cross_attn_block(x, kv, mb, p, h, eps,
                                  need_scores=(i == len(heads) - 1))
        if sc is not None:
            scores = sc

    wd3, bd3, wd4, bd4, wd5, bd5, wd6, bd6, whead, bhead = (
        wrefs[off + j][...] for j in range(len(_DENSE_KEYS)))

    # Dense stack (dropout layers are identity in inference mode).
    y = jnp.maximum(jnp.dot(x, wd3, preferred_element_type=jnp.float32) + bd3, 0.0)
    y = jnp.maximum(jnp.dot(y, wd4, preferred_element_type=jnp.float32) + bd4, 0.0)
    y = jnp.maximum(jnp.dot(y, wd5, preferred_element_type=jnp.float32) + bd5, 0.0)
    y = jnp.maximum(jnp.dot(y, wd6, preferred_element_type=jnp.float32) + bd6, 0.0)
    # out and logvar heads fused into one (D6, 2) matmul: col0=preds, col1=logvar.
    y = jnp.dot(y, whead, preferred_element_type=jnp.float32) + bhead     # (Lq, 2)

    # Single lane-packed store: [preds | logvar | head-averaged scores].
    out_ref[0] = jnp.concatenate([y, scores], axis=-1).astype(out_ref.dtype)


# ------------------------------ kernel wrapper -------------------------------

def _const_spec(shape):
    zeros = (0,) * len(shape)
    return pl.BlockSpec(shape, lambda b: zeros)


def decoder_forward(params, head_num, unit_vec, encoder_outputs, mask=None):
    B, Lq, E = unit_vec.shape
    Lk = encoder_outputs.shape[1]
    heads = (head_num, head_num // 2, head_num // 4)
    eps = 1e-5

    # Key-padding mask: nonzero/True marks a padded key column -> -inf pre-softmax.
    if mask is None:
        mask_bias = jnp.zeros((B, 1, Lk), jnp.float32)
    else:
        mask_bias = jnp.where(jnp.reshape(mask, (B, 1, Lk)).astype(bool),
                              jnp.float32(-1e30), jnp.float32(0.0))

    weight_args = []
    for bp in (params["tb1"], params["tb2"], params["tb3"]):
        weight_args += [bp[k] for k in _BLOCK_KEYS]
    weight_args += [params[k] for k in _DENSE_KEYS]

    in_specs = [
        pl.BlockSpec((1, Lq, E), lambda b: (b, 0, 0)),
        pl.BlockSpec((1, Lk, E), lambda b: (b, 0, 0)),
        pl.BlockSpec((1, 1, Lk), lambda b: (b, 0, 0)),
    ] + [_const_spec(w.shape) for w in weight_args]

    packed = pl.pallas_call(
        functools.partial(_decoder_kernel, heads=heads, eps=eps),
        out_shape=jax.ShapeDtypeStruct((B, Lq, Lk + 2), jnp.float32),
        grid=(B,),
        in_specs=in_specs,
        out_specs=pl.BlockSpec((1, Lq, Lk + 2), lambda b: (b, 0, 0)),
        compiler_params=pltpu.CompilerParams(dimension_semantics=("parallel",)),
    )(unit_vec, encoder_outputs, mask_bias, *weight_args)

    preds = packed[..., 0:1].astype(unit_vec.dtype)
    preds_logvar = packed[..., 1:2].astype(unit_vec.dtype)
    attn_scores = packed[..., 2:]          # == self.last_attention_scores
    return preds, preds_logvar, attn_scores


# ----------------------------- parameter creation ----------------------------

def _kaiming_uniform(key, fan_in, fan_out):
    bound = math.sqrt(6.0 / fan_in)  # torch kaiming_uniform_ (a=0) bound
    return jax.random.uniform(key, (fan_in, fan_out), jnp.float32, -bound, bound)


def _bias_uniform(key, fan_in, fan_out):
    bound = 1.0 / math.sqrt(fan_in) if fan_in > 0 else 0.0
    return jax.random.uniform(key, (1, fan_out), jnp.float32, -bound, bound)


def init_linear(key, fan_in, fan_out):
    k1, k2 = jax.random.split(key)
    return _kaiming_uniform(k1, fan_in, fan_out), _bias_uniform(k2, fan_in, fan_out)


def _ln_params(E):
    return jnp.stack([jnp.ones((E,), jnp.float32), jnp.zeros((E,), jnp.float32)])


def init_transformer_block(key, embedding_dim, dense_num, num_heads):
    E = embedding_dim
    ks = jax.random.split(key, 6)
    wq, bq = init_linear(ks[0], E, E)
    wk, bk = init_linear(ks[1], E, E)
    wv, bv = init_linear(ks[2], E, E)
    wo, bo = init_linear(ks[3], E, E)
    wf1, bf1 = init_linear(ks[4], E, dense_num)
    wf2, bf2 = init_linear(ks[5], dense_num, E)
    return {
        "wq": wq, "bq": bq,
        "wkv": jnp.concatenate([wk, wv], axis=1),           # (E, 2E) fused K|V
        "bkv": jnp.concatenate([bk, bv], axis=1),           # (1, 2E)
        "wo_r": wo.reshape(num_heads, E // num_heads, E),   # head-major out-proj
        "bo": bo,
        "ln1": _ln_params(E),
        "wf1": wf1, "bf1": bf1,
        "wf2": wf2, "bf2": bf2,
        "ln2": _ln_params(E),
    }


def init_decoder(key, head_num, dense_num, embedding_dim):
    E = embedding_dim
    ks = jax.random.split(key, 9)
    wd3, bd3 = init_linear(ks[3], E, dense_num)
    wd4, bd4 = init_linear(ks[4], dense_num, dense_num // 2)
    wd5, bd5 = init_linear(ks[5], dense_num // 2, dense_num // 4)
    wd6, bd6 = init_linear(ks[6], dense_num // 4, dense_num // 8)
    wout, bout = init_linear(ks[7], dense_num // 8, 1)
    wlv, blv = init_linear(ks[8], dense_num // 8, 1)
    return {
        "tb1": init_transformer_block(ks[0], E, dense_num, head_num),
        "tb2": init_transformer_block(ks[1], E, dense_num // 2, head_num // 2),
        "tb3": init_transformer_block(ks[2], E, dense_num // 4, head_num // 4),
        "wd3": wd3, "bd3": bd3,
        "wd4": wd4, "bd4": bd4,
        "wd5": wd5, "bd5": bd5,
        "wd6": wd6, "bd6": bd6,
        "whead": jnp.concatenate([wout, wlv], axis=1),   # (dense/8, 2) fused out|logvar
        "bhead": jnp.concatenate([bout, blv], axis=1),   # (1, 2)
    }


# ------------------------------------ main ------------------------------------

if __name__ == "__main__":
    B, Lq, Lk = 2, 4, 8
    embedding_dim = 32
    decoder_head_num = 8          # -> blocks use 8, 4, 2 heads (32 % h == 0)
    decoder_dense_num = 64        # -> dense stack 64, 32, 16, 8 -> {1, 1}

    root = jax.random.PRNGKey(0)
    kp, kq, ke = jax.random.split(root, 3)
    params = init_decoder(kp, decoder_head_num, decoder_dense_num, embedding_dim)

    unit_vec = jax.random.normal(kq, (B, Lq, embedding_dim), jnp.float32)
    encoder_outputs = jax.random.normal(ke, (B, Lk, embedding_dim), jnp.float32)

    fwd = jax.jit(decoder_forward, static_argnums=(1,))
    preds, preds_logvar, attn = fwd(params, decoder_head_num, unit_vec, encoder_outputs)
    jax.block_until_ready((preds, preds_logvar, attn))

    assert preds.shape == (B, Lq, 1)
    assert preds_logvar.shape == (B, Lq, 1)
    assert attn.shape == (B, Lq, Lk)
    assert bool(jnp.all(jnp.isfinite(preds)))
    assert bool(jnp.all(jnp.isfinite(preds_logvar)))
    assert bool(jnp.all(jnp.isfinite(attn)))
    # softmax rows (averaged over heads) should sum to ~1
    assert bool(jnp.all(jnp.abs(jnp.sum(attn, axis=-1) - 1.0) < 1e-4))
    print("KERNEL_OK")
</pallas_src>

<mosaic_0001>
module attributes {stable_mosaic.version = 11 : i64} {
  func.func @_decoder_kernel(%arg0: i32, %arg1: memref<1x4x32xf32, #tpu.memory_space<vmem>>, %arg2: memref<1x8x32xf32, #tpu.memory_space<vmem>>, %arg3: memref<1x1x8xf32, #tpu.memory_space<vmem>>, %arg4: memref<32x32xf32, #tpu.memory_space<vmem>>, %arg5: memref<1x32xf32, #tpu.memory_space<vmem>>, %arg6: memref<32x64xf32, #tpu.memory_space<vmem>>, %arg7: memref<1x64xf32, #tpu.memory_space<vmem>>, %arg8: memref<8x4x32xf32, #tpu.memory_space<vmem>>, %arg9: memref<1x32xf32, #tpu.memory_space<vmem>>, %arg10: memref<2x32xf32, #tpu.memory_space<vmem>>, %arg11: memref<32x64xf32, #tpu.memory_space<vmem>>, %arg12: memref<1x64xf32, #tpu.memory_space<vmem>>, %arg13: memref<64x32xf32, #tpu.memory_space<vmem>>, %arg14: memref<1x32xf32, #tpu.memory_space<vmem>>, %arg15: memref<2x32xf32, #tpu.memory_space<vmem>>, %arg16: memref<32x32xf32, #tpu.memory_space<vmem>>, %arg17: memref<1x32xf32, #tpu.memory_space<vmem>>, %arg18: memref<32x64xf32, #tpu.memory_space<vmem>>, %arg19: memref<1x64xf32, #tpu.memory_space<vmem>>, %arg20: memref<4x8x32xf32, #tpu.memory_space<vmem>>, %arg21: memref<1x32xf32, #tpu.memory_space<vmem>>, %arg22: memref<2x32xf32, #tpu.memory_space<vmem>>, %arg23: memref<32x32xf32, #tpu.memory_space<vmem>>, %arg24: memref<1x32xf32, #tpu.memory_space<vmem>>, %arg25: memref<32x32xf32, #tpu.memory_space<vmem>>, %arg26: memref<1x32xf32, #tpu.memory_space<vmem>>, %arg27: memref<2x32xf32, #tpu.memory_space<vmem>>, %arg28: memref<32x32xf32, #tpu.memory_space<vmem>>, %arg29: memref<1x32xf32, #tpu.memory_space<vmem>>, %arg30: memref<32x64xf32, #tpu.memory_space<vmem>>, %arg31: memref<1x64xf32, #tpu.memory_space<vmem>>, %arg32: memref<2x16x32xf32, #tpu.memory_space<vmem>>, %arg33: memref<1x32xf32, #tpu.memory_space<vmem>>, %arg34: memref<2x32xf32, #tpu.memory_space<vmem>>, %arg35: memref<32x16xf32, #tpu.memory_space<vmem>>, %arg36: memref<1x16xf32, #tpu.memory_space<vmem>>, %arg37: memref<16x32xf32, #tpu.memory_space<vmem>>, %arg38: memref<1x32xf32, #tpu.memory_space<vmem>>, %arg39: memref<2x32xf32, #tpu.memory_space<vmem>>, %arg40: memref<32x64xf32, #tpu.memory_space<vmem>>, %arg41: memref<1x64xf32, #tpu.memory_space<vmem>>, %arg42: memref<64x32xf32, #tpu.memory_space<vmem>>, %arg43: memref<1x32xf32, #tpu.memory_space<vmem>>, %arg44: memref<32x16xf32, #tpu.memory_space<vmem>>, %arg45: memref<1x16xf32, #tpu.memory_space<vmem>>, %arg46: memref<16x8xf32, #tpu.memory_space<vmem>>, %arg47: memref<1x8xf32, #tpu.memory_space<vmem>>, %arg48: memref<8x2xf32, #tpu.memory_space<vmem>>, %arg49: memref<1x2xf32, #tpu.memory_space<vmem>>, %arg50: memref<1x4x10xf32, #tpu.memory_space<vmem>>) attributes {dimension_semantics = [#tpu.dimension_semantics<parallel>], iteration_bounds = array<i64: 2>, scalar_prefetch = 0 : i64, scratch_operands = 0 : i64, tpu.core_type = #tpu.core_type<tc>, window_params = [{transform_indices = @transform_0, window_bounds = array<i64: 1, 4, 32>}, {transform_indices = @transform_1, window_bounds = array<i64: 1, 8, 32>}, {transform_indices = @transform_2, window_bounds = array<i64: 1, 1, 8>}, {pipeline_mode = #tpu.pipeline_mode<synchronous>, transform_indices = @transform_3, window_bounds = array<i64: 32, 32>}, {pipeline_mode = #tpu.pipeline_mode<synchronous>, transform_indices = @transform_4, window_bounds = array<i64: 1, 32>}, {pipeline_mode = #tpu.pipeline_mode<synchronous>, transform_indices = @transform_5, window_bounds = array<i64: 32, 64>}, {pipeline_mode = #tpu.pipeline_mode<synchronous>, transform_indices = @transform_6, window_bounds = array<i64: 1, 64>}, {pipeline_mode = #tpu.pipeline_mode<synchronous>, transform_indices = @transform_7, window_bounds = array<i64: 8, 4, 32>}, {pipeline_mode = #tpu.pipeline_mode<synchronous>, transform_indices = @transform_8, window_bounds = array<i64: 1, 32>}, {pipeline_mode = #tpu.pipeline_mode<synchronous>, transform_indices = @transform_9, window_bounds = array<i64: 2, 32>}, {pipeline_mode = #tpu.pipeline_mode<synchronous>, transform_indices = @transform_10, window_bounds = array<i64: 32, 64>}, {pipeline_mode = #tpu.pipeline_mode<synchronous>, transform_indices = @transform_11, window_bounds = array<i64: 1, 64>}, {pipeline_mode = #tpu.pipeline_mode<synchronous>, transform_indices = @transform_12, window_bounds = array<i64: 64, 32>}, {pipeline_mode = #tpu.pipeline_mode<synchronous>, transform_indices = @transform_13, window_bounds = array<i64: 1, 32>}, {pipeline_mode = #tpu.pipeline_mode<synchronous>, transform_indices = @transform_14, window_bounds = array<i64: 2, 32>}, {pipeline_mode = #tpu.pipeline_mode<synchronous>, transform_indices = @transform_15, window_bounds = array<i64: 32, 32>}, {pipeline_mode = #tpu.pipeline_mode<synchronous>, transform_indices = @transform_16, window_bounds = array<i64: 1, 32>}, {pipeline_mode = #tpu.pipeline_mode<synchronous>, transform_indices = @transform_17, window_bounds = array<i64: 32, 64>}, {pipeline_mode = #tpu.pipeline_mode<synchronous>, transform_indices = @transform_18, window_bounds = array<i64: 1, 64>}, {pipeline_mode = #tpu.pipeline_mode<synchronous>, transform_indices = @transform_19, window_bounds = array<i64: 4, 8, 32>}, {pipeline_mode = #tpu.pipeline_mode<synchronous>, transform_indices = @transform_20, window_bounds = array<i64: 1, 32>}, {pipeline_mode = #tpu.pipeline_mode<synchronous>, transform_indices = @transform_21, window_bounds = array<i64: 2, 32>}, {pipeline_mode = #tpu.pipeline_mode<synchronous>, transform_indices = @transform_22, window_bounds = array<i64: 32, 32>}, {pipeline_mode = #tpu.pipeline_mode<synchronous>, transform_indices = @transform_23, window_bounds = array<i64: 1, 32>}, {pipeline_mode = #tpu.pipeline_mode<synchronous>, transform_indices = @transform_24, window_bounds = array<i64: 32, 32>}, {pipeline_mode = #tpu.pipeline_mode<synchronous>, transform_indices = @transform_25, window_bounds = array<i64: 1, 32>}, {pipeline_mode = #tpu.pipeline_mode<synchronous>, transform_indices = @transform_26, window_bounds = array<i64: 2, 32>}, {pipeline_mode = #tpu.pipeline_mode<synchronous>, transform_indices = @transform_27, window_bounds = array<i64: 32, 32>}, {pipeline_mode = #tpu.pipeline_mode<synchronous>, transform_indices = @transform_28, window_bounds = array<i64: 1, 32>}, {pipeline_mode = #tpu.pipeline_mode<synchronous>, transform_indices = @transform_29, window_bounds = array<i64: 32, 64>}, {pipeline_mode = #tpu.pipeline_mode<synchronous>, transform_indices = @transform_30, window_bounds = array<i64: 1, 64>}, {pipeline_mode = #tpu.pipeline_mode<synchronous>, transform_indices = @transform_31, window_bounds = array<i64: 2, 16, 32>}, {pipeline_mode = #tpu.pipeline_mode<synchronous>, transform_indices = @transform_32, window_bounds = array<i64: 1, 32>}, {pipeline_mode = #tpu.pipeline_mode<synchronous>, transform_indices = @transform_33, window_bounds = array<i64: 2, 32>}, {pipeline_mode = #tpu.pipeline_mode<synchronous>, transform_indices = @transform_34, window_bounds = array<i64: 32, 16>}, {pipeline_mode = #tpu.pipeline_mode<synchronous>, transform_indices = @transform_35, window_bounds = array<i64: 1, 16>}, {pipeline_mode = #tpu.pipeline_mode<synchronous>, transform_indices = @transform_36, window_bounds = array<i64: 16, 32>}, {pipeline_mode = #tpu.pipeline_mode<synchronous>, transform_indices = @transform_37, window_bounds = array<i64: 1, 32>}, {pipeline_mode = #tpu.pipeline_mode<synchronous>, transform_indices = @transform_38, window_bounds = array<i64: 2, 32>}, {pipeline_mode = #tpu.pipeline_mode<synchronous>, transform_indices = @transform_39, window_bounds = array<i64: 32, 64>}, {pipeline_mode = #tpu.pipeline_mode<synchronous>, transform_indices = @transform_40, window_bounds = array<i64: 1, 64>}, {pipeline_mode = #tpu.pipeline_mode<synchronous>, transform_indices = @transform_41, window_bounds = array<i64: 64, 32>}, {pipeline_mode = #tpu.pipeline_mode<synchronous>, transform_indices = @transform_42, window_bounds = array<i64: 1, 32>}, {pipeline_mode = #tpu.pipeline_mode<synchronous>, transform_indices = @transform_43, window_bounds = array<i64: 32, 16>}, {pipeline_mode = #tpu.pipeline_mode<synchronous>, transform_indices = @transform_44, window_bounds = array<i64: 1, 16>}, {pipeline_mode = #tpu.pipeline_mode<synchronous>, transform_indices = @transform_45, window_bounds = array<i64: 16, 8>}, {pipeline_mode = #tpu.pipeline_mode<synchronous>, transform_indices = @transform_46, window_bounds = array<i64: 1, 8>}, {pipeline_mode = #tpu.pipeline_mode<synchronous>, transform_indices = @transform_47, window_bounds = array<i64: 8, 2>}, {pipeline_mode = #tpu.pipeline_mode<synchronous>, transform_indices = @transform_48, window_bounds = array<i64: 1, 2>}, {transform_indices = @transform_49, window_bounds = array<i64: 1, 4, 10>}]} {
    %c0 = arith.constant 0 : index
    %c0_0 = arith.constant 0 : index
    %c0_1 = arith.constant 0 : index
    %0 = vector.load %arg1[%c0, %c0_0, %c0_1] : memref<1x4x32xf32, #tpu.memory_space<vmem>>, vector<1x4x32xf32>
    %1 = vector.shape_cast %0 : vector<1x4x32xf32> to vector<4x32xf32>
    %c0_2 = arith.constant 0 : index
    %c0_3 = arith.constant 0 : index
    %c0_4 = arith.constant 0 : index
    %2 = vector.load %arg2[%c0_2, %c0_3, %c0_4] : memref<1x8x32xf32, #tpu.memory_space<vmem>>, vector<1x8x32xf32>
    %3 = vector.shape_cast %2 : vector<1x8x32xf32> to vector<8x32xf32>
    %c0_5 = arith.constant 0 : index
    %c0_6 = arith.constant 0 : index
    %c0_7 = arith.constant 0 : index
    %4 = vector.load %arg3[%c0_5, %c0_6, %c0_7] : memref<1x1x8xf32, #tpu.memory_space<vmem>>, vector<1x1x8xf32>
    %5 = vector.shape_cast %4 : vector<1x1x8xf32> to vector<1x8xf32>
    %c0_8 = arith.constant 0 : index
    %c0_9 = arith.constant 0 : index
    %6 = vector.load %arg4[%c0_8, %c0_9] : memref<32x32xf32, #tpu.memory_space<vmem>>, vector<32x32xf32>
    %c0_10 = arith.constant 0 : index
    %c0_11 = arith.constant 0 : index
    %7 = vector.load %arg5[%c0_10, %c0_11] : memref<1x32xf32, #tpu.memory_space<vmem>>, vector<1x32xf32>
    %c0_12 = arith.constant 0 : index
    %c0_13 = arith.constant 0 : index
    %8 = vector.load %arg6[%c0_12, %c0_13] : memref<32x64xf32, #tpu.memory_space<vmem>>, vector<32x64xf32>
    %c0_14 = arith.constant 0 : index
    %c0_15 = arith.constant 0 : index
    %9 = vector.load %arg7[%c0_14, %c0_15] : memref<1x64xf32, #tpu.memory_space<vmem>>, vector<1x64xf32>
    %c0_16 = arith.constant 0 : index
    %c0_17 = arith.constant 0 : index
    %c0_18 = arith.constant 0 : index
    %10 = vector.load %arg8[%c0_16, %c0_17, %c0_18] : memref<8x4x32xf32, #tpu.memory_space<vmem>>, vector<8x4x32xf32>
    %c0_19 = arith.constant 0 : index
    %c0_20 = arith.constant 0 : index
    %11 = vector.load %arg9[%c0_19, %c0_20] : memref<1x32xf32, #tpu.memory_space<vmem>>, vector<1x32xf32>
    %c0_21 = arith.constant 0 : index
    %c0_22 = arith.constant 0 : index
    %12 = vector.load %arg10[%c0_21, %c0_22] : memref<2x32xf32, #tpu.memory_space<vmem>>, vector<2x32xf32>
    %c0_23 = arith.constant 0 : index
    %c0_24 = arith.constant 0 : index
    %13 = vector.load %arg11[%c0_23, %c0_24] : memref<32x64xf32, #tpu.memory_space<vmem>>, vector<32x64xf32>
    %c0_25 = arith.constant 0 : index
    %c0_26 = arith.constant 0 : index
    %14 = vector.load %arg12[%c0_25, %c0_26] : memref<1x64xf32, #tpu.memory_space<vmem>>, vector<1x64xf32>
    %c0_27 = arith.constant 0 : index
    %c0_28 = arith.constant 0 : index
    %15 = vector.load %arg13[%c0_27, %c0_28] : memref<64x32xf32, #tpu.memory_space<vmem>>, vector<64x32xf32>
    %c0_29 = arith.constant 0 : index
    %c0_30 = arith.constant 0 : index
    %16 = vector.load %arg14[%c0_29, %c0_30] : memref<1x32xf32, #tpu.memory_space<vmem>>, vector<1x32xf32>
    %c0_31 = arith.constant 0 : index
    %c0_32 = arith.constant 0 : index
    %17 = vector.load %arg15[%c0_31, %c0_32] : memref<2x32xf32, #tpu.memory_space<vmem>>, vector<2x32xf32>
    %cst = arith.constant dense<0.000000e+00> : vector<4x32xf32>
    %18 = tpu.matmul %1, %6, %cst {dimension_numbers = #tpu.dot_dimension_numbers<[1], [0], [0], [1], [0, 0, 1, 1], [], []>} : vector<4x32xf32>, vector<32x32xf32>, vector<4x32xf32> -> vector<4x32xf32>
    %19 = vector.broadcast %7 : vector<1x32xf32> to vector<4x32xf32>
    %20 = arith.addf %18, %19 : vector<4x32xf32>
    %cst_33 = arith.constant dense<0.000000e+00> : vector<8x64xf32>
    %21 = tpu.matmul %3, %8, %cst_33 {dimension_numbers = #tpu.dot_dimension_numbers<[1], [0], [0], [1], [0, 0, 1, 1], [], []>} : vector<8x32xf32>, vector<32x64xf32>, vector<8x64xf32> -> vector<8x64xf32>
    %22 = vector.broadcast %9 : vector<1x64xf32> to vector<8x64xf32>
    %23 = arith.addf %21, %22 : vector<8x64xf32>
    %24 = vector.extract_strided_slice %23 {offsets = [0, 0], sizes = [8, 32], strides = [1, 1]} : vector<8x64xf32> to vector<8x32xf32>
    %25 = vector.extract_strided_slice %23 {offsets = [0, 32], sizes = [8, 32], strides = [1, 1]} : vector<8x64xf32> to vector<8x32xf32>
    %26 = vector.shape_cast %20 : vector<4x32xf32> to vector<4x8x4xf32>
    %27 = tpu.transpose %26, [1, 0, 2] : vector<4x8x4xf32> -> vector<8x4x4xf32>
    %28 = vector.shape_cast %24 : vector<8x32xf32> to vector<8x8x4xf32>
    %29 = tpu.transpose %28, [1, 0, 2] : vector<8x8x4xf32> -> vector<8x8x4xf32>
    %30 = vector.shape_cast %25 : vector<8x32xf32> to vector<8x8x4xf32>
    %31 = tpu.transpose %30, [1, 0, 2] : vector<8x8x4xf32> -> vector<8x8x4xf32>
    "tpu.trace_start"() <{level = 10 : i32, message = "hqd,hkd->hqk"}> : () -> ()
    %cst_34 = arith.constant dense<0.000000e+00> : vector<8x4x8xf32>
    %32 = tpu.matmul %27, %29, %cst_34 {dimension_numbers = #tpu.dot_dimension_numbers<[2], [2], [1], [1], [0, 0, 0, 1, 1, 1], [0], [0]>} : vector<8x4x4xf32>, vector<8x8x4xf32>, vector<8x4x8xf32> -> vector<8x4x8xf32>
    "tpu.trace_stop"() : () -> ()
    %cst_35 = arith.constant 5.000000e-01 : f32
    %33 = vector.broadcast %cst_35 : f32 to vector<8x4x8xf32>
    %34 = arith.mulf %32, %33 : vector<8x4x8xf32>
    %35 = vector.shape_cast %5 : vector<1x8xf32> to vector<1x1x8xf32>
    %36 = vector.broadcast %35 : vector<1x1x8xf32> to vector<8x4x8xf32>
    %37 = arith.addf %34, %36 : vector<8x4x8xf32>
    %cst_36 = arith.constant dense<0xFF800000> : vector<8x4xf32>
    %38 = vector.multi_reduction <maximumf>, %37, %cst_36 [2] : vector<8x4x8xf32> to vector<8x4xf32>
    %39 = vector.shape_cast %38 : vector<8x4xf32> to vector<8x4x1xf32>
    %40 = vector.broadcast %39 : vector<8x4x1xf32> to vector<8x4x8xf32>
    %41 = arith.subf %37, %40 : vector<8x4x8xf32>
    %42 = math.exp %41 : vector<8x4x8xf32>
    %cst_37 = arith.constant dense<0.000000e+00> : vector<8x4xf32>
    %43 = vector.multi_reduction <add>, %42, %cst_37 [2] : vector<8x4x8xf32> to vector<8x4xf32>
    %44 = vector.shape_cast %43 : vector<8x4xf32> to vector<8x4x1xf32>
    %45 = vector.broadcast %44 : vector<8x4x1xf32> to vector<8x4x8xf32>
    %46 = arith.divf %42, %45 : vector<8x4x8xf32>
    "tpu.trace_start"() <{level = 10 : i32, message = "hqk,hkd->hqd"}> : () -> ()
    %cst_38 = arith.constant dense<0.000000e+00> : vector<8x4x4xf32>
    %47 = tpu.matmul %46, %31, %cst_38 {dimension_numbers = #tpu.dot_dimension_numbers<[2], [1], [1], [2], [0, 0, 0, 1, 1, 2], [0], [0]>} : vector<8x4x8xf32>, vector<8x8x4xf32>, vector<8x4x4xf32> -> vector<8x4x4xf32>
    "tpu.trace_stop"() : () -> ()
    "tpu.trace_start"() <{level = 10 : i32, message = "hqd,hde->hqe"}> : () -> ()
    %cst_39 = arith.constant dense<0.000000e+00> : vector<8x4x32xf32>
    %48 = tpu.matmul %47, %10, %cst_39 {dimension_numbers = #tpu.dot_dimension_numbers<[2], [1], [1], [2], [0, 0, 0, 1, 1, 2], [0], [0]>} : vector<8x4x4xf32>, vector<8x4x32xf32>, vector<8x4x32xf32> -> vector<8x4x32xf32>
    "tpu.trace_stop"() : () -> ()
    %cst_40 = arith.constant dense<0.000000e+00> : vector<4x32xf32>
    %49 = vector.multi_reduction <add>, %48, %cst_40 [0] : vector<8x4x32xf32> to vector<4x32xf32>
    %50 = vector.broadcast %11 : vector<1x32xf32> to vector<4x32xf32>
    %51 = arith.addf %49, %50 : vector<4x32xf32>
    %52 = arith.addf %1, %51 : vector<4x32xf32>
    %53 = vector.extract_strided_slice %12 {offsets = [0, 0], sizes = [1, 32], strides = [1, 1]} : vector<2x32xf32> to vector<1x32xf32>
    %54 = vector.extract_strided_slice %12 {offsets = [1, 0], sizes = [1, 32], strides = [1, 1]} : vector<2x32xf32> to vector<1x32xf32>
    %cst_41 = arith.constant dense<0.000000e+00> : vector<4xf32>
    %55 = vector.multi_reduction <add>, %52, %cst_41 [1] : vector<4x32xf32> to vector<4xf32>
    %56 = vector.shape_cast %55 : vector<4xf32> to vector<4x1xf32>
    %cst_42 = arith.constant 3.200000e+01 : f32
    %57 = vector.broadcast %cst_42 : f32 to vector<4x1xf32>
    %58 = arith.divf %56, %57 : vector<4x1xf32>
    %59 = vector.broadcast %58 : vector<4x1xf32> to vector<4x32xf32>
    %60 = arith.subf %52, %59 : vector<4x32xf32>
    %61 = arith.mulf %60, %60 : vector<4x32xf32>
    %cst_43 = arith.constant dense<0.000000e+00> : vector<4xf32>
    %62 = vector.multi_reduction <add>, %61, %cst_43 [1] : vector<4x32xf32> to vector<4xf32>
    %63 = vector.shape_cast %62 : vector<4xf32> to vector<4x1xf32>
    %cst_44 = arith.constant 3.200000e+01 : f32
    %64 = vector.broadcast %cst_44 : f32 to vector<4x1xf32>
    %65 = arith.divf %63, %64 : vector<4x1xf32>
    %66 = vector.broadcast %58 : vector<4x1xf32> to vector<4x32xf32>
    %67 = arith.subf %52, %66 : vector<4x32xf32>
    %cst_45 = arith.constant 9.99999974E-6 : f32
    %68 = vector.broadcast %cst_45 : f32 to vector<4x1xf32>
    %69 = arith.addf %65, %68 : vector<4x1xf32>
    %70 = math.rsqrt %69 : vector<4x1xf32>
    %71 = vector.broadcast %70 : vector<4x1xf32> to vector<4x32xf32>
    %72 = arith.mulf %67, %71 : vector<4x32xf32>
    %73 = vector.broadcast %53 : vector<1x32xf32> to vector<4x32xf32>
    %74 = arith.mulf %72, %73 : vector<4x32xf32>
    %75 = vector.broadcast %54 : vector<1x32xf32> to vector<4x32xf32>
    %76 = arith.addf %74, %75 : vector<4x32xf32>
    %cst_46 = arith.constant dense<0.000000e+00> : vector<4x64xf32>
    %77 = tpu.matmul %76, %13, %cst_46 {dimension_numbers = #tpu.dot_dimension_numbers<[1], [0], [0], [1], [0, 0, 1, 1], [], []>} : vector<4x32xf32>, vector<32x64xf32>, vector<4x64xf32> -> vector<4x64xf32>
    %78 = vector.broadcast %14 : vector<1x64xf32> to vector<4x64xf32>
    %79 = arith.addf %77, %78 : vector<4x64xf32>
    %cst_47 = arith.constant 0.000000e+00 : f32
    %80 = vector.broadcast %cst_47 : f32 to vector<4x64xf32>
    %81 = arith.maximumf %79, %80 : vector<4x64xf32>
    %cst_48 = arith.constant dense<0.000000e+00> : vector<4x32xf32>
    %82 = tpu.matmul %81, %15, %cst_48 {dimension_numbers = #tpu.dot_dimension_numbers<[1], [0], [0], [1], [0, 0, 1, 1], [], []>} : vector<4x64xf32>, vector<64x32xf32>, vector<4x32xf32> -> vector<4x32xf32>
    %83 = vector.broadcast %16 : vector<1x32xf32> to vector<4x32xf32>
    %84 = arith.addf %82, %83 : vector<4x32xf32>
    %85 = arith.addf %76, %84 : vector<4x32xf32>
    %86 = vector.extract_strided_slice %17 {offsets = [0, 0], sizes = [1, 32], strides = [1, 1]} : vector<2x32xf32> to vector<1x32xf32>
    %87 = vector.extract_strided_slice %17 {offsets = [1, 0], sizes = [1, 32], strides = [1, 1]} : vector<2x32xf32> to vector<1x32xf32>
    %cst_49 = arith.constant dense<0.000000e+00> : vector<4xf32>
    %88 = vector.multi_reduction <add>, %85, %cst_49 [1] : vector<4x32xf32> to vector<4xf32>
    %89 = vector.shape_cast %88 : vector<4xf32> to vector<4x1xf32>
    %cst_50 = arith.constant 3.200000e+01 : f32
    %90 = vector.broadcast %cst_50 : f32 to vector<4x1xf32>
    %91 = arith.divf %89, %90 : vector<4x1xf32>
    %92 = vector.broadcast %91 : vector<4x1xf32> to vector<4x32xf32>
    %93 = arith.subf %85, %92 : vector<4x32xf32>
    %94 = arith.mulf %93, %93 : vector<4x32xf32>
    %cst_51 = arith.constant dense<0.000000e+00> : vector<4xf32>
    %95 = vector.multi_reduction <add>, %94, %cst_51 [1] : vector<4x32xf32> to vector<4xf32>
    %96 = vector.shape_cast %95 : vector<4xf32> to vector<4x1xf32>
    %cst_52 = arith.constant 3.200000e+01 : f32
    %97 = vector.broadcast %cst_52 : f32 to vector<4x1xf32>
    %98 = arith.divf %96, %97 : vector<4x1xf32>
    %99 = vector.broadcast %91 : vector<4x1xf32> to vector<4x32xf32>
    %100 = arith.subf %85, %99 : vector<4x32xf32>
    %cst_53 = arith.constant 9.99999974E-6 : f32
    %101 = vector.broadcast %cst_53 : f32 to vector<4x1xf32>
    %102 = arith.addf %98, %101 : vector<4x1xf32>
    %103 = math.rsqrt %102 : vector<4x1xf32>
    %104 = vector.broadcast %103 : vector<4x1xf32> to vector<4x32xf32>
    %105 = arith.mulf %100, %104 : vector<4x32xf32>
    %106 = vector.broadcast %86 : vector<1x32xf32> to vector<4x32xf32>
    %107 = arith.mulf %105, %106 : vector<4x32xf32>
    %108 = vector.broadcast %87 : vector<1x32xf32> to vector<4x32xf32>
    %109 = arith.addf %107, %108 : vector<4x32xf32>
    %c0_54 = arith.constant 0 : index
    %c0_55 = arith.constant 0 : index
    %110 = vector.load %arg16[%c0_54, %c0_55] : memref<32x32xf32, #tpu.memory_space<vmem>>, vector<32x32xf32>
    %c0_56 = arith.constant 0 : index
    %c0_57 = arith.constant 0 : index
    %111 = vector.load %arg17[%c0_56, %c0_57] : memref<1x32xf32, #tpu.memory_space<vmem>>, vector<1x32xf32>
    %c0_58 = arith.constant 0 : index
    %c0_59 = arith.constant 0 : index
    %112 = vector.load %arg18[%c0_58, %c0_59] : memref<32x64xf32, #tpu.memory_space<vmem>>, vector<32x64xf32>
    %c0_60 = arith.constant 0 : index
    %c0_61 = arith.constant 0 : index
    %113 = vector.load %arg19[%c0_60, %c0_61] : memref<1x64xf32, #tpu.memory_space<vmem>>, vector<1x64xf32>
    %c0_62 = arith.constant 0 : index
    %c0_63 = arith.constant 0 : index
    %c0_64 = arith.constant 0 : index
    %114 = vector.load %arg20[%c0_62, %c0_63, %c0_64] : memref<4x8x32xf32, #tpu.memory_space<vmem>>, vector<4x8x32xf32>
    %c0_65 = arith.constant 0 : index
    %c0_66 = arith.constant 0 : index
    %115 = vector.load %arg21[%c0_65, %c0_66] : memref<1x32xf32, #tpu.memory_space<vmem>>, vector<1x32xf32>
    %c0_67 = arith.constant 0 : index
    %c0_68 = arith.constant 0 : index
    %116 = vector.load %arg22[%c0_67, %c0_68] : memref<2x32xf32, #tpu.memory_space<vmem>>, vector<2x32xf32>
    %c0_69 = arith.constant 0 : index
    %c0_70 = arith.constant 0 : index
    %117 = vector.load %arg23[%c0_69, %c0_70] : memref<32x32xf32, #tpu.memory_space<vmem>>, vector<32x32xf32>
    %c0_71 = arith.constant 0 : index
    %c0_72 = arith.constant 0 : index
    %118 = vector.load %arg24[%c0_71, %c0_72] : memref<1x32xf32, #tpu.memory_space<vmem>>, vector<1x32xf32>
    %c0_73 = arith.constant 0 : index
    %c0_74 = arith.constant 0 : index
    %119 = vector.load %arg25[%c0_73, %c0_74] : memref<32x32xf32, #tpu.memory_space<vmem>>, vector<32x32xf32>
    %c0_75 = arith.constant 0 : index
    %c0_76 = arith.constant 0 : index
    %120 = vector.load %arg26[%c0_75, %c0_76] : memref<1x32xf32, #tpu.memory_space<vmem>>, vector<1x32xf32>
    %c0_77 = arith.constant 0 : index
    %c0_78 = arith.constant 0 : index
    %121 = vector.load %arg27[%c0_77, %c0_78] : memref<2x32xf32, #tpu.memory_space<vmem>>, vector<2x32xf32>
    %cst_79 = arith.constant dense<0.000000e+00> : vector<4x32xf32>
    %122 = tpu.matmul %109, %110, %cst_79 {dimension_numbers = #tpu.dot_dimension_numbers<[1], [0], [0], [1], [0, 0, 1, 1], [], []>} : vector<4x32xf32>, vector<32x32xf32>, vector<4x32xf32> -> vector<4x32xf32>
    %123 = vector.broadcast %111 : vector<1x32xf32> to vector<4x32xf32>
    %124 = arith.addf %122, %123 : vector<4x32xf32>
    %cst_80 = arith.constant dense<0.000000e+00> : vector<8x64xf32>
    %125 = tpu.matmul %3, %112, %cst_80 {dimension_numbers = #tpu.dot_dimension_numbers<[1], [0], [0], [1], [0, 0, 1, 1], [], []>} : vector<8x32xf32>, vector<32x64xf32>, vector<8x64xf32> -> vector<8x64xf32>
    %126 = vector.broadcast %113 : vector<1x64xf32> to vector<8x64xf32>
    %127 = arith.addf %125, %126 : vector<8x64xf32>
    %128 = vector.extract_strided_slice %127 {offsets = [0, 0], sizes = [8, 32], strides = [1, 1]} : vector<8x64xf32> to vector<8x32xf32>
    %129 = vector.extract_strided_slice %127 {offsets = [0, 32], sizes = [8, 32], strides = [1, 1]} : vector<8x64xf32> to vector<8x32xf32>
    %130 = vector.shape_cast %124 : vector<4x32xf32> to vector<4x4x8xf32>
    %131 = tpu.transpose %130, [1, 0, 2] : vector<4x4x8xf32> -> vector<4x4x8xf32>
    %132 = vector.shape_cast %128 : vector<8x32xf32> to vector<8x4x8xf32>
    %133 = tpu.transpose %132, [1, 0, 2] : vector<8x4x8xf32> -> vector<4x8x8xf32>
    %134 = vector.shape_cast %129 : vector<8x32xf32> to vector<8x4x8xf32>
    %135 = tpu.transpose %134, [1, 0, 2] : vector<8x4x8xf32> -> vector<4x8x8xf32>
    "tpu.trace_start"() <{level = 10 : i32, message = "hqd,hkd->hqk"}> : () -> ()
    %cst_81 = arith.constant dense<0.000000e+00> : vector<4x4x8xf32>
    %136 = tpu.matmul %131, %133, %cst_81 {dimension_numbers = #tpu.dot_dimension_numbers<[2], [2], [1], [1], [0, 0, 0, 1, 1, 1], [0], [0]>} : vector<4x4x8xf32>, vector<4x8x8xf32>, vector<4x4x8xf32> -> vector<4x4x8xf32>
    "tpu.trace_stop"() : () -> ()
    %cst_82 = arith.constant 0.353553385 : f32
    %137 = vector.broadcast %cst_82 : f32 to vector<4x4x8xf32>
    %138 = arith.mulf %136, %137 : vector<4x4x8xf32>
    %139 = vector.shape_cast %5 : vector<1x8xf32> to vector<1x1x8xf32>
    %140 = vector.broadcast %139 : vector<1x1x8xf32> to vector<4x4x8xf32>
    %141 = arith.addf %138, %140 : vector<4x4x8xf32>
    %cst_83 = arith.constant dense<0xFF800000> : vector<4x4xf32>
    %142 = vector.multi_reduction <maximumf>, %141, %cst_83 [2] : vector<4x4x8xf32> to vector<4x4xf32>
    %143 = vector.shape_cast %142 : vector<4x4xf32> to vector<4x4x1xf32>
    %144 = vector.broadcast %143 : vector<4x4x1xf32> to vector<4x4x8xf32>
    %145 = arith.subf %141, %144 : vector<4x4x8xf32>
    %146 = math.exp %145 : vector<4x4x8xf32>
    %cst_84 = arith.constant dense<0.000000e+00> : vector<4x4xf32>
    %147 = vector.multi_reduction <add>, %146, %cst_84 [2] : vector<4x4x8xf32> to vector<4x4xf32>
    %148 = vector.shape_cast %147 : vector<4x4xf32> to vector<4x4x1xf32>
    %149 = vector.broadcast %148 : vector<4x4x1xf32> to vector<4x4x8xf32>
    %150 = arith.divf %146, %149 : vector<4x4x8xf32>
    "tpu.trace_start"() <{level = 10 : i32, message = "hqk,hkd->hqd"}> : () -> ()
    %cst_85 = arith.constant dense<0.000000e+00> : vector<4x4x8xf32>
    %151 = tpu.matmul %150, %135, %cst_85 {dimension_numbers = #tpu.dot_dimension_numbers<[2], [1], [1], [2], [0, 0, 0, 1, 1, 2], [0], [0]>} : vector<4x4x8xf32>, vector<4x8x8xf32>, vector<4x4x8xf32> -> vector<4x4x8xf32>
    "tpu.trace_stop"() : () -> ()
    "tpu.trace_start"() <{level = 10 : i32, message = "hqd,hde->hqe"}> : () -> ()
    %cst_86 = arith.constant dense<0.000000e+00> : vector<4x4x32xf32>
    %152 = tpu.matmul %151, %114, %cst_86 {dimension_numbers = #tpu.dot_dimension_numbers<[2], [1], [1], [2], [0, 0, 0, 1, 1, 2], [0], [0]>} : vector<4x4x8xf32>, vector<4x8x32xf32>, vector<4x4x32xf32> -> vector<4x4x32xf32>
    "tpu.trace_stop"() : () -> ()
    %cst_87 = arith.constant dense<0.000000e+00> : vector<4x32xf32>
    %153 = vector.multi_reduction <add>, %152, %cst_87 [0] : vector<4x4x32xf32> to vector<4x32xf32>
    %154 = vector.broadcast %115 : vector<1x32xf32> to vector<4x32xf32>
    %155 = arith.addf %153, %154 : vector<4x32xf32>
    %156 = arith.addf %109, %155 : vector<4x32xf32>
    %157 = vector.extract_strided_slice %116 {offsets = [0, 0], sizes = [1, 32], strides = [1, 1]} : vector<2x32xf32> to vector<1x32xf32>
    %158 = vector.extract_strided_slice %116 {offsets = [1, 0], sizes = [1, 32], strides = [1, 1]} : vector<2x32xf32> to vector<1x32xf32>
    %cst_88 = arith.constant dense<0.000000e+00> : vector<4xf32>
    %159 = vector.multi_reduction <add>, %156, %cst_88 [1] : vector<4x32xf32> to vector<4xf32>
    %160 = vector.shape_cast %159 : vector<4xf32> to vector<4x1xf32>
    %cst_89 = arith.constant 3.200000e+01 : f32
    %161 = vector.broadcast %cst_89 : f32 to vector<4x1xf32>
    %162 = arith.divf %160, %161 : vector<4x1xf32>
    %163 = vector.broadcast %162 : vector<4x1xf32> to vector<4x32xf32>
    %164 = arith.subf %156, %163 : vector<4x32xf32>
    %165 = arith.mulf %164, %164 : vector<4x32xf32>
    %cst_90 = arith.constant dense<0.000000e+00> : vector<4xf32>
    %166 = vector.multi_reduction <add>, %165, %cst_90 [1] : vector<4x32xf32> to vector<4xf32>
    %167 = vector.shape_cast %166 : vector<4xf32> to vector<4x1xf32>
    %cst_91 = arith.constant 3.200000e+01 : f32
    %168 = vector.broadcast %cst_91 : f32 to vector<4x1xf32>
    %169 = arith.divf %167, %168 : vector<4x1xf32>
    %170 = vector.broadcast %162 : vector<4x1xf32> to vector<4x32xf32>
    %171 = arith.subf %156, %170 : vector<4x32xf32>
    %cst_92 = arith.constant 9.99999974E-6 : f32
    %172 = vector.broadcast %cst_92 : f32 to vector<4x1xf32>
    %173 = arith.addf %169, %172 : vector<4x1xf32>
    %174 = math.rsqrt %173 : vector<4x1xf32>
    %175 = vector.broadcast %174 : vector<4x1xf32> to vector<4x32xf32>
    %176 = arith.mulf %171, %175 : vector<4x32xf32>
    %177 = vector.broadcast %157 : vector<1x32xf32> to vector<4x32xf32>
    %178 = arith.mulf %176, %177 : vector<4x32xf32>
    %179 = vector.broadcast %158 : vector<1x32xf32> to vector<4x32xf32>
    %180 = arith.addf %178, %179 : vector<4x32xf32>
    %cst_93 = arith.constant dense<0.000000e+00> : vector<4x32xf32>
    %181 = tpu.matmul %180, %117, %cst_93 {dimension_numbers = #tpu.dot_dimension_numbers<[1], [0], [0], [1], [0, 0, 1, 1], [], []>} : vector<4x32xf32>, vector<32x32xf32>, vector<4x32xf32> -> vector<4x32xf32>
    %182 = vector.broadcast %118 : vector<1x32xf32> to vector<4x32xf32>
    %183 = arith.addf %181, %182 : vector<4x32xf32>
    %cst_94 = arith.constant 0.000000e+00 : f32
    %184 = vector.broadcast %cst_94 : f32 to vector<4x32xf32>
    %185 = arith.maximumf %183, %184 : vector<4x32xf32>
    %cst_95 = arith.constant dense<0.000000e+00> : vector<4x32xf32>
    %186 = tpu.matmul %185, %119, %cst_95 {dimension_numbers = #tpu.dot_dimension_numbers<[1], [0], [0], [1], [0, 0, 1, 1], [], []>} : vector<4x32xf32>, vector<32x32xf32>, vector<4x32xf32> -> vector<4x32xf32>
    %187 = vector.broadcast %120 : vector<1x32xf32> to vector<4x32xf32>
    %188 = arith.addf %186, %187 : vector<4x32xf32>
    %189 = arith.addf %180, %188 : vector<4x32xf32>
    %190 = vector.extract_strided_slice %121 {offsets = [0, 0], sizes = [1, 32], strides = [1, 1]} : vector<2x32xf32> to vector<1x32xf32>
    %191 = vector.extract_strided_slice %121 {offsets = [1, 0], sizes = [1, 32], strides = [1, 1]} : vector<2x32xf32> to vector<1x32xf32>
    %cst_96 = arith.constant dense<0.000000e+00> : vector<4xf32>
    %192 = vector.multi_reduction <add>, %189, %cst_96 [1] : vector<4x32xf32> to vector<4xf32>
    %193 = vector.shape_cast %192 : vector<4xf32> to vector<4x1xf32>
    %cst_97 = arith.constant 3.200000e+01 : f32
    %194 = vector.broadcast %cst_97 : f32 to vector<4x1xf32>
    %195 = arith.divf %193, %194 : vector<4x1xf32>
    %196 = vector.broadcast %195 : vector<4x1xf32> to vector<4x32xf32>
    %197 = arith.subf %189, %196 : vector<4x32xf32>
    %198 = arith.mulf %197, %197 : vector<4x32xf32>
    %cst_98 = arith.constant dense<0.000000e+00> : vector<4xf32>
    %199 = vector.multi_reduction <add>, %198, %cst_98 [1] : vector<4x32xf32> to vector<4xf32>
    %200 = vector.shape_cast %199 : vector<4xf32> to vector<4x1xf32>
    %cst_99 = arith.constant 3.200000e+01 : f32
    %201 = vector.broadcast %cst_99 : f32 to vector<4x1xf32>
    %202 = arith.divf %200, %201 : vector<4x1xf32>
    %203 = vector.broadcast %195 : vector<4x1xf32> to vector<4x32xf32>
    %204 = arith.subf %189, %203 : vector<4x32xf32>
    %cst_100 = arith.constant 9.99999974E-6 : f32
    %205 = vector.broadcast %cst_100 : f32 to vector<4x1xf32>
    %206 = arith.addf %202, %205 : vector<4x1xf32>
    %207 = math.rsqrt %206 : vector<4x1xf32>
    %208 = vector.broadcast %207 : vector<4x1xf32> to vector<4x32xf32>
    %209 = arith.mulf %204, %208 : vector<4x32xf32>
    %210 = vector.broadcast %190 : vector<1x32xf32> to vector<4x32xf32>
    %211 = arith.mulf %209, %210 : vector<4x32xf32>
    %212 = vector.broadcast %191 : vector<1x32xf32> to vector<4x32xf32>
    %213 = arith.addf %211, %212 : vector<4x32xf32>
    %c0_101 = arith.constant 0 : index
    %c0_102 = arith.constant 0 : index
    %214 = vector.load %arg28[%c0_101, %c0_102] : memref<32x32xf32, #tpu.memory_space<vmem>>, vector<32x32xf32>
    %c0_103 = arith.constant 0 : index
    %c0_104 = arith.constant 0 : index
    %215 = vector.load %arg29[%c0_103, %c0_104] : memref<1x32xf32, #tpu.memory_space<vmem>>, vector<1x32xf32>
    %c0_105 = arith.constant 0 : index
    %c0_106 = arith.constant 0 : index
    %216 = vector.load %arg30[%c0_105, %c0_106] : memref<32x64xf32, #tpu.memory_space<vmem>>, vector<32x64xf32>
    %c0_107 = arith.constant 0 : index
    %c0_108 = arith.constant 0 : index
    %217 = vector.load %arg31[%c0_107, %c0_108] : memref<1x64xf32, #tpu.memory_space<vmem>>, vector<1x64xf32>
    %c0_109 = arith.constant 0 : index
    %c0_110 = arith.constant 0 : index
    %c0_111 = arith.constant 0 : index
    %218 = vector.load %arg32[%c0_109, %c0_110, %c0_111] : memref<2x16x32xf32, #tpu.memory_space<vmem>>, vector<2x16x32xf32>
    %c0_112 = arith.constant 0 : index
    %c0_113 = arith.constant 0 : index
    %219 = vector.load %arg33[%c0_112, %c0_113] : memref<1x32xf32, #tpu.memory_space<vmem>>, vector<1x32xf32>
    %c0_114 = arith.constant 0 : index
    %c0_115 = arith.constant 0 : index
    %220 = vector.load %arg34[%c0_114, %c0_115] : memref<2x32xf32, #tpu.memory_space<vmem>>, vector<2x32xf32>
    %c0_116 = arith.constant 0 : index
    %c0_117 = arith.constant 0 : index
    %221 = vector.load %arg35[%c0_116, %c0_117] : memref<32x16xf32, #tpu.memory_space<vmem>>, vector<32x16xf32>
    %c0_118 = arith.constant 0 : index
    %c0_119 = arith.constant 0 : index
    %222 = vector.load %arg36[%c0_118, %c0_119] : memref<1x16xf32, #tpu.memory_space<vmem>>, vector<1x16xf32>
    %c0_120 = arith.constant 0 : index
    %c0_121 = arith.constant 0 : index
    %223 = vector.load %arg37[%c0_120, %c0_121] : memref<16x32xf32, #tpu.memory_space<vmem>>, vector<16x32xf32>
    %c0_122 = arith.constant 0 : index
    %c0_123 = arith.constant 0 : index
    %224 = vector.load %arg38[%c0_122, %c0_123] : memref<1x32xf32, #tpu.memory_space<vmem>>, vector<1x32xf32>
    %c0_124 = arith.constant 0 : index
    %c0_125 = arith.constant 0 : index
    %225 = vector.load %arg39[%c0_124, %c0_125] : memref<2x32xf32, #tpu.memory_space<vmem>>, vector<2x32xf32>
    %cst_126 = arith.constant dense<0.000000e+00> : vector<4x32xf32>
    %226 = tpu.matmul %213, %214, %cst_126 {dimension_numbers = #tpu.dot_dimension_numbers<[1], [0], [0], [1], [0, 0, 1, 1], [], []>} : vector<4x32xf32>, vector<32x32xf32>, vector<4x32xf32> -> vector<4x32xf32>
    %227 = vector.broadcast %215 : vector<1x32xf32> to vector<4x32xf32>
    %228 = arith.addf %226, %227 : vector<4x32xf32>
    %cst_127 = arith.constant dense<0.000000e+00> : vector<8x64xf32>
    %229 = tpu.matmul %3, %216, %cst_127 {dimension_numbers = #tpu.dot_dimension_numbers<[1], [0], [0], [1], [0, 0, 1, 1], [], []>} : vector<8x32xf32>, vector<32x64xf32>, vector<8x64xf32> -> vector<8x64xf32>
    %230 = vector.broadcast %217 : vector<1x64xf32> to vector<8x64xf32>
    %231 = arith.addf %229, %230 : vector<8x64xf32>
    %232 = vector.extract_strided_slice %231 {offsets = [0, 0], sizes = [8, 32], strides = [1, 1]} : vector<8x64xf32> to vector<8x32xf32>
    %233 = vector.extract_strided_slice %231 {offsets = [0, 32], sizes = [8, 32], strides = [1, 1]} : vector<8x64xf32> to vector<8x32xf32>
    %234 = vector.shape_cast %228 : vector<4x32xf32> to vector<4x2x16xf32>
    %235 = tpu.transpose %234, [1, 0, 2] : vector<4x2x16xf32> -> vector<2x4x16xf32>
    %236 = vector.shape_cast %232 : vector<8x32xf32> to vector<8x2x16xf32>
    %237 = tpu.transpose %236, [1, 0, 2] : vector<8x2x16xf32> -> vector<2x8x16xf32>
    %238 = vector.shape_cast %233 : vector<8x32xf32> to vector<8x2x16xf32>
    %239 = tpu.transpose %238, [1, 0, 2] : vector<8x2x16xf32> -> vector<2x8x16xf32>
    "tpu.trace_start"() <{level = 10 : i32, message = "hqd,hkd->hqk"}> : () -> ()
    %cst_128 = arith.constant dense<0.000000e+00> : vector<2x4x8xf32>
    %240 = tpu.matmul %235, %237, %cst_128 {dimension_numbers = #tpu.dot_dimension_numbers<[2], [2], [1], [1], [0, 0, 0, 1, 1, 1], [0], [0]>} : vector<2x4x16xf32>, vector<2x8x16xf32>, vector<2x4x8xf32> -> vector<2x4x8xf32>
    "tpu.trace_stop"() : () -> ()
    %cst_129 = arith.constant 2.500000e-01 : f32
    %241 = vector.broadcast %cst_129 : f32 to vector<2x4x8xf32>
    %242 = arith.mulf %240, %241 : vector<2x4x8xf32>
    %243 = vector.shape_cast %5 : vector<1x8xf32> to vector<1x1x8xf32>
    %244 = vector.broadcast %243 : vector<1x1x8xf32> to vector<2x4x8xf32>
    %245 = arith.addf %242, %244 : vector<2x4x8xf32>
    %cst_130 = arith.constant dense<0xFF800000> : vector<2x4xf32>
    %246 = vector.multi_reduction <maximumf>, %245, %cst_130 [2] : vector<2x4x8xf32> to vector<2x4xf32>
    %247 = vector.shape_cast %246 : vector<2x4xf32> to vector<2x4x1xf32>
    %248 = vector.broadcast %247 : vector<2x4x1xf32> to vector<2x4x8xf32>
    %249 = arith.subf %245, %248 : vector<2x4x8xf32>
    %250 = math.exp %249 : vector<2x4x8xf32>
    %cst_131 = arith.constant dense<0.000000e+00> : vector<2x4xf32>
    %251 = vector.multi_reduction <add>, %250, %cst_131 [2] : vector<2x4x8xf32> to vector<2x4xf32>
    %252 = vector.shape_cast %251 : vector<2x4xf32> to vector<2x4x1xf32>
    %253 = vector.broadcast %252 : vector<2x4x1xf32> to vector<2x4x8xf32>
    %254 = arith.divf %250, %253 : vector<2x4x8xf32>
    "tpu.trace_start"() <{level = 10 : i32, message = "hqk,hkd->hqd"}> : () -> ()
    %cst_132 = arith.constant dense<0.000000e+00> : vector<2x4x16xf32>
    %255 = tpu.matmul %254, %239, %cst_132 {dimension_numbers = #tpu.dot_dimension_numbers<[2], [1], [1], [2], [0, 0, 0, 1, 1, 2], [0], [0]>} : vector<2x4x8xf32>, vector<2x8x16xf32>, vector<2x4x16xf32> -> vector<2x4x16xf32>
    "tpu.trace_stop"() : () -> ()
    "tpu.trace_start"() <{level = 10 : i32, message = "hqd,hde->hqe"}> : () -> ()
    %cst_133 = arith.constant dense<0.000000e+00> : vector<2x4x32xf32>
    %256 = tpu.matmul %255, %218, %cst_133 {dimension_numbers = #tpu.dot_dimension_numbers<[2], [1], [1], [2], [0, 0, 0, 1, 1, 2], [0], [0]>} : vector<2x4x16xf32>, vector<2x16x32xf32>, vector<2x4x32xf32> -> vector<2x4x32xf32>
    "tpu.trace_stop"() : () -> ()
    %cst_134 = arith.constant dense<0.000000e+00> : vector<4x32xf32>
    %257 = vector.multi_reduction <add>, %256, %cst_134 [0] : vector<2x4x32xf32> to vector<4x32xf32>
    %258 = vector.broadcast %219 : vector<1x32xf32> to vector<4x32xf32>
    %259 = arith.addf %257, %258 : vector<4x32xf32>
    %260 = arith.addf %213, %259 : vector<4x32xf32>
    %261 = vector.extract_strided_slice %220 {offsets = [0, 0], sizes = [1, 32], strides = [1, 1]} : vector<2x32xf32> to vector<1x32xf32>
    %262 = vector.extract_strided_slice %220 {offsets = [1, 0], sizes = [1, 32], strides = [1, 1]} : vector<2x32xf32> to vector<1x32xf32>
    %cst_135 = arith.constant dense<0.000000e+00> : vector<4xf32>
    %263 = vector.multi_reduction <add>, %260, %cst_135 [1] : vector<4x32xf32> to vector<4xf32>
    %264 = vector.shape_cast %263 : vector<4xf32> to vector<4x1xf32>
    %cst_136 = arith.constant 3.200000e+01 : f32
    %265 = vector.broadcast %cst_136 : f32 to vector<4x1xf32>
    %266 = arith.divf %264, %265 : vector<4x1xf32>
    %267 = vector.broadcast %266 : vector<4x1xf32> to vector<4x32xf32>
    %268 = arith.subf %260, %267 : vector<4x32xf32>
    %269 = arith.mulf %268, %268 : vector<4x32xf32>
    %cst_137 = arith.constant dense<0.000000e+00> : vector<4xf32>
    %270 = vector.multi_reduction <add>, %269, %cst_137 [1] : vector<4x32xf32> to vector<4xf32>
    %271 = vector.shape_cast %270 : vector<4xf32> to vector<4x1xf32>
    %cst_138 = arith.constant 3.200000e+01 : f32
    %272 = vector.broadcast %cst_138 : f32 to vector<4x1xf32>
    %273 = arith.divf %271, %272 : vector<4x1xf32>
    %274 = vector.broadcast %266 : vector<4x1xf32> to vector<4x32xf32>
    %275 = arith.subf %260, %274 : vector<4x32xf32>
    %cst_139 = arith.constant 9.99999974E-6 : f32
    %276 = vector.broadcast %cst_139 : f32 to vector<4x1xf32>
    %277 = arith.addf %273, %276 : vector<4x1xf32>
    %278 = math.rsqrt %277 : vector<4x1xf32>
    %279 = vector.broadcast %278 : vector<4x1xf32> to vector<4x32xf32>
    %280 = arith.mulf %275, %279 : vector<4x32xf32>
    %281 = vector.broadcast %261 : vector<1x32xf32> to vector<4x32xf32>
    %282 = arith.mulf %280, %281 : vector<4x32xf32>
    %283 = vector.broadcast %262 : vector<1x32xf32> to vector<4x32xf32>
    %284 = arith.addf %282, %283 : vector<4x32xf32>
    %cst_140 = arith.constant dense<0.000000e+00> : vector<4x16xf32>
    %285 = tpu.matmul %284, %221, %cst_140 {dimension_numbers = #tpu.dot_dimension_numbers<[1], [0], [0], [1], [0, 0, 1, 1], [], []>} : vector<4x32xf32>, vector<32x16xf32>, vector<4x16xf32> -> vector<4x16xf32>
    %286 = vector.broadcast %222 : vector<1x16xf32> to vector<4x16xf32>
    %287 = arith.addf %285, %286 : vector<4x16xf32>
    %cst_141 = arith.constant 0.000000e+00 : f32
    %288 = vector.broadcast %cst_141 : f32 to vector<4x16xf32>
    %289 = arith.maximumf %287, %288 : vector<4x16xf32>
    %cst_142 = arith.constant dense<0.000000e+00> : vector<4x32xf32>
    %290 = tpu.matmul %289, %223, %cst_142 {dimension_numbers = #tpu.dot_dimension_numbers<[1], [0], [0], [1], [0, 0, 1, 1], [], []>} : vector<4x16xf32>, vector<16x32xf32>, vector<4x32xf32> -> vector<4x32xf32>
    %291 = vector.broadcast %224 : vector<1x32xf32> to vector<4x32xf32>
    %292 = arith.addf %290, %291 : vector<4x32xf32>
    %293 = arith.addf %284, %292 : vector<4x32xf32>
    %294 = vector.extract_strided_slice %225 {offsets = [0, 0], sizes = [1, 32], strides = [1, 1]} : vector<2x32xf32> to vector<1x32xf32>
    %295 = vector.extract_strided_slice %225 {offsets = [1, 0], sizes = [1, 32], strides = [1, 1]} : vector<2x32xf32> to vector<1x32xf32>
    %cst_143 = arith.constant dense<0.000000e+00> : vector<4xf32>
    %296 = vector.multi_reduction <add>, %293, %cst_143 [1] : vector<4x32xf32> to vector<4xf32>
    %297 = vector.shape_cast %296 : vector<4xf32> to vector<4x1xf32>
    %cst_144 = arith.constant 3.200000e+01 : f32
    %298 = vector.broadcast %cst_144 : f32 to vector<4x1xf32>
    %299 = arith.divf %297, %298 : vector<4x1xf32>
    %300 = vector.broadcast %299 : vector<4x1xf32> to vector<4x32xf32>
    %301 = arith.subf %293, %300 : vector<4x32xf32>
    %302 = arith.mulf %301, %301 : vector<4x32xf32>
    %cst_145 = arith.constant dense<0.000000e+00> : vector<4xf32>
    %303 = vector.multi_reduction <add>, %302, %cst_145 [1] : vector<4x32xf32> to vector<4xf32>
    %304 = vector.shape_cast %303 : vector<4xf32> to vector<4x1xf32>
    %cst_146 = arith.constant 3.200000e+01 : f32
    %305 = vector.broadcast %cst_146 : f32 to vector<4x1xf32>
    %306 = arith.divf %304, %305 : vector<4x1xf32>
    %307 = vector.broadcast %299 : vector<4x1xf32> to vector<4x32xf32>
    %308 = arith.subf %293, %307 : vector<4x32xf32>
    %cst_147 = arith.constant 9.99999974E-6 : f32
    %309 = vector.broadcast %cst_147 : f32 to vector<4x1xf32>
    %310 = arith.addf %306, %309 : vector<4x1xf32>
    %311 = math.rsqrt %310 : vector<4x1xf32>
    %312 = vector.broadcast %311 : vector<4x1xf32> to vector<4x32xf32>
    %313 = arith.mulf %308, %312 : vector<4x32xf32>
    %314 = vector.broadcast %294 : vector<1x32xf32> to vector<4x32xf32>
    %315 = arith.mulf %313, %314 : vector<4x32xf32>
    %316 = vector.broadcast %295 : vector<1x32xf32> to vector<4x32xf32>
    %317 = arith.addf %315, %316 : vector<4x32xf32>
    %cst_148 = arith.constant dense<0.000000e+00> : vector<4x8xf32>
    %318 = vector.multi_reduction <add>, %254, %cst_148 [0] : vector<2x4x8xf32> to vector<4x8xf32>
    %cst_149 = arith.constant 2.000000e+00 : f32
    %319 = vector.broadcast %cst_149 : f32 to vector<4x8xf32>
    %320 = arith.divf %318, %319 : vector<4x8xf32>
    %c0_150 = arith.constant 0 : index
    %c0_151 = arith.constant 0 : index
    %321 = vector.load %arg40[%c0_150, %c0_151] : memref<32x64xf32, #tpu.memory_space<vmem>>, vector<32x64xf32>
    %c0_152 = arith.constant 0 : index
    %c0_153 = arith.constant 0 : index
    %322 = vector.load %arg41[%c0_152, %c0_153] : memref<1x64xf32, #tpu.memory_space<vmem>>, vector<1x64xf32>
    %c0_154 = arith.constant 0 : index
    %c0_155 = arith.constant 0 : index
    %323 = vector.load %arg42[%c0_154, %c0_155] : memref<64x32xf32, #tpu.memory_space<vmem>>, vector<64x32xf32>
    %c0_156 = arith.constant 0 : index
    %c0_157 = arith.constant 0 : index
    %324 = vector.load %arg43[%c0_156, %c0_157] : memref<1x32xf32, #tpu.memory_space<vmem>>, vector<1x32xf32>
    %c0_158 = arith.constant 0 : index
    %c0_159 = arith.constant 0 : index
    %325 = vector.load %arg44[%c0_158, %c0_159] : memref<32x16xf32, #tpu.memory_space<vmem>>, vector<32x16xf32>
    %c0_160 = arith.constant 0 : index
    %c0_161 = arith.constant 0 : index
    %326 = vector.load %arg45[%c0_160, %c0_161] : memref<1x16xf32, #tpu.memory_space<vmem>>, vector<1x16xf32>
    %c0_162 = arith.constant 0 : index
    %c0_163 = arith.constant 0 : index
    %327 = vector.load %arg46[%c0_162, %c0_163] : memref<16x8xf32, #tpu.memory_space<vmem>>, vector<16x8xf32>
    %c0_164 = arith.constant 0 : index
    %c0_165 = arith.constant 0 : index
    %328 = vector.load %arg47[%c0_164, %c0_165] : memref<1x8xf32, #tpu.memory_space<vmem>>, vector<1x8xf32>
    %c0_166 = arith.constant 0 : index
    %c0_167 = arith.constant 0 : index
    %329 = vector.load %arg48[%c0_166, %c0_167] : memref<8x2xf32, #tpu.memory_space<vmem>>, vector<8x2xf32>
    %c0_168 = arith.constant 0 : index
    %c0_169 = arith.constant 0 : index
    %330 = vector.load %arg49[%c0_168, %c0_169] : memref<1x2xf32, #tpu.memory_space<vmem>>, vector<1x2xf32>
    %cst_170 = arith.constant dense<0.000000e+00> : vector<4x64xf32>
    %331 = tpu.matmul %317, %321, %cst_170 {dimension_numbers = #tpu.dot_dimension_numbers<[1], [0], [0], [1], [0, 0, 1, 1], [], []>} : vector<4x32xf32>, vector<32x64xf32>, vector<4x64xf32> -> vector<4x64xf32>
    %332 = vector.broadcast %322 : vector<1x64xf32> to vector<4x64xf32>
    %333 = arith.addf %331, %332 : vector<4x64xf32>
    %cst_171 = arith.constant 0.000000e+00 : f32
    %334 = vector.broadcast %cst_171 : f32 to vector<4x64xf32>
    %335 = arith.maximumf %333, %334 : vector<4x64xf32>
    %cst_172 = arith.constant dense<0.000000e+00> : vector<4x32xf32>
    %336 = tpu.matmul %335, %323, %cst_172 {dimension_numbers = #tpu.dot_dimension_numbers<[1], [0], [0], [1], [0, 0, 1, 1], [], []>} : vector<4x64xf32>, vector<64x32xf32>, vector<4x32xf32> -> vector<4x32xf32>
    %337 = vector.broadcast %324 : vector<1x32xf32> to vector<4x32xf32>
    %338 = arith.addf %336, %337 : vector<4x32xf32>
    %cst_173 = arith.constant 0.000000e+00 : f32
    %339 = vector.broadcast %cst_173 : f32 to vector<4x32xf32>
    %340 = arith.maximumf %338, %339 : vector<4x32xf32>
    %cst_174 = arith.constant dense<0.000000e+00> : vector<4x16xf32>
    %341 = tpu.matmul %340, %325, %cst_174 {dimension_numbers = #tpu.dot_dimension_numbers<[1], [0], [0], [1], [0, 0, 1, 1], [], []>} : vector<4x32xf32>, vector<32x16xf32>, vector<4x16xf32> -> vector<4x16xf32>
    %342 = vector.broadcast %326 : vector<1x16xf32> to vector<4x16xf32>
    %343 = arith.addf %341, %342 : vector<4x16xf32>
    %cst_175 = arith.constant 0.000000e+00 : f32
    %344 = vector.broadcast %cst_175 : f32 to vector<4x16xf32>
    %345 = arith.maximumf %343, %344 : vector<4x16xf32>
    %cst_176 = arith.constant dense<0.000000e+00> : vector<4x8xf32>
    %346 = tpu.matmul %345, %327, %cst_176 {dimension_numbers = #tpu.dot_dimension_numbers<[1], [0], [0], [1], [0, 0, 1, 1], [], []>} : vector<4x16xf32>, vector<16x8xf32>, vector<4x8xf32> -> vector<4x8xf32>
    %347 = vector.broadcast %328 : vector<1x8xf32> to vector<4x8xf32>
    %348 = arith.addf %346, %347 : vector<4x8xf32>
    %cst_177 = arith.constant 0.000000e+00 : f32
    %349 = vector.broadcast %cst_177 : f32 to vector<4x8xf32>
    %350 = arith.maximumf %348, %349 : vector<4x8xf32>
    %cst_178 = arith.constant dense<0.000000e+00> : vector<4x2xf32>
    %351 = tpu.matmul %350, %329, %cst_178 {dimension_numbers = #tpu.dot_dimension_numbers<[1], [0], [0], [1], [0, 0, 1, 1], [], []>} : vector<4x8xf32>, vector<8x2xf32>, vector<4x2xf32> -> vector<4x2xf32>
    %352 = vector.broadcast %330 : vector<1x2xf32> to vector<4x2xf32>
    %353 = arith.addf %351, %352 : vector<4x2xf32>
    %354 = tpu.concatenate %353, %320 in 1 : vector<4x2xf32>, vector<4x8xf32> -> vector<4x10xf32>
    %c0_179 = arith.constant 0 : index
    %c0_180 = arith.constant 0 : index
    %c0_181 = arith.constant 0 : index
    %355 = vector.load %arg50[%c0_179, %c0_180, %c0_181] : memref<1x4x10xf32, #tpu.memory_space<vmem>>, vector<1x4x10xf32>
    %356 = vector.shape_cast %355 : vector<1x4x10xf32> to vector<4x10xf32>
    %357 = vector.shape_cast %354 : vector<4x10xf32> to vector<1x4x10xf32>
    tpu.vector_store %arg50[%c0_179, %c0_180, %c0_181], %357 {strides = array<i32>} : memref<1x4x10xf32, #tpu.memory_space<vmem>>, vector<1x4x10xf32>,
    return
  }
  func.func @transform_0(%arg0: i32) -> (i32, i32, i32) {
    %c0_i32 = arith.constant 0 : i32
    %c0_i32_0 = arith.constant 0 : i32
    %c0_i32_1 = arith.constant 0 : i32
    return %arg0, %c0_i32, %c0_i32_0 : i32, i32, i32
  }
  func.func @transform_1(%arg0: i32) -> (i32, i32, i32) {
    %c0_i32 = arith.constant 0 : i32
    %c0_i32_0 = arith.constant 0 : i32
    %c0_i32_1 = arith.constant 0 : i32
    return %arg0, %c0_i32, %c0_i32_0 : i32, i32, i32
  }
  func.func @transform_2(%arg0: i32) -> (i32, i32, i32) {
    %c0_i32 = arith.constant 0 : i32
    %c0_i32_0 = arith.constant 0 : i32
    %c0_i32_1 = arith.constant 0 : i32
    return %arg0, %c0_i32, %c0_i32_0 : i32, i32, i32
  }
  func.func @transform_3(%arg0: i32) -> (i32, i32) {
    %c0_i32 = arith.constant 0 : i32
    %c0_i32_0 = arith.constant 0 : i32
    %c0_i32_1 = arith.constant 0 : i32
    return %c0_i32, %c0_i32_0 : i32, i32
  }
  func.func @transform_4(%arg0: i32) -> (i32, i32) {
    %c0_i32 = arith.constant 0 : i32
    %c0_i32_0 = arith.constant 0 : i32
    %c0_i32_1 = arith.constant 0 : i32
    return %c0_i32, %c0_i32_0 : i32, i32
  }
  func.func @transform_5(%arg0: i32) -> (i32, i32) {
    %c0_i32 = arith.constant 0 : i32
    %c0_i32_0 = arith.constant 0 : i32
    %c0_i32_1 = arith.constant 0 : i32
    return %c0_i32, %c0_i32_0 : i32, i32
  }
  func.func @transform_6(%arg0: i32) -> (i32, i32) {
    %c0_i32 = arith.constant 0 : i32
    %c0_i32_0 = arith.constant 0 : i32
    %c0_i32_1 = arith.constant 0 : i32
    return %c0_i32, %c0_i32_0 : i32, i32
  }
  func.func @transform_7(%arg0: i32) -> (i32, i32, i32) {
    %c0_i32 = arith.constant 0 : i32
    %c0_i32_0 = arith.constant 0 : i32
    %c0_i32_1 = arith.constant 0 : i32
    %c0_i32_2 = arith.constant 0 : i32
    return %c0_i32, %c0_i32_0, %c0_i32_1 : i32, i32, i32
  }
  func.func @transform_8(%arg0: i32) -> (i32, i32) {
    %c0_i32 = arith.constant 0 : i32
    %c0_i32_0 = arith.constant 0 : i32
    %c0_i32_1 = arith.constant 0 : i32
    return %c0_i32, %c0_i32_0 : i32, i32
  }
  func.func @transform_9(%arg0: i32) -> (i32, i32) {
    %c0_i32 = arith.constant 0 : i32
    %c0_i32_0 = arith.constant 0 : i32
    %c0_i32_1 = arith.constant 0 : i32
    return %c0_i32, %c0_i32_0 : i32, i32
  }
  func.func @transform_10(%arg0: i32) -> (i32, i32) {
    %c0_i32 = arith.constant 0 : i32
    %c0_i32_0 = arith.constant 0 : i32
    %c0_i32_1 = arith.constant 0 : i32
    return %c0_i32, %c0_i32_0 : i32, i32
  }
  func.func @transform_11(%arg0: i32) -> (i32, i32) {
    %c0_i32 = arith.constant 0 : i32
    %c0_i32_0 = arith.constant 0 : i32
    %c0_i32_1 = arith.constant 0 : i32
    return %c0_i32, %c0_i32_0 : i32, i32
  }
  func.func @transform_12(%arg0: i32) -> (i32, i32) {
    %c0_i32 = arith.constant 0 : i32
    %c0_i32_0 = arith.constant 0 : i32
    %c0_i32_1 = arith.constant 0 : i32
    return %c0_i32, %c0_i32_0 : i32, i32
  }
  func.func @transform_13(%arg0: i32) -> (i32, i32) {
    %c0_i32 = arith.constant 0 : i32
    %c0_i32_0 = arith.constant 0 : i32
    %c0_i32_1 = arith.constant 0 : i32
    return %c0_i32, %c0_i32_0 : i32, i32
  }
  func.func @transform_14(%arg0: i32) -> (i32, i32) {
    %c0_i32 = arith.constant 0 : i32
    %c0_i32_0 = arith.constant 0 : i32
    %c0_i32_1 = arith.constant 0 : i32
    return %c0_i32, %c0_i32_0 : i32, i32
  }
  func.func @transform_15(%arg0: i32) -> (i32, i32) {
    %c0_i32 = arith.constant 0 : i32
    %c0_i32_0 = arith.constant 0 : i32
    %c0_i32_1 = arith.constant 0 : i32
    return %c0_i32, %c0_i32_0 : i32, i32
  }
  func.func @transform_16(%arg0: i32) -> (i32, i32) {
    %c0_i32 = arith.constant 0 : i32
    %c0_i32_0 = arith.constant 0 : i32
    %c0_i32_1 = arith.constant 0 : i32
    return %c0_i32, %c0_i32_0 : i32, i32
  }
  func.func @transform_17(%arg0: i32) -> (i32, i32) {
    %c0_i32 = arith.constant 0 : i32
    %c0_i32_0 = arith.constant 0 : i32
    %c0_i32_1 = arith.constant 0 : i32
    return %c0_i32, %c0_i32_0 : i32, i32
  }
  func.func @transform_18(%arg0: i32) -> (i32, i32) {
    %c0_i32 = arith.constant 0 : i32
    %c0_i32_0 = arith.constant 0 : i32
    %c0_i32_1 = arith.constant 0 : i32
    return %c0_i32, %c0_i32_0 : i32, i32
  }
  func.func @transform_19(%arg0: i32) -> (i32, i32, i32) {
    %c0_i32 = arith.constant 0 : i32
    %c0_i32_0 = arith.constant 0 : i32
    %c0_i32_1 = arith.constant 0 : i32
    %c0_i32_2 = arith.constant 0 : i32
    return %c0_i32, %c0_i32_0, %c0_i32_1 : i32, i32, i32
  }
  func.func @transform_20(%arg0: i32) -> (i32, i32) {
    %c0_i32 = arith.constant 0 : i32
    %c0_i32_0 = arith.constant 0 : i32
    %c0_i32_1 = arith.constant 0 : i32
    return %c0_i32, %c0_i32_0 : i32, i32
  }
  func.func @transform_21(%arg0: i32) -> (i32, i32) {
    %c0_i32 = arith.constant 0 : i32
    %c0_i32_0 = arith.constant 0 : i32
    %c0_i32_1 = arith.constant 0 : i32
    return %c0_i32, %c0_i32_0 : i32, i32
  }
  func.func @transform_22(%arg0: i32) -> (i32, i32) {
    %c0_i32 = arith.constant 0 : i32
    %c0_i32_0 = arith.constant 0 : i32
    %c0_i32_1 = arith.constant 0 : i32
    return %c0_i32, %c0_i32_0 : i32, i32
  }
  func.func @transform_23(%arg0: i32) -> (i32, i32) {
    %c0_i32 = arith.constant 0 : i32
    %c0_i32_0 = arith.constant 0 : i32
    %c0_i32_1 = arith.constant 0 : i32
    return %c0_i32, %c0_i32_0 : i32, i32
  }
  func.func @transform_24(%arg0: i32) -> (i32, i32) {
    %c0_i32 = arith.constant 0 : i32
    %c0_i32_0 = arith.constant 0 : i32
    %c0_i32_1 = arith.constant 0 : i32
    return %c0_i32, %c0_i32_0 : i32, i32
  }
  func.func @transform_25(%arg0: i32) -> (i32, i32) {
    %c0_i32 = arith.constant 0 : i32
    %c0_i32_0 = arith.constant 0 : i32
    %c0_i32_1 = arith.constant 0 : i32
    return %c0_i32, %c0_i32_0 : i32, i32
  }
  func.func @transform_26(%arg0: i32) -> (i32, i32) {
    %c0_i32 = arith.constant 0 : i32
    %c0_i32_0 = arith.constant 0 : i32
    %c0_i32_1 = arith.constant 0 : i32
    return %c0_i32, %c0_i32_0 : i32, i32
  }
  func.func @transform_27(%arg0: i32) -> (i32, i32) {
    %c0_i32 = arith.constant 0 : i32
    %c0_i32_0 = arith.constant 0 : i32
    %c0_i32_1 = arith.constant 0 : i32
    return %c0_i32, %c0_i32_0 : i32, i32
  }
  func.func @transform_28(%arg0: i32) -> (i32, i32) {
    %c0_i32 = arith.constant 0 : i32
    %c0_i32_0 = arith.constant 0 : i32
    %c0_i32_1 = arith.constant 0 : i32
    return %c0_i32, %c0_i32_0 : i32, i32
  }
  func.func @transform_29(%arg0: i32) -> (i32, i32) {
    %c0_i32 = arith.constant 0 : i32
    %c0_i32_0 = arith.constant 0 : i32
    %c0_i32_1 = arith.constant 0 : i32
    return %c0_i32, %c0_i32_0 : i32, i32
  }
  func.func @transform_30(%arg0: i32) -> (i32, i32) {
    %c0_i32 = arith.constant 0 : i32
    %c0_i32_0 = arith.constant 0 : i32
    %c0_i32_1 = arith.constant 0 : i32
    return %c0_i32, %c0_i32_0 : i32, i32
  }
  func.func @transform_31(%arg0: i32) -> (i32, i32, i32) {
    %c0_i32 = arith.constant 0 : i32
    %c0_i32_0 = arith.constant 0 : i32
    %c0_i32_1 = arith.constant 0 : i32
    %c0_i32_2 = arith.constant 0 : i32
    return %c0_i32, %c0_i32_0, %c0_i32_1 : i32, i32, i32
  }
  func.func @transform_32(%arg0: i32) -> (i32, i32) {
    %c0_i32 = arith.constant 0 : i32
    %c0_i32_0 = arith.constant 0 : i32
    %c0_i32_1 = arith.constant 0 : i32
    return %c0_i32, %c0_i32_0 : i32, i32
  }
  func.func @transform_33(%arg0: i32) -> (i32, i32) {
    %c0_i32 = arith.constant 0 : i32
    %c0_i32_0 = arith.constant 0 : i32
    %c0_i32_1 = arith.constant 0 : i32
    return %c0_i32, %c0_i32_0 : i32, i32
  }
  func.func @transform_34(%arg0: i32) -> (i32, i32) {
    %c0_i32 = arith.constant 0 : i32
    %c0_i32_0 = arith.constant 0 : i32
    %c0_i32_1 = arith.constant 0 : i32
    return %c0_i32, %c0_i32_0 : i32, i32
  }
  func.func @transform_35(%arg0: i32) -> (i32, i32) {
    %c0_i32 = arith.constant 0 : i32
    %c0_i32_0 = arith.constant 0 : i32
    %c0_i32_1 = arith.constant 0 : i32
    return %c0_i32, %c0_i32_0 : i32, i32
  }
  func.func @transform_36(%arg0: i32) -> (i32, i32) {
    %c0_i32 = arith.constant 0 : i32
    %c0_i32_0 = arith.constant 0 : i32
    %c0_i32_1 = arith.constant 0 : i32
    return %c0_i32, %c0_i32_0 : i32, i32
  }
  func.func @transform_37(%arg0: i32) -> (i32, i32) {
    %c0_i32 = arith.constant 0 : i32
    %c0_i32_0 = arith.constant 0 : i32
    %c0_i32_1 = arith.constant 0 : i32
    return %c0_i32, %c0_i32_0 : i32, i32
  }
  func.func @transform_38(%arg0: i32) -> (i32, i32) {
    %c0_i32 = arith.constant 0 : i32
    %c0_i32_0 = arith.constant 0 : i32
    %c0_i32_1 = arith.constant 0 : i32
    return %c0_i32, %c0_i32_0 : i32, i32
  }
  func.func @transform_39(%arg0: i32) -> (i32, i32) {
    %c0_i32 = arith.constant 0 : i32
    %c0_i32_0 = arith.constant 0 : i32
    %c0_i32_1 = arith.constant 0 : i32
    return %c0_i32, %c0_i32_0 : i32, i32
  }
  func.func @transform_40(%arg0: i32) -> (i32, i32) {
    %c0_i32 = arith.constant 0 : i32
    %c0_i32_0 = arith.constant 0 : i32
    %c0_i32_1 = arith.constant 0 : i32
    return %c0_i32, %c0_i32_0 : i32, i32
  }
  func.func @transform_41(%arg0: i32) -> (i32, i32) {
    %c0_i32 = arith.constant 0 : i32
    %c0_i32_0 = arith.constant 0 : i32
    %c0_i32_1 = arith.constant 0 : i32
    return %c0_i32, %c0_i32_0 : i32, i32
  }
  func.func @transform_42(%arg0: i32) -> (i32, i32) {
    %c0_i32 = arith.constant 0 : i32
    %c0_i32_0 = arith.constant 0 : i32
    %c0_i32_1 = arith.constant 0 : i32
    return %c0_i32, %c0_i32_0 : i32, i32
  }
  func.func @transform_43(%arg0: i32) -> (i32, i32) {
    %c0_i32 = arith.constant 0 : i32
    %c0_i32_0 = arith.constant 0 : i32
    %c0_i32_1 = arith.constant 0 : i32
    return %c0_i32, %c0_i32_0 : i32, i32
  }
  func.func @transform_44(%arg0: i32) -> (i32, i32) {
    %c0_i32 = arith.constant 0 : i32
    %c0_i32_0 = arith.constant 0 : i32
    %c0_i32_1 = arith.constant 0 : i32
    return %c0_i32, %c0_i32_0 : i32, i32
  }
  func.func @transform_45(%arg0: i32) -> (i32, i32) {
    %c0_i32 = arith.constant 0 : i32
    %c0_i32_0 = arith.constant 0 : i32
    %c0_i32_1 = arith.constant 0 : i32
    return %c0_i32, %c0_i32_0 : i32, i32
  }
  func.func @transform_46(%arg0: i32) -> (i32, i32) {
    %c0_i32 = arith.constant 0 : i32
    %c0_i32_0 = arith.constant 0 : i32
    %c0_i32_1 = arith.constant 0 : i32
    return %c0_i32, %c0_i32_0 : i32, i32
  }
  func.func @transform_47(%arg0: i32) -> (i32, i32) {
    %c0_i32 = arith.constant 0 : i32
    %c0_i32_0 = arith.constant 0 : i32
    %c0_i32_1 = arith.constant 0 : i32
    return %c0_i32, %c0_i32_0 : i32, i32
  }
  func.func @transform_48(%arg0: i32) -> (i32, i32) {
    %c0_i32 = arith.constant 0 : i32
    %c0_i32_0 = arith.constant 0 : i32
    %c0_i32_1 = arith.constant 0 : i32
    return %c0_i32, %c0_i32_0 : i32, i32
  }
  func.func @transform_49(%arg0: i32) -> (i32, i32, i32) {
    %c0_i32 = arith.constant 0 : i32
    %c0_i32_0 = arith.constant 0 : i32
    %c0_i32_1 = arith.constant 0 : i32
    return %arg0, %c0_i32, %c0_i32_0 : i32, i32, i32
  }
}

</mosaic_0001>

<bundles_post_ra>
// kernel: decoder_forward.1
= control target key start
LH: loop header
LB: loop body
LE: loop exit
PB: predicated region body
PF: predicated region fallthrough
CT: control target
= control target key end

     0   :  { %s7188_s6 = smov 1   ;;  %s7189_s10 = smov 2   ;;  %s8859_s0 = inlined_call_operand.smem [shape: u32[50], index: -1, kind: input, shape index: {}] }
   0x1   :  { %s7290_s5 = sld [smem:[%s8859_s0]]   ;;  %s7190_s14 = smov 3  }
   0x2   :  { %s7295_s9 = sld [smem:[%s8859_s0 + %s7188_s6]]   ;;  %s7191_s18 = smov 4  }
   0x3   :  { %s7300_s13 = sld [smem:[%s8859_s0 + %s7189_s10]]   ;;  %s7192_s22 = smov 5  }
   0x4   :  { %s7305_s17 = sld [smem:[%s8859_s0 + %s7190_s14]]   ;;  %s7193_s26 = smov 6  }
   0x5   :  { %s7310_s21 = sld [smem:[%s8859_s0 + %s7191_s18]]   ;;  %s7194_s30 = smov 7  }
   0x6   :  { %s7315_s25 = sld [smem:[%s8859_s0 + %s7192_s22]]   ;;  %s7195_s4 = smov 8  }
   0x7   :  { %8908 = sst [smem:[#allocation64_spill]] %s7290_s5  ;;  %s7196_s10 = smov 9  }
   0x8   :  { %8909 = sst [smem:[#allocation65_spill]] %s7295_s9  ;;  %s7197_s15 = smov 10  }
   0x9   :  { %8910 = sst [smem:[#allocation66_spill]] %s7300_s13  ;;  %s7198_s20 = smov 11  }
   0xa   :  { %8911 = sst [smem:[#allocation67_spill]] %s7305_s17  ;;  %s7200_s1 = smov 13  }
   0xb   :  { %8912 = sst [smem:[#allocation68_spill]] %s7310_s21  ;;  %s7201_s7 = smov 14  }
   0xc   :  { %8913 = sst [smem:[#allocation69_spill]] %s7315_s25  ;;  %s7203_s22 = smov 16  }
   0xd   :  { %s7320_s29 = sld [smem:[%s8859_s0 + %s7193_s26]]   ;;  %s7199_s26 = smov 12  }
   0xe   :  { %s7325_s3 = sld [smem:[%s8859_s0 + %s7194_s30]]   ;;  %s7204_s28 = smov 17  }
   0xf   :  { %s7330_s8 = sld [smem:[%s8859_s0 + %s7195_s4]]  }
  0x10   :  { %s7335_s14 = sld [smem:[%s8859_s0 + %s7196_s10]]  }
  0x11   :  { %s7340_s19 = sld [smem:[%s8859_s0 + %s7197_s15]]   ;;  %s7202_s15 = smov 15  }
  0x12   :  { %s7345_s24 = sld [smem:[%s8859_s0 + %s7198_s20]]  }
  0x13   :  { %8914 = sst [smem:[#allocation70_spill]] %s7320_s29 }
  0x14   :  { %8915 = sst [smem:[#allocation71_spill]] %s7325_s3 }
  0x15   :  { %8916 = sst [smem:[#allocation72_spill]] %s7330_s8 }
  0x16   :  { %8917 = sst [smem:[#allocation73_spill]] %s7335_s14 }
  0x17   :  { %8918 = sst [smem:[#allocation74_spill]] %s7340_s19 }
  0x18   :  { %8919 = sst [smem:[#allocation75_spill]] %s7345_s24 }
  0x19   :  { %s7350_s30 = sld [smem:[%s8859_s0 + %s7199_s26]]  }
  0x1a   :  { %s7355_s6 = sld [smem:[%s8859_s0 + %s7200_s1]]  }
  0x1b   :  { %s7360_s12 = sld [smem:[%s8859_s0 + %s7201_s7]]   ;;  %s7205_s7 = smov 18  }
  0x1c   :  { %s7365_s20 = sld [smem:[%s8859_s0 + %s7202_s15]]   ;;  %s7206_s15 = smov 19  }
  0x1d   :  { %s7370_s27 = sld [smem:[%s8859_s0 + %s7203_s22]]   ;;  %s7207_s22 = smov 20  }
  0x1e   :  { %s7375_s4 = sld [smem:[%s8859_s0 + %s7204_s28]]   ;;  %s7208_s28 = smov 21  }
  0x1f   :  { %8920 = sst [smem:[#allocation76_spill]] %s7350_s30 }
  0x20   :  { %8921 = sst [smem:[#allocation77_spill]] %s7355_s6 }
  0x21   :  { %8922 = sst [smem:[#allocation78_spill]] %s7360_s12 }
  0x22   :  { %8923 = sst [smem:[#allocation79_spill]] %s7365_s20 }
  0x23   :  { %8924 = sst [smem:[#allocation80_spill]] %s7370_s27 }
  0x24   :  { %8925 = sst [smem:[#allocation81_spill]] %s7375_s4 }
  0x25   :  { %s7380_s12 = sld [smem:[%s8859_s0 + %s7205_s7]]   ;;  %s7209_s7 = smov 22  }
  0x26   :  { %s7385_s20 = sld [smem:[%s8859_s0 + %s7206_s15]]   ;;  %s7210_s15 = smov 23  }
  0x27   :  { %s7390_s14 = sld [smem:[%s8859_s0 + %s7207_s22]]   ;;  %s7211_s22 = smov 24  }
  0x28   :  { %s7395_s4 = sld [smem:[%s8859_s0 + %s7208_s28]]   ;;  %s7212_s28 = smov 25  }
  0x29   :  { %s7400_s30 = sld [smem:[%s8859_s0 + %s7209_s7]]   ;;  %s7213_s7 = smov 26  }
  0x2a   :  { %s7405_s19 = sld [smem:[%s8859_s0 + %s7210_s15]]   ;;  %s7214_s15 = smov 27  }
  0x2b   :  { %8926 = sst [smem:[#allocation82_spill]] %s7380_s12 }
  0x2c   :  { %8927 = sst [smem:[#allocation83_spill]] %s7385_s20 }
  0x2d   :  { %8928 = sst [smem:[#allocation84_spill]] %s7390_s14 }
  0x2e   :  { %8929 = sst [smem:[#allocation85_spill]] %s7395_s4 }
  0x2f   :  { %s7410_s3 = sld [smem:[%s8859_s0 + %s7211_s22]]   ;;  %s7215_s22 = smov 28  }
  0x30   :  { %8930 = sst [smem:[#allocation86_spill]] %s7405_s19 }
  0x31   :  { %s7415_s21 = sld [smem:[%s8859_s0 + %s7212_s28]]   ;;  %s7216_s28 = smov 29  }
  0x32   :  { %s7420_s5 = sld [smem:[%s8859_s0 + %s7213_s7]]   ;;  %s7217_s7 = smov 30  }
  0x33   :  { %s7425_s17 = sld [smem:[%s8859_s0 + %s7214_s15]]   ;;  %s7218_s15 = smov 31  }
  0x34   :  { %s7430_s13 = sld [smem:[%s8859_s0 + %s7215_s22]]   ;;  %s7219_s22 = smov 32  }
  0x35   :  { %8931 = sst [smem:[#allocation87_spill]] %s7410_s3 }
  0x36   :  { %s7435_s9 = sld [smem:[%s8859_s0 + %s7216_s28]]   ;;  %s7220_s28 = smov 33  }
  0x37   :  { %8932 = sst [smem:[#allocation88_spill]] %s7415_s21 }
  0x38   :  { %8933 = sst [smem:[#allocation89_spill]] %s7420_s5 }
  0x39   :  { %8934 = sst [smem:[#allocation90_spill]] %s7425_s17 }
  0x3a   :  { %8935 = sst [smem:[#allocation91_spill]] %s7430_s13 }
  0x3b   :  { %s7440_s25 = sld [smem:[%s8859_s0 + %s7217_s7]]   ;;  %s7221_s7 = smov 34  }
  0x3c   :  { %8936 = sst [smem:[#allocation92_spill]] %s7435_s9 }
  0x3d   :  { %s7445_s17 = sld [smem:[%s8859_s0 + %s7218_s15]]   ;;  %s7222_s15 = smov 35  }
  0x3e   :  { %s7450_s13 = sld [smem:[%s8859_s0 + %s7219_s22]]   ;;  %s7223_s22 = smov 36  }
  0x3f   :  { %s7455_s21 = sld [smem:[%s8859_s0 + %s7220_s28]]   ;;  %s7224_s28 = smov 37  }
  0x40   :  { %s7465_s19 = sld [smem:[%s8859_s0 + %s7222_s15]]   ;;  %s7226_s15 = smov 39  }
  0x41   :  { %8937 = sst [smem:[#allocation93_spill]] %s7440_s25 }
  0x42   :  { %s7460_s25 = sld [smem:[%s8859_s0 + %s7221_s7]]   ;;  %s7225_s7 = smov 38  }
  0x43   :  { %s7475_s4 = sld [smem:[%s8859_s0 + %s7224_s28]]   ;;  %s7228_s28 = smov 41  }
  0x44   :  { %8938 = sst [smem:[#allocation94_spill]] %s7450_s13 }
  0x45   :  { %s7470_s13 = sld [smem:[%s8859_s0 + %s7223_s22]]   ;;  %s7227_s22 = smov 40  }
  0x46   :  { %8940 = sst [smem:[#allocation96_spill]] %s7465_s19 }
  0x47   :  { %s7485_s19 = sld [smem:[%s8859_s0 + %s7226_s15]]   ;;  %s7230_s15 = smov 43  }
  0x48   :  { %8939 = sst [smem:[#allocation95_spill]] %s7460_s25 }
  0x49   :  { %8942 = sst [smem:[#allocation98_spill]] %s7475_s4 }
  0x4a   :  { %s7480_s25 = sld [smem:[%s8859_s0 + %s7225_s7]]   ;;  %s7229_s7 = smov 42  }
  0x4b   :  { %8941 = sst [smem:[#allocation97_spill]] %s7470_s13 }
  0x4c   :  { %s7490_s20 = sld [smem:[%s8859_s0 + %s7227_s22]]   ;;  %s7231_s22 = smov 44  }
  0x4d   :  { %8943 = sst [smem:[#allocation99_spill]] %s7485_s19 }
  0x4e   :  { %s7495_s4 = sld [smem:[%s8859_s0 + %s7228_s28]]   ;;  %s7232_s28 = smov 45  }
  0x4f   :  { %s7500_s27 = sld [smem:[%s8859_s0 + %s7229_s7]]   ;;  %s7233_s7 = smov 46  }
  0x50   :  { %s7505_s19 = sld [smem:[%s8859_s0 + %s7230_s15]]   ;;  %s7234_s15 = smov 47  }
  0x51   :  { %s7510_s24 = sld [smem:[%s8859_s0 + %s7231_s22]]   ;;  %s7235_s22 = smov 48  }
  0x52   :  { %s7530_s29 = sld [smem:[%s8859_s0 + %s7235_s22]]  }
  0x54   :  { %8944 = sst [smem:[#allocation100_spill]] %s7495_s4 }
  0x55   :  { %8945 = sst [smem:[#allocation101_spill]] %s7500_s27 }
  0x56   :  { %8946 = sst [smem:[#allocation102_spill]] %s7505_s19 }
  0x57   :  { %s7515_s4 = sld [smem:[%s8859_s0 + %s7232_s28]]   ;;  %s7236_s28 = smov 49  }
  0x58   :  { %s7520_s27 = sld [smem:[%s8859_s0 + %s7233_s7]]  }
  0x59   :  { %s7525_s19 = sld [smem:[%s8859_s0 + %s7234_s15]]  }
  0x5d   :  { %8947 = sst [smem:[#allocation103_spill]] %s7515_s4 }
  0x5e   :  { %s7535_s4 = sld [smem:[%s8859_s0 + %s7236_s28]]  }
  0x5f   :  { %104 = vsyncpa [#allocation3], 0 }
  0x60   :  { %105 = vsyncpa [#allocation5], 0 }
  0x61   :  { %106 = vsyncpa [#allocation8], 0 }
  0x62   :  { %107 = vsyncpa [#allocation11], 0 }
  0x63   :  { %108 = vsyncpa [#allocation14], 0 }
  0x64   :  { %109 = vsyncpa [#allocation17], 0 }
  0x65   :  { %110 = vsyncpa [#allocation20], 0 }
  0x66   :  { %111 = vsyncpa [#allocation23], 0 }
  0x67   :  { %112 = vsyncpa [#allocation26], 0 }
  0x68   :  { %113 = vsyncpa [#allocation29], 0 }
  0x69   :  { %114 = vsyncpa [#allocation32], 0 }
  0x6a   :  { %115 = vsyncpa [#allocation35], 0 }
  0x6b   :  { %116 = vsyncpa [#allocation38], 0 }
  0x6c   :  { %117 = vsyncpa [#allocation41], 0 }
  0x6d   :  { %118 = vsyncpa [#allocation44], 0 }
  0x6e   :  { %119 = vsyncpa [#allocation47], 0  ;;  %s7537_s7 = smov 0  }
  0x6f LB: > { %s8948_s14 = sld [smem:[#allocation84_spill]]  ;;  %s7543_s0 = sadd.s32 4294967295, %s7186_s7   ;;  %s7186_s7 = sphi %s7537_s7, %s125_s7  }
  0x70   : > { %s8949_s13 = sld [smem:[#allocation97_spill]]  ;;  %p5714_p0 = scmp.ge.s32.totalorder %s7186_s7, 1 }
  0x71   : > { %s8950_s12 = sld [smem:[#allocation82_spill]]  ;;  %p1200_p1 = scmp.lt.s32.totalorder %s7186_s7, 3 }
  0x72   : > { %s8951_s9 = sld [smem:[#allocation92_spill]] }
  0x73   : > { %s8952_s8 = sld [smem:[#allocation72_spill]]  ;;  %p7547_p2 = pnand %p5714_p0, %p1200_p1 }
  0x74   : > { %s8953_s5 = sld [smem:[#allocation89_spill]]  ;;  %p5983_p3 = scmp.eq.s32.totalorder (!%p7547_p2), %s7543_s0, 0 }
  0x75   : > { %s8954_s3 = sld [smem:[#allocation87_spill]]  ;;  %1204 = sbr.rel (%p7547_p2) target bundleno = 512 (0x200), region = 12 }
  0x76   : > { %s8955_s6 = sld [smem:[#allocation77_spill]]  ;;  %s7237_s15 = smov (!%p7547_p2), [#allocation4]  }
  0x77   : > { %s1238_s16 = sshll.u32 (!%p7547_p2), %s7237_s15, 4  ;;  %s1239_s16 = int_to_ptr.vmem [resolvable:$true] %s1238_s16 }
  0x79   : > { %s1236_s11 = sshll.u32 (!%p7547_p2), %s8952_s8, 4  ;;  %s6282_s26 = scalar_lea.hbm (!%p7547_p2), %s8952_s8, 1  ;;  %s1237_s11 = int_to_ptr.hbm [resolvable:$true] %s1236_s11 }
  0x7a   : > { %s6276_s22 = sshra.s32 %s1237_s11, 4  ;;  %s6277_s22 = int_to_ptr.hbm [resolvable:$true] %s6276_s22 }
  0x7b   : > { %s6278_s23 = scalar_lea.hbm %s6277_s22, 1  ;;  %p6283_p7 = scmp.lt.s32.totalorder %s6277_s22, %s8952_s8 }
  0x7c   : > { %s1269_s18 = sshll.u32 %s8955_s6, 4  ;;  %p6279_p4 = scmp.ne.s32.totalorder %s6277_s22, %s6278_s23  ;;  %s7556_s18 = int_to_ptr.hbm [resolvable:$true] %s1269_s18 }
  0x7d   : > { %p6284_p8 = scmp.lt.s32.totalorder %s6282_s26, %s6278_s23 }
  0x7e   : > { %p6280_p5 = pnand %p6279_p4, %p5983_p3 }
  0x7f   : > { %p6285_p9 = por %p6284_p8, %p6283_p7 }
  0x80   : > { %p6281_p6 = pneg %p6280_p5 }
  0x82   : > { %p6286_p10 = pnand %p6285_p9, %p6281_p6 }
  0x84   : > { %6289 = shalt.err (!%p6286_p10)
}
  0x85   : > { %5866 = dma.hbm_to_vmem [thread:$0]  (%p5983_p3), %s1237_s11, 16, %s1239_s16, [#allocation5]  }
  0x86   : > { %s1302_s28 = sshll.u32 %s8950_s12, 4  ;;  %s7238_s1 = smov [#allocation7]   ;;  %s7565_s28 = int_to_ptr.hbm [resolvable:$true] %s1302_s28 }
  0x87   : > { %s1271_s2 = sshll.u32 %s7238_s1, 4  ;;  %s6304_s15 = sshra.s32 %s7556_s18, 4  ;;  %s1272_s2 = int_to_ptr.vmem [resolvable:$true] %s1271_s2  ;;  %s6305_s15 = int_to_ptr.hbm [resolvable:$true] %s6304_s15 }
  0x88   : > { %s6306_s22 = scalar_lea.hbm %s6305_s15, 1  ;;  %s6310_s23 = scalar_lea.hbm %s8955_s6, 1 }
  0x89   : > { %p6307_p11 = scmp.ne.s32.totalorder %s6305_s15, %s6306_s22  ;;  %p6311_p0 = scmp.lt.s32.totalorder %s6305_s15, %s8955_s6 }
  0x8a   : > { %p6312_p1 = scmp.lt.s32.totalorder %s6310_s23, %s6306_s22 }
  0x8b   : > { %p6308_p12 = pnand %p6307_p11, %p5983_p3 }
  0x8c   : > { %p6313_p4 = por %p6312_p1, %p6311_p0 }
  0x8d   : > { %p6309_p13 = pneg %p6308_p12 }
  0x8f   : > { %p6314_p5 = pnand %p6313_p4, %p6309_p13 }
  0x91   : > { %6317 = shalt.err (!%p6314_p5)
}
  0x92   : > { %5870 = dma.hbm_to_vmem [thread:$0]  (%p5983_p3), %s7556_s18, 16, %s1272_s2, [#allocation8]  }
  0x93   : > { %s7239_s11 = smov [#allocation10]   ;;  %s1328_s26 = sshll.u32 %s8948_s14, 4  ;;  %s7576_s26 = int_to_ptr.hbm [resolvable:$true] %s1328_s26 }
  0x94   : > { %s1304_s16 = sshll.u32 %s7239_s11, 4  ;;  %s6332_s1 = sshra.s32 %s7565_s28, 4  ;;  %s1305_s16 = int_to_ptr.vmem [resolvable:$true] %s1304_s16  ;;  %s6333_s1 = int_to_ptr.hbm [resolvable:$true] %s6332_s1 }
  0x95   : > { %s6334_s15 = scalar_lea.hbm %s6333_s1, 1  ;;  %s6338_s22 = scalar_lea.hbm %s8950_s12, 1 }
  0x96   : > { %p6335_p6 = scmp.ne.s32.totalorder %s6333_s1, %s6334_s15  ;;  %p6339_p9 = scmp.lt.s32.totalorder %s6333_s1, %s8950_s12 }
  0x97   : > { %p6340_p10 = scmp.lt.s32.totalorder %s6338_s22, %s6334_s15 }
  0x98   : > { %p6336_p7 = pnand %p6335_p6, %p5983_p3 }
  0x99   : > { %p6341_p11 = por %p6340_p10, %p6339_p9 }
  0x9a   : > { %p6337_p8 = pneg %p6336_p7 }
  0x9c   : > { %p6342_p12 = pnand %p6341_p11, %p6337_p8 }
  0x9e   : > { %6345 = shalt.err (!%p6342_p12)
}
  0x9f   : > { %5874 = dma.hbm_to_vmem [thread:$0]  (%p5983_p3), %s7565_s28, 16, %s1305_s16, [#allocation11]  }
  0xa0   : > { %s7240_s18 = smov [#allocation13]   ;;  %s1351_s23 = sshll.u32 %s7400_s30, 4  ;;  %s1352_s23 = int_to_ptr.hbm [resolvable:$true] %s1351_s23 }
  0xa1   : > { %s1330_s2 = sshll.u32 %s7240_s18, 4  ;;  %s6360_s11 = sshra.s32 %s7576_s26, 4  ;;  %s1331_s2 = int_to_ptr.vmem [resolvable:$true] %s1330_s2  ;;  %s6361_s11 = int_to_ptr.hbm [resolvable:$true] %s6360_s11 }
  0xa2   : > { %s6362_s1 = scalar_lea.hbm %s6361_s11, 1  ;;  %s6366_s15 = scalar_lea.hbm %s8948_s14, 1 }
  0xa3   : > { %p6363_p13 = scmp.ne.s32.totalorder %s6361_s11, %s6362_s1  ;;  %p6367_p4 = scmp.lt.s32.totalorder %s6361_s11, %s8948_s14 }
  0xa4   : > { %p6368_p5 = scmp.lt.s32.totalorder %s6366_s15, %s6362_s1 }
  0xa5   : > { %p6364_p0 = pnand %p6363_p13, %p5983_p3 }
  0xa6   : > { %p6369_p6 = por %p6368_p5, %p6367_p4 }
  0xa7   : > { %p6365_p1 = pneg %p6364_p0 }
  0xa9   : > { %p6370_p7 = pnand %p6369_p6, %p6365_p1 }
  0xab   : > { %6373 = shalt.err (!%p6370_p7)
}
  0xac   : > { %5878 = dma.hbm_to_vmem [thread:$0]  (%p5983_p3), %s7576_s26, 16, %s1331_s2, [#allocation14]  }
  0xad   : > { %s7241_s28 = smov [#allocation16]   ;;  %s1377_s22 = sshll.u32 %s8954_s3, 4  ;;  %s7596_s22 = int_to_ptr.hbm [resolvable:$true] %s1377_s22 }
  0xae   : > { %s1353_s16 = sshll.u32 %s7241_s28, 4  ;;  %s6388_s18 = sshra.s32 %s1352_s23, 4  ;;  %s1354_s16 = int_to_ptr.vmem [resolvable:$true] %s1353_s16  ;;  %s6389_s18 = int_to_ptr.hbm [resolvable:$true] %s6388_s18 }
  0xaf   : > { %s6390_s11 = scalar_lea.hbm %s6389_s18, 32  ;;  %s6394_s1 = scalar_lea.hbm %s7400_s30, 32 }
  0xb0   : > { %p6391_p8 = scmp.ne.s32.totalorder %s6389_s18, %s6390_s11  ;;  %p6395_p11 = scmp.lt.s32.totalorder %s6389_s18, %s7400_s30 }
  0xb1   : > { %p6396_p12 = scmp.lt.s32.totalorder %s6394_s1, %s6390_s11 }
  0xb2   : > { %p6392_p9 = pnand %p6391_p8, %p5983_p3 }
  0xb3   : > { %p6397_p13 = por %p6396_p12, %p6395_p11 }
  0xb4   : > { %p6393_p10 = pneg %p6392_p9 }
  0xb6   : > { %p6398_p0 = pnand %p6397_p13, %p6393_p10 }
  0xb8   : > { %6401 = shalt.err (!%p6398_p0)
}
  0xb9   : > { %s8887_s26 = smov 128   ;;  %s8889_s2 = smov 8  }
  0xba   : > { %5882 = dma.hbm_to_vmem [thread:$0]  (%p5983_p3), %s1352_s23, 512, %s1354_s16, [#allocation17], %s8887_s26, %s8887_s26, %s8889_s2  }
  0xbb   : > { %s1404_s15 = sshll.u32 %s8953_s5, 4  ;;  %s7244_s28 = smov [#allocation19]   ;;  %s7608_s15 = int_to_ptr.hbm [resolvable:$true] %s1404_s15 }
  0xbc   : > { %s1379_s18 = sshll.u32 %s7244_s28, 4  ;;  %s6416_s11 = sshra.s32 %s7596_s22, 4  ;;  %s1380_s18 = int_to_ptr.vmem [resolvable:$true] %s1379_s18  ;;  %s6417_s11 = int_to_ptr.hbm [resolvable:$true] %s6416_s11 }
  0xbd   : > { %s6418_s1 = scalar_lea.hbm %s6417_s11, 32  ;;  %s6422_s6 = scalar_lea.hbm %s8954_s3, 32 }
  0xbe   : > { %p6419_p1 = scmp.ne.s32.totalorder %s6417_s11, %s6418_s1  ;;  %p6423_p6 = scmp.lt.s32.totalorder %s6417_s11, %s8954_s3 }
  0xbf   : > { %p6424_p7 = scmp.lt.s32.totalorder %s6422_s6, %s6418_s1 }
  0xc0   : > { %p6420_p4 = pnand %p6419_p1, %p5983_p3 }
  0xc1   : > { %p6425_p8 = por %p6424_p7, %p6423_p6 }
  0xc2   : > { %p6421_p5 = pneg %p6420_p4 }
  0xc4   : > { %p6426_p9 = pnand %p6425_p8, %p6421_p5 }
  0xc6   : > { %6429 = shalt.err (!%p6426_p9)
}
  0xc7   : > { %5886 = dma.hbm_to_vmem [thread:$0]  (%p5983_p3), %s7596_s22, 512, %s1380_s18, [#allocation20], %s8887_s26, %s8887_s26, %s8889_s2  }
  0xc8   : > { %s7245_s23 = smov [#allocation22]   ;;  %s1430_s28 = sshll.u32 %s8951_s9, 4  ;;  %s7622_s28 = int_to_ptr.hbm [resolvable:$true] %s1430_s28 }
  0xc9   : > { %s1406_s16 = sshll.u32 %s7245_s23, 4  ;;  %s6444_s6 = sshra.s32 %s7608_s15, 4  ;;  %s1407_s16 = int_to_ptr.vmem [resolvable:$true] %s1406_s16  ;;  %s6445_s6 = int_to_ptr.hbm [resolvable:$true] %s6444_s6 }
  0xca   : > { %s6446_s11 = scalar_lea.hbm %s6445_s6, 2  ;;  %s6450_s1 = scalar_lea.hbm %s8953_s5, 2 }
  0xcb   : > { %p6447_p10 = scmp.ne.s32.totalorder %s6445_s6, %s6446_s11  ;;  %p6451_p13 = scmp.lt.s32.totalorder %s6445_s6, %s8953_s5 }
  0xcc   : > { %p6452_p0 = scmp.lt.s32.totalorder %s6450_s1, %s6446_s11 }
  0xcd   : > { %p6448_p11 = pnand %p6447_p10, %p5983_p3 }
  0xce   : > { %p6453_p1 = por %p6452_p0, %p6451_p13 }
  0xcf   : > { %p6449_p12 = pneg %p6448_p11 }
  0xd1   : > { %p6454_p4 = pnand %p6453_p1, %p6449_p12 }
  0xd3   : > { %6457 = shalt.err (!%p6454_p4)
}
  0xd4   : > { %5890 = dma.hbm_to_vmem [thread:$0]  (%p5983_p3), %s7608_s15, 32, %s1407_s16, [#allocation23]  }
  0xd5   : > { %s1456_s22 = sshll.u32 %s7445_s17, 4  ;;  %s7246_s18 = smov [#allocation25]   ;;  %s7633_s22 = int_to_ptr.hbm [resolvable:$true] %s1456_s22 }
  0xd6   : > { %s1432_s23 = sshll.u32 %s7246_s18, 4  ;;  %s6472_s6 = sshra.s32 %s7622_s28, 4  ;;  %s1433_s23 = int_to_ptr.vmem [resolvable:$true] %s1432_s23  ;;  %s6473_s6 = int_to_ptr.hbm [resolvable:$true] %s6472_s6 }
  0xd7   : > { %s6474_s11 = scalar_lea.hbm %s6473_s6, 32  ;;  %s6478_s1 = scalar_lea.hbm %s8951_s9, 32 }
  0xd8   : > { %p6475_p5 = scmp.ne.s32.totalorder %s6473_s6, %s6474_s11  ;;  %p6479_p8 = scmp.lt.s32.totalorder %s6473_s6, %s8951_s9 }
  0xd9   : > { %p6480_p9 = scmp.lt.s32.totalorder %s6478_s1, %s6474_s11 }
  0xda   : > { %p6476_p6 = pnand %p6475_p5, %p5983_p3 }
  0xdb   : > { %p6481_p10 = por %p6480_p9, %p6479_p8 }
  0xdc   : > { %p6477_p7 = pneg %p6476_p6 }
  0xde   : > { %p6482_p11 = pnand %p6481_p10, %p6477_p7 }
  0xe0   : > { %6485 = shalt.err (!%p6482_p11)
}
  0xe1   : > { %5894 = dma.hbm_to_vmem [thread:$0]  (%p5983_p3), %s7622_s28, 512, %s1433_s23, [#allocation26], %s8887_s26, %s8887_s26, %s8889_s2  }
  0xe2   : > { %s7247_s15 = smov [#allocation28]   ;;  %s1483_s18 = sshll.u32 %s7455_s21, 4  ;;  %s7647_s18 = int_to_ptr.hbm [resolvable:$true] %s1483_s18 }
  0xe3   : > { %s1458_s16 = sshll.u32 %s7247_s15, 4  ;;  %s6500_s6 = sshra.s32 %s7633_s22, 4  ;;  %s1459_s16 = int_to_ptr.vmem [resolvable:$true] %s1458_s16  ;;  %s6501_s6 = int_to_ptr.hbm [resolvable:$true] %s6500_s6 }
  0xe4   : > { %s6502_s11 = scalar_lea.hbm %s6501_s6, 32  ;;  %s6506_s1 = scalar_lea.hbm %s7445_s17, 32 }
  0xe5   : > { %p6503_p12 = scmp.ne.s32.totalorder %s6501_s6, %s6502_s11  ;;  %p6507_p1 = scmp.lt.s32.totalorder %s6501_s6, %s7445_s17 }
  0xe6   : > { %p6508_p4 = scmp.lt.s32.totalorder %s6506_s1, %s6502_s11 }
  0xe7   : > { %p6504_p13 = pnand %p6503_p12, %p5983_p3 }
  0xe8   : > { %p6509_p5 = por %p6508_p4, %p6507_p1 }
  0xe9   : > { %p6505_p0 = pneg %p6504_p13 }
  0xeb   : > { %p6510_p6 = pnand %p6509_p5, %p6505_p0 }
  0xed   : > { %6513 = shalt.err (!%p6510_p6)
}
  0xee   : > { %5898 = dma.hbm_to_vmem [thread:$0]  (%p5983_p3), %s7633_s22, 512, %s1459_s16, [#allocation29], %s8887_s26, %s8887_s26, %s8889_s2  }
  0xef   : > { %s1509_s28 = sshll.u32 %s8949_s13, 4  ;;  %s7248_s23 = smov [#allocation31]   ;;  %s7661_s28 = int_to_ptr.hbm [resolvable:$true] %s1509_s28 }
  0xf0   : > { %s1485_s15 = sshll.u32 %s7248_s23, 4  ;;  %s6528_s6 = sshra.s32 %s7647_s18, 4  ;;  %s1486_s15 = int_to_ptr.vmem [resolvable:$true] %s1485_s15  ;;  %s6529_s6 = int_to_ptr.hbm [resolvable:$true] %s6528_s6 }
  0xf1   : > { %s6530_s11 = scalar_lea.hbm %s6529_s6, 2  ;;  %s6534_s1 = scalar_lea.hbm %s7455_s21, 2 }
  0xf2   : > { %p6531_p7 = scmp.ne.s32.totalorder %s6529_s6, %s6530_s11  ;;  %p6535_p10 = scmp.lt.s32.totalorder %s6529_s6, %s7455_s21 }
  0xf3   : > { %p6536_p11 = scmp.lt.s32.totalorder %s6534_s1, %s6530_s11 }
  0xf4   : > { %p6532_p8 = pnand %p6531_p7, %p5983_p3 }
  0xf5   : > { %p6537_p12 = por %p6536_p11, %p6535_p10 }
  0xf6   : > { %p6533_p9 = pneg %p6532_p8 }
  0xf8   : > { %p6538_p13 = pnand %p6537_p12, %p6533_p9 }
  0xfa   : > { %6541 = shalt.err (!%p6538_p13)
}
  0xfb   : > { %5902 = dma.hbm_to_vmem [thread:$0]  (%p5983_p3), %s7647_s18, 32, %s1486_s15, [#allocation32]  }
  0xfc   : > { %s7249_s22 = smov [#allocation34]   ;;  %s1536_s23 = sshll.u32 %s7480_s25, 4  ;;  %s7672_s23 = int_to_ptr.hbm [resolvable:$true] %s1536_s23 }
  0xfd   : > { %s1511_s16 = sshll.u32 %s7249_s22, 4  ;;  %s6556_s6 = sshra.s32 %s7661_s28, 4  ;;  %s1512_s16 = int_to_ptr.vmem [resolvable:$true] %s1511_s16  ;;  %s6557_s6 = int_to_ptr.hbm [resolvable:$true] %s6556_s6 }
  0xfe   : > { %s6558_s11 = scalar_lea.hbm %s6557_s6, 16  ;;  %s6562_s1 = scalar_lea.hbm %s8949_s13, 16 }
  0xff   : > { %p6559_p0 = scmp.ne.s32.totalorder %s6557_s6, %s6558_s11  ;;  %p6563_p5 = scmp.lt.s32.totalorder %s6557_s6, %s8949_s13 }
 0x100   : > { %p6564_p6 = scmp.lt.s32.totalorder %s6562_s1, %s6558_s11 }
 0x101   : > { %p6560_p1 = pnand %p6559_p0, %p5983_p3 }
 0x102   : > { %p6565_p7 = por %p6564_p6, %p6563_p5 }
 0x103   : > { %p6561_p4 = pneg %p6560_p1 }
 0x105   : > { %p6566_p8 = pnand %p6565_p7, %p6561_p4 }
 0x107   : > { %6569 = shalt.err (!%p6566_p8)
}
 0x108   : > { %5906 = dma.hbm_to_vmem [thread:$0]  (%p5983_p3), %s7661_s28, 256, %s1512_s16, [#allocation35], %s8887_s26, %s8887_s26, %s8889_s2  }
 0x109   : > { %s1562_s18 = sshll.u32 %s7490_s20, 4  ;;  %s7250_s15 = smov [#allocation37]   ;;  %s7686_s18 = int_to_ptr.hbm [resolvable:$true] %s1562_s18 }
 0x10a   : > { %s1538_s22 = sshll.u32 %s7250_s15, 4  ;;  %s6584_s6 = sshra.s32 %s7672_s23, 4  ;;  %s1539_s22 = int_to_ptr.vmem [resolvable:$true] %s1538_s22  ;;  %s6585_s6 = int_to_ptr.hbm [resolvable:$true] %s6584_s6 }
 0x10b   : > { %s6586_s11 = scalar_lea.hbm %s6585_s6, 2  ;;  %s6590_s1 = scalar_lea.hbm %s7480_s25, 2 }
 0x10c   : > { %p6587_p9 = scmp.ne.s32.totalorder %s6585_s6, %s6586_s11  ;;  %p6591_p12 = scmp.lt.s32.totalorder %s6585_s6, %s7480_s25 }
 0x10d   : > { %p6592_p13 = scmp.lt.s32.totalorder %s6590_s1, %s6586_s11 }
 0x10e   : > { %p6588_p10 = pnand %p6587_p9, %p5983_p3 }
 0x10f   : > { %p6593_p0 = por %p6592_p13, %p6591_p12 }
 0x110   : > { %p6589_p11 = pneg %p6588_p10 }
 0x112   : > { %p6594_p1 = pnand %p6593_p0, %p6589_p11 }
 0x114   : > { %6597 = shalt.err (!%p6594_p1)
}
 0x115   : > { %5910 = dma.hbm_to_vmem [thread:$0]  (%p5983_p3), %s7672_s23, 32, %s1539_s22, [#allocation38]  }
 0x116   : > { %s7251_s28 = smov [#allocation40]   ;;  %s1592_s15 = sshll.u32 %s7510_s24, 4  ;;  %s7697_s15 = int_to_ptr.hbm [resolvable:$true] %s1592_s15 }
 0x117   : > { %s1564_s16 = sshll.u32 %s7251_s28, 4  ;;  %s6612_s6 = sshra.s32 %s7686_s18, 4  ;;  %s1565_s16 = int_to_ptr.vmem [resolvable:$true] %s1564_s16  ;;  %s6613_s6 = int_to_ptr.hbm [resolvable:$true] %s6612_s6 }
 0x118   : > { %s6614_s11 = scalar_lea.hbm %s6613_s6, 1  ;;  %s6618_s1 = scalar_lea.hbm %s7490_s20, 1 }
 0x119   : > { %p6615_p4 = scmp.ne.s32.totalorder %s6613_s6, %s6614_s11  ;;  %p6619_p7 = scmp.lt.s32.totalorder %s6613_s6, %s7490_s20 }
 0x11a   : > { %p6620_p8 = scmp.lt.s32.totalorder %s6618_s1, %s6614_s11 }
 0x11b   : > { %p6616_p5 = pnand %p6615_p4, %p5983_p3 }
 0x11c   : > { %p6621_p9 = por %p6620_p8, %p6619_p7 }
 0x11d   : > { %p6617_p6 = pneg %p6616_p5 }
 0x11f   : > { %p6622_p10 = pnand %p6621_p9, %p6617_p6 }
 0x121   : > { %6625 = shalt.err (!%p6622_p10)
}
 0x122   : > { %s8957_s23 = sld [smem:[#allocation70_spill]]  ;;  %s7252_s22 = smov [#allocation43]  }
 0x123   : > { %5914 = dma.hbm_to_vmem [thread:$0]  (%p5983_p3), %s7686_s18, 16, %s1565_s16, [#allocation41]  }
 0x124   : > { %s1594_s28 = sshll.u32 %s7252_s22, 4  ;;  %s6640_s6 = sshra.s32 %s7697_s15, 4  ;;  %s1595_s28 = int_to_ptr.vmem [resolvable:$true] %s1594_s28  ;;  %s6641_s6 = int_to_ptr.hbm [resolvable:$true] %s6640_s6 }
 0x125   : > { %s6642_s11 = scalar_lea.hbm %s6641_s6, 1  ;;  %s6646_s1 = scalar_lea.hbm %s7510_s24, 1 }
 0x126   : > { %p6643_p11 = scmp.ne.s32.totalorder %s6641_s6, %s6642_s11  ;;  %p6647_p0 = scmp.lt.s32.totalorder %s6641_s6, %s7510_s24 }
 0x127   : > { %p6648_p1 = scmp.lt.s32.totalorder %s6646_s1, %s6642_s11 }
 0x128   : > { %s1221_s26 = sshll.u32 %s8957_s23, 4  ;;  %p6644_p12 = pnand %p6643_p11, %p5983_p3  ;;  %s7708_s26 = int_to_ptr.hbm [resolvable:$true] %s1221_s26 }
 0x129   : > { %p6649_p4 = por %p6648_p1, %p6647_p0 }
 0x12a   : > { %p6645_p13 = pneg %p6644_p12 }
 0x12c   : > { %p6650_p5 = pnand %p6649_p4, %p6645_p13 }
 0x12e   : > { %6653 = shalt.err (!%p6650_p5)
}
 0x12f   : > { %s8958_s18 = sld [smem:[#allocation75_spill]]  ;;  %s7253_s22 = smov [#allocation2]  }
 0x130   : > { %5918 = dma.hbm_to_vmem [thread:$0]  (%p5983_p3), %s7697_s15, 16, %s1595_s28, [#allocation44]  }
 0x131   : > { %s1223_s2 = sshll.u32 %s7253_s22, 4  ;;  %s6668_s6 = sshra.s32 %s7708_s26, 4  ;;  %s1224_s2 = int_to_ptr.vmem [resolvable:$true] %s1223_s2  ;;  %s6669_s6 = int_to_ptr.hbm [resolvable:$true] %s6668_s6 }
 0x132   : > { %s6670_s11 = scalar_lea.hbm %s6669_s6, 1  ;;  %s6674_s1 = scalar_lea.hbm %s8957_s23, 1 }
 0x133   : > { %p6671_p6 = scmp.ne.s32.totalorder %s6669_s6, %s6670_s11  ;;  %p6675_p9 = scmp.lt.s32.totalorder %s6669_s6, %s8957_s23 }
 0x134   : > { %p6676_p10 = scmp.lt.s32.totalorder %s6674_s1, %s6670_s11 }
 0x135   : > { %s1254_s16 = sshll.u32 %s8958_s18, 4  ;;  %p6672_p7 = pnand %p6671_p6, %p5983_p3  ;;  %s7719_s16 = int_to_ptr.hbm [resolvable:$true] %s1254_s16 }
 0x136   : > { %p6677_p11 = por %p6676_p10, %p6675_p9 }
 0x137   : > { %p6673_p8 = pneg %p6672_p7 }
 0x139   : > { %p6678_p12 = pnand %p6677_p11, %p6673_p8 }
 0x13b   : > { %6681 = shalt.err (!%p6678_p12)
}
 0x13c   : > { %s8959_s15 = sld [smem:[#allocation80_spill]]  ;;  %s7254_s28 = smov [#allocation6]  }
 0x13d   : > { %5864 = dma.hbm_to_vmem [thread:$0]  (%p5983_p3), %s7708_s26, 16, %s1224_s2, [#allocation3]  }
 0x13e   : > { %s1256_s22 = sshll.u32 %s7254_s28, 4  ;;  %s6696_s6 = sshra.s32 %s7719_s16, 4  ;;  %s1257_s22 = int_to_ptr.vmem [resolvable:$true] %s1256_s22  ;;  %s6697_s6 = int_to_ptr.hbm [resolvable:$true] %s6696_s6 }
 0x13f   : > { %s6698_s11 = scalar_lea.hbm %s6697_s6, 1  ;;  %s6702_s1 = scalar_lea.hbm %s8958_s18, 1 }
 0x140   : > { %p6699_p13 = scmp.ne.s32.totalorder %s6697_s6, %s6698_s11  ;;  %p6703_p4 = scmp.lt.s32.totalorder %s6697_s6, %s8958_s18 }
 0x141   : > { %p6704_p5 = scmp.lt.s32.totalorder %s6702_s1, %s6698_s11 }
 0x142   : > { %s1287_s3 = sshll.u32 %s8959_s15, 4  ;;  %p6700_p0 = pnand %p6699_p13, %p5983_p3  ;;  %s7730_s3 = int_to_ptr.hbm [resolvable:$true] %s1287_s3 }
 0x143   : > { %p6705_p6 = por %p6704_p5, %p6703_p4 }
 0x144   : > { %p6701_p1 = pneg %p6700_p0 }
 0x146   : > { %p6706_p7 = pnand %p6705_p6, %p6701_p1 }
 0x148   : > { %6709 = shalt.err (!%p6706_p7)
}
 0x149   : > { %s8960_s26 = sld [smem:[#allocation83_spill]]  ;;  %s7255_s28 = smov [#allocation9]  }
 0x14a   : > { %5868 = dma.hbm_to_vmem [thread:$0]  (%p5983_p3), %s7719_s16, 16, %s1257_s22, [#allocation5]  }
 0x14b   : > { %s1289_s5 = sshll.u32 %s7255_s28, 4  ;;  %s6724_s6 = sshra.s32 %s7730_s3, 4  ;;  %s1290_s5 = int_to_ptr.vmem [resolvable:$true] %s1289_s5  ;;  %s6725_s6 = int_to_ptr.hbm [resolvable:$true] %s6724_s6 }
 0x14c   : > { %s6726_s11 = scalar_lea.hbm %s6725_s6, 1  ;;  %s6730_s1 = scalar_lea.hbm %s8959_s15, 1 }
 0x14d   : > { %p6727_p8 = scmp.ne.s32.totalorder %s6725_s6, %s6726_s11  ;;  %p6731_p11 = scmp.lt.s32.totalorder %s6725_s6, %s8959_s15 }
 0x14e   : > { %p6732_p12 = scmp.lt.s32.totalorder %s6730_s1, %s6726_s11 }
 0x14f   : > { %s1313_s2 = sshll.u32 %s8960_s26, 4  ;;  %p6728_p9 = pnand %p6727_p8, %p5983_p3  ;;  %s7741_s2 = int_to_ptr.hbm [resolvable:$true] %s1313_s2 }
 0x150   : > { %p6733_p13 = por %p6732_p12, %p6731_p11 }
 0x151   : > { %p6729_p10 = pneg %p6728_p9 }
 0x153   : > { %p6734_p0 = pnand %p6733_p13, %p6729_p10 }
 0x155   : > { %6737 = shalt.err (!%p6734_p0)
}
 0x156   : > { %s8961_s16 = sld [smem:[#allocation85_spill]]  ;;  %s7256_s22 = smov [#allocation12]  }
 0x157   : > { %5872 = dma.hbm_to_vmem [thread:$0]  (%p5983_p3), %s7730_s3, 16, %s1290_s5, [#allocation8]  }
 0x158   : > { %s1315_s28 = sshll.u32 %s7256_s22, 4  ;;  %s6752_s6 = sshra.s32 %s7741_s2, 4  ;;  %s1316_s28 = int_to_ptr.vmem [resolvable:$true] %s1315_s28  ;;  %s6753_s6 = int_to_ptr.hbm [resolvable:$true] %s6752_s6 }
 0x159   : > { %s6754_s11 = scalar_lea.hbm %s6753_s6, 32  ;;  %s6758_s1 = scalar_lea.hbm %s8960_s26, 32 }
 0x15a   : > { %p6755_p1 = scmp.ne.s32.totalorder %s6753_s6, %s6754_s11  ;;  %p6759_p6 = scmp.lt.s32.totalorder %s6753_s6, %s8960_s26 }
 0x15b   : > { %p6760_p7 = scmp.lt.s32.totalorder %s6758_s1, %s6754_s11 }
 0x15c   : > { %s1340_s8 = sshll.u32 %s8961_s16, 4  ;;  %p6756_p4 = pnand %p6755_p1, %p5983_p3  ;;  %s7752_s8 = int_to_ptr.hbm [resolvable:$true] %s1340_s8 }
 0x15d   : > { %p6761_p8 = por %p6760_p7, %p6759_p6 }
 0x15e   : > { %p6757_p5 = pneg %p6756_p4 }
 0x160   : > { %p6762_p9 = pnand %p6761_p8, %p6757_p5 }
 0x162   : > { %6765 = shalt.err (!%p6762_p9)
}
 0x163   : > { %s8962_s5 = smov 8   ;;  %s8963_s3 = smov 128  }
 0x164   : > { %s8964_s22 = sld [smem:[#allocation86_spill]]  ;;  %s7257_s12 = smov [#allocation15]  }
 0x165   : > { %5876 = dma.hbm_to_vmem [thread:$0]  (%p5983_p3), %s7741_s2, 512, %s1316_s28, [#allocation11], %s8963_s3, %s8963_s3, %s8962_s5  }
 0x166   : > { %s1342_s13 = sshll.u32 %s7257_s12, 4  ;;  %s6780_s6 = sshra.s32 %s7752_s8, 4  ;;  %s1343_s13 = int_to_ptr.vmem [resolvable:$true] %s1342_s13  ;;  %s6781_s6 = int_to_ptr.hbm [resolvable:$true] %s6780_s6 }
 0x167   : > { %s6782_s11 = scalar_lea.hbm %s6781_s6, 2  ;;  %s6786_s1 = scalar_lea.hbm %s8961_s16, 2 }
 0x168   : > { %p6783_p10 = scmp.ne.s32.totalorder %s6781_s6, %s6782_s11  ;;  %p6787_p13 = scmp.lt.s32.totalorder %s6781_s6, %s8961_s16 }
 0x169   : > { %p6788_p0 = scmp.lt.s32.totalorder %s6786_s1, %s6782_s11 }
 0x16a   : > { %s1366_s9 = sshll.u32 %s8964_s22, 4  ;;  %p6784_p11 = pnand %p6783_p10, %p5983_p3  ;;  %s7766_s9 = int_to_ptr.hbm [resolvable:$true] %s1366_s9 }
 0x16b   : > { %p6789_p1 = por %p6788_p0, %p6787_p13 }
 0x16c   : > { %p6785_p12 = pneg %p6784_p11 }
 0x16e   : > { %p6790_p4 = pnand %p6789_p1, %p6785_p12 }
 0x170   : > { %6793 = shalt.err (!%p6790_p4)
}
 0x171   : > { %s8965_s12 = sld [smem:[#allocation88_spill]]  ;;  %s7258_s2 = smov [#allocation18]  }
 0x172   : > { %5880 = dma.hbm_to_vmem [thread:$0]  (%p5983_p3), %s7752_s8, 32, %s1343_s13, [#allocation14]  }
 0x173   : > { %s1368_s28 = sshll.u32 %s7258_s2, 4  ;;  %s6808_s6 = sshra.s32 %s7766_s9, 4  ;;  %s1369_s28 = int_to_ptr.vmem [resolvable:$true] %s1368_s28  ;;  %s6809_s6 = int_to_ptr.hbm [resolvable:$true] %s6808_s6 }
 0x174   : > { %s6810_s11 = scalar_lea.hbm %s6809_s6, 1  ;;  %s6814_s1 = scalar_lea.hbm %s8964_s22, 1 }
 0x175   : > { %p6811_p5 = scmp.ne.s32.totalorder %s6809_s6, %s6810_s11  ;;  %p6815_p8 = scmp.lt.s32.totalorder %s6809_s6, %s8964_s22 }
 0x176   : > { %p6816_p9 = scmp.lt.s32.totalorder %s6814_s1, %s6810_s11 }
 0x177   : > { %s1392_s14 = sshll.u32 %s8965_s12, 4  ;;  %p6812_p6 = pnand %p6811_p5, %p5983_p3  ;;  %s7777_s14 = int_to_ptr.hbm [resolvable:$true] %s1392_s14 }
 0x178   : > { %p6817_p10 = por %p6816_p9, %p6815_p8 }
 0x179   : > { %p6813_p7 = pneg %p6812_p6 }
 0x17b   : > { %p6818_p11 = pnand %p6817_p10, %p6813_p7 }
 0x17d   : > { %6821 = shalt.err (!%p6818_p11)
}
 0x17e   : > { %s8966_s13 = sld [smem:[#allocation91_spill]]  ;;  %s7259_s2 = smov [#allocation21]  }
 0x17f   : > { %5884 = dma.hbm_to_vmem [thread:$0]  (%p5983_p3), %s7766_s9, 16, %s1369_s28, [#allocation17]  }
 0x180   : > { %s1394_s15 = sshll.u32 %s7259_s2, 4  ;;  %s6836_s6 = sshra.s32 %s7777_s14, 4  ;;  %s1395_s15 = int_to_ptr.vmem [resolvable:$true] %s1394_s15  ;;  %s6837_s6 = int_to_ptr.hbm [resolvable:$true] %s6836_s6 }
 0x181   : > { %s6838_s11 = scalar_lea.hbm %s6837_s6, 1  ;;  %s6842_s1 = scalar_lea.hbm %s8965_s12, 1 }
 0x182   : > { %p6839_p12 = scmp.ne.s32.totalorder %s6837_s6, %s6838_s11  ;;  %p6843_p1 = scmp.lt.s32.totalorder %s6837_s6, %s8965_s12 }
 0x183   : > { %p6844_p4 = scmp.lt.s32.totalorder %s6842_s1, %s6838_s11 }
 0x184   : > { %s1419_s8 = sshll.u32 %s8966_s13, 4  ;;  %p6840_p13 = pnand %p6839_p12, %p5983_p3  ;;  %s7788_s8 = int_to_ptr.hbm [resolvable:$true] %s1419_s8 }
 0x185   : > { %p6845_p5 = por %p6844_p4, %p6843_p1 }
 0x186   : > { %p6841_p0 = pneg %p6840_p13 }
 0x188   : > { %p6846_p6 = pnand %p6845_p5, %p6841_p0 }
 0x18a   : > { %6849 = shalt.err (!%p6846_p6)
}
 0x18b   : > { %s8967_s9 = sld [smem:[#allocation93_spill]]  ;;  %s7260_s28 = smov [#allocation24]  }
 0x18c   : > { %5888 = dma.hbm_to_vmem [thread:$0]  (%p5983_p3), %s7777_s14, 16, %s1395_s15, [#allocation20]  }
 0x18d   : > { %s1421_s2 = sshll.u32 %s7260_s28, 4  ;;  %s6864_s6 = sshra.s32 %s7788_s8, 4  ;;  %s1422_s2 = int_to_ptr.vmem [resolvable:$true] %s1421_s2  ;;  %s6865_s6 = int_to_ptr.hbm [resolvable:$true] %s6864_s6 }
 0x18e   : > { %s6866_s11 = scalar_lea.hbm %s6865_s6, 1  ;;  %s6870_s1 = scalar_lea.hbm %s8966_s13, 1 }
 0x18f   : > { %p6867_p7 = scmp.ne.s32.totalorder %s6865_s6, %s6866_s11  ;;  %p6871_p10 = scmp.lt.s32.totalorder %s6865_s6, %s8966_s13 }
 0x190   : > { %p6872_p11 = scmp.lt.s32.totalorder %s6870_s1, %s6866_s11 }
 0x191   : > { %s1445_s16 = sshll.u32 %s8967_s9, 4  ;;  %p6868_p8 = pnand %p6867_p7, %p5983_p3  ;;  %s7799_s16 = int_to_ptr.hbm [resolvable:$true] %s1445_s16 }
 0x192   : > { %p6873_p12 = por %p6872_p11, %p6871_p10 }
 0x193   : > { %p6869_p9 = pneg %p6868_p8 }
 0x195   : > { %p6874_p13 = pnand %p6873_p12, %p6869_p9 }
 0x197   : > { %6877 = shalt.err (!%p6874_p13)
}
 0x198   : > { %s8968_s14 = sld [smem:[#allocation94_spill]]  ;;  %s7261_s28 = smov [#allocation27]  }
 0x199   : > { %5892 = dma.hbm_to_vmem [thread:$0]  (%p5983_p3), %s7788_s8, 16, %s1422_s2, [#allocation23]  }
 0x19a   : > { %s1447_s12 = sshll.u32 %s7261_s28, 4  ;;  %s6892_s6 = sshra.s32 %s7799_s16, 4  ;;  %s1448_s12 = int_to_ptr.vmem [resolvable:$true] %s1447_s12  ;;  %s6893_s6 = int_to_ptr.hbm [resolvable:$true] %s6892_s6 }
 0x19b   : > { %s6894_s11 = scalar_lea.hbm %s6893_s6, 1  ;;  %s6898_s1 = scalar_lea.hbm %s8967_s9, 1 }
 0x19c   : > { %p6895_p0 = scmp.ne.s32.totalorder %s6893_s6, %s6894_s11  ;;  %p6899_p5 = scmp.lt.s32.totalorder %s6893_s6, %s8967_s9 }
 0x19d   : > { %p6900_p6 = scmp.lt.s32.totalorder %s6898_s1, %s6894_s11 }
 0x19e   : > { %s1471_s15 = sshll.u32 %s8968_s14, 4  ;;  %p6896_p1 = pnand %p6895_p0, %p5983_p3  ;;  %s7810_s15 = int_to_ptr.hbm [resolvable:$true] %s1471_s15 }
 0x19f   : > { %p6901_p7 = por %p6900_p6, %p6899_p5 }
 0x1a0   : > { %p6897_p4 = pneg %p6896_p1 }
 0x1a2   : > { %p6902_p8 = pnand %p6901_p7, %p6897_p4 }
 0x1a4   : > { %6905 = shalt.err (!%p6902_p8)
}
 0x1a5   : > { %s8969_s8 = sld [smem:[#allocation96_spill]]  ;;  %s7262_s2 = smov [#allocation30]  }
 0x1a6   : > { %5896 = dma.hbm_to_vmem [thread:$0]  (%p5983_p3), %s7799_s16, 16, %s1448_s12, [#allocation26]  }
 0x1a7   : > { %s1473_s28 = sshll.u32 %s7262_s2, 4  ;;  %s6920_s6 = sshra.s32 %s7810_s15, 4  ;;  %s1474_s28 = int_to_ptr.vmem [resolvable:$true] %s1473_s28  ;;  %s6921_s6 = int_to_ptr.hbm [resolvable:$true] %s6920_s6 }
 0x1a8   : > { %s6922_s11 = scalar_lea.hbm %s6921_s6, 1  ;;  %s6926_s1 = scalar_lea.hbm %s8968_s14, 1 }
 0x1a9   : > { %p6923_p9 = scmp.ne.s32.totalorder %s6921_s6, %s6922_s11  ;;  %p6927_p12 = scmp.lt.s32.totalorder %s6921_s6, %s8968_s14 }
 0x1aa   : > { %p6928_p13 = scmp.lt.s32.totalorder %s6926_s1, %s6922_s11 }
 0x1ab   : > { %s1498_s13 = sshll.u32 %s8969_s8, 4  ;;  %p6924_p10 = pnand %p6923_p9, %p5983_p3  ;;  %s7821_s13 = int_to_ptr.hbm [resolvable:$true] %s1498_s13 }
 0x1ac   : > { %p6929_p0 = por %p6928_p13, %p6927_p12 }
 0x1ad   : > { %p6925_p11 = pneg %p6924_p10 }
 0x1af   : > { %p6930_p1 = pnand %p6929_p0, %p6925_p11 }
 0x1b1   : > { %6933 = shalt.err (!%p6930_p1)
}
 0x1b2   : > { %s8970_s16 = sld [smem:[#allocation98_spill]]  ;;  %s7263_s2 = smov [#allocation33]  }
 0x1b3   : > { %5900 = dma.hbm_to_vmem [thread:$0]  (%p5983_p3), %s7810_s15, 16, %s1474_s28, [#allocation29]  }
 0x1b4   : > { %s1500_s9 = sshll.u32 %s7263_s2, 4  ;;  %s6948_s6 = sshra.s32 %s7821_s13, 4  ;;  %s1501_s9 = int_to_ptr.vmem [resolvable:$true] %s1500_s9  ;;  %s6949_s6 = int_to_ptr.hbm [resolvable:$true] %s6948_s6 }
 0x1b5   : > { %s6950_s11 = scalar_lea.hbm %s6949_s6, 1  ;;  %s6954_s1 = scalar_lea.hbm %s8969_s8, 1 }
 0x1b6   : > { %p6951_p4 = scmp.ne.s32.totalorder %s6949_s6, %s6950_s11  ;;  %p6955_p7 = scmp.lt.s32.totalorder %s6949_s6, %s8969_s8 }
 0x1b7   : > { %p6956_p8 = scmp.lt.s32.totalorder %s6954_s1, %s6950_s11 }
 0x1b8   : > { %s1524_s12 = sshll.u32 %s8970_s16, 4  ;;  %p6952_p5 = pnand %p6951_p4, %p5983_p3  ;;  %s7832_s12 = int_to_ptr.hbm [resolvable:$true] %s1524_s12 }
 0x1b9   : > { %p6957_p9 = por %p6956_p8, %p6955_p7 }
 0x1ba   : > { %p6953_p6 = pneg %p6952_p5 }
 0x1bc   : > { %p6958_p10 = pnand %p6957_p9, %p6953_p6 }
 0x1be   : > { %6961 = shalt.err (!%p6958_p10)
}
 0x1bf   : > { %s8971_s15 = sld [smem:[#allocation99_spill]]  ;;  %s7264_s28 = smov [#allocation36]  }
 0x1c0   : > { %5904 = dma.hbm_to_vmem [thread:$0]  (%p5983_p3), %s7821_s13, 16, %s1501_s9, [#allocation32]  }
 0x1c1   : > { %s1526_s2 = sshll.u32 %s7264_s28, 4  ;;  %s6976_s6 = sshra.s32 %s7832_s12, 4  ;;  %s1527_s2 = int_to_ptr.vmem [resolvable:$true] %s1526_s2  ;;  %s6977_s6 = int_to_ptr.hbm [resolvable:$true] %s6976_s6 }
 0x1c2   : > { %s6978_s11 = scalar_lea.hbm %s6977_s6, 1  ;;  %s6982_s1 = scalar_lea.hbm %s8970_s16, 1 }
 0x1c3   : > { %p6979_p11 = scmp.ne.s32.totalorder %s6977_s6, %s6978_s11  ;;  %p6983_p0 = scmp.lt.s32.totalorder %s6977_s6, %s8970_s16 }
 0x1c4   : > { %p6984_p1 = scmp.lt.s32.totalorder %s6982_s1, %s6978_s11 }
 0x1c5   : > { %s1547_s14 = sshll.u32 %s8971_s15, 4  ;;  %p6980_p12 = pnand %p6979_p11, %p5983_p3  ;;  %s7843_s14 = int_to_ptr.hbm [resolvable:$true] %s1547_s14 }
 0x1c6   : > { %p6985_p4 = por %p6984_p1, %p6983_p0 }
 0x1c7   : > { %p6981_p13 = pneg %p6980_p12 }
 0x1c9   : > { %p6986_p5 = pnand %p6985_p4, %p6981_p13 }
 0x1cb   : > { %6989 = shalt.err (!%p6986_p5)
}
 0x1cc   : > { %s8972_s13 = sld [smem:[#allocation101_spill]]  ;;  %s7265_s28 = smov [#allocation39]  }
 0x1cd   : > { %5908 = dma.hbm_to_vmem [thread:$0]  (%p5983_p3), %s7832_s12, 16, %s1527_s2, [#allocation35]  }
 0x1ce   : > { %s1549_s8 = sshll.u32 %s7265_s28, 4  ;;  %s7004_s6 = sshra.s32 %s7843_s14, 4  ;;  %s1550_s8 = int_to_ptr.vmem [resolvable:$true] %s1549_s8  ;;  %s7005_s6 = int_to_ptr.hbm [resolvable:$true] %s7004_s6 }
 0x1cf   : > { %s7006_s11 = scalar_lea.hbm %s7005_s6, 32  ;;  %s7010_s1 = scalar_lea.hbm %s8971_s15, 32 }
 0x1d0   : > { %p7007_p6 = scmp.ne.s32.totalorder %s7005_s6, %s7006_s11  ;;  %p7011_p9 = scmp.lt.s32.totalorder %s7005_s6, %s8971_s15 }
 0x1d1   : > { %p7012_p10 = scmp.lt.s32.totalorder %s7010_s1, %s7006_s11 }
 0x1d2   : > { %s1577_s9 = sshll.u32 %s8972_s13, 4  ;;  %p7008_p7 = pnand %p7007_p6, %p5983_p3  ;;  %s7854_s9 = int_to_ptr.hbm [resolvable:$true] %s1577_s9 }
 0x1d3   : > { %p7013_p11 = por %p7012_p10, %p7011_p9 }
 0x1d4   : > { %p7009_p8 = pneg %p7008_p7 }
 0x1d6   : > { %p7014_p12 = pnand %p7013_p11, %p7009_p8 }
 0x1d8   : > { %7017 = shalt.err (!%p7014_p12)
}
 0x1d9   : > { %5912 = dma.hbm_to_vmem [thread:$0]  (%p5983_p3), %s7843_s14, 512, %s1550_s8, [#allocation38], %s8963_s3, %s8963_s3, %s8962_s5  }
 0x1da   : > { %s7266_s12 = smov [#allocation42]   ;;  %s1607_s28 = sshll.u32 %s7520_s27, 4  ;;  %s7868_s28 = int_to_ptr.hbm [resolvable:$true] %s1607_s28 }
 0x1db   : > { %s1579_s2 = sshll.u32 %s7266_s12, 4  ;;  %s7032_s6 = sshra.s32 %s7854_s9, 4  ;;  %s1580_s2 = int_to_ptr.vmem [resolvable:$true] %s1579_s2  ;;  %s7033_s6 = int_to_ptr.hbm [resolvable:$true] %s7032_s6 }
 0x1dc   : > { %s7034_s11 = scalar_lea.hbm %s7033_s6, 1  ;;  %s7038_s1 = scalar_lea.hbm %s8972_s13, 1 }
 0x1dd   : > { %p7035_p13 = scmp.ne.s32.totalorder %s7033_s6, %s7034_s11  ;;  %p7039_p4 = scmp.lt.s32.totalorder %s7033_s6, %s8972_s13 }
 0x1de   : > { %p7040_p5 = scmp.lt.s32.totalorder %s7038_s1, %s7034_s11 }
 0x1df   : > { %p7036_p0 = pnand %p7035_p13, %p5983_p3 }
 0x1e0   : > { %p7041_p6 = por %p7040_p5, %p7039_p4 }
 0x1e1   : > { %p7037_p1 = pneg %p7036_p0 }
 0x1e3   : > { %p7042_p7 = pnand %p7041_p6, %p7037_p1 }
 0x1e5   : > { %7045 = shalt.err (!%p7042_p7)
}
 0x1e6   : > { %5916 = dma.hbm_to_vmem [thread:$0]  (%p5983_p3), %s7854_s9, 16, %s1580_s2, [#allocation41]  }
 0x1e7   : > { %s1622_s5 = sshll.u32 %s7530_s29, 4  ;;  %s7267_s3 = smov [#allocation45]   ;;  %s7879_s5 = int_to_ptr.hbm [resolvable:$true] %s1622_s5 }
 0x1e8   : > { %s1609_s14 = sshll.u32 %s7267_s3, 4  ;;  %s7060_s8 = sshra.s32 %s7868_s28, 4  ;;  %s1610_s14 = int_to_ptr.vmem [resolvable:$true] %s1609_s14  ;;  %s7061_s8 = int_to_ptr.hbm [resolvable:$true] %s7060_s8 }
 0x1e9   : > { %s7062_s12 = scalar_lea.hbm %s7061_s8, 1  ;;  %s7066_s6 = scalar_lea.hbm %s7520_s27, 1 }
 0x1ea   : > { %p7063_p8 = scmp.ne.s32.totalorder %s7061_s8, %s7062_s12  ;;  %p7067_p11 = scmp.lt.s32.totalorder %s7061_s8, %s7520_s27 }
 0x1eb   : > { %p7068_p12 = scmp.lt.s32.totalorder %s7066_s6, %s7062_s12 }
 0x1ec   : > { %p7064_p9 = pnand %p7063_p8, %p5983_p3 }
 0x1ed   : > { %p7069_p13 = por %p7068_p12, %p7067_p11 }
 0x1ee   : > { %p7065_p10 = pneg %p7064_p9 }
 0x1f0   : > { %p7070_p0 = pnand %p7069_p13, %p7065_p10 }
 0x1f2   : > { %7073 = shalt.err (!%p7070_p0)
}
 0x1f3   : > { %5920 = dma.hbm_to_vmem [thread:$0]  (%p5983_p3), %s7868_s28, 16, %s1610_s14, [#allocation44]  }
 0x1f4   : > { %s7268_s9 = smov [#allocation46]   ;;  %s7088_s11 = sshra.s32 %s7879_s5, 4  ;;  %s7089_s11 = int_to_ptr.hbm [resolvable:$true] %s7088_s11 }
 0x1f5   : > { %s1624_s2 = sshll.u32 %s7268_s9, 4  ;;  %s7090_s1 = scalar_lea.hbm %s7089_s11, 1  ;;  %s1625_s2 = int_to_ptr.vmem [resolvable:$true] %s1624_s2 }
 0x1f6   : > { %p7091_p1 = scmp.ne.s32.totalorder %s7089_s11, %s7090_s1  ;;  %s7094_s3 = scalar_lea.hbm %s7530_s29, 1 }
 0x1f7   : > { %p7095_p6 = scmp.lt.s32.totalorder %s7089_s11, %s7530_s29  ;;  %p7096_p7 = scmp.lt.s32.totalorder %s7094_s3, %s7090_s1 }
 0x1f8   : > { %p7092_p4 = pnand %p7091_p1, %p5983_p3 }
 0x1f9   : > { %p7097_p8 = por %p7096_p7, %p7095_p6 }
 0x1fa   : > { %p7093_p5 = pneg %p7092_p4 }
 0x1fc   : > { %p7098_p9 = pnand %p7097_p8, %p7093_p5 }
 0x1fe   : > { %7101 = shalt.err (!%p7098_p9)
}
 0x1ff   : > { %5922 = dma.hbm_to_vmem [thread:$0]  (%p5983_p3), %s7879_s5, 16, %s1625_s2, [#allocation47]  }
 0x200 PF: > { %1657 = sbr.rel (%p7547_p2) target bundleno = 6509 (0x196d), region = 216  ;;  %p6013_p10 = scmp.eq.s32.totalorder (!%p7547_p2), %s7543_s0, 0 }
 0x205   : > { %7121 = dma.done.wait (%p6013_p10), [#allocation3], 16  }
 0x206   : > { %7123 = vsyncadd (%p6013_p10), [#allocation3], 4294967280 }
 0x207   : > { %7125 = dma.done.wait (%p6013_p10), [#allocation5], 32  }
 0x208   : > { %7127 = vsyncadd (%p6013_p10), [#allocation5], 4294967264 }
 0x209   : > { %7129 = dma.done.wait (%p6013_p10), [#allocation8], 32  }
 0x20a   : > { %7131 = vsyncadd (%p6013_p10), [#allocation8], 4294967264 }
 0x20b   : > { %7133 = dma.done.wait (%p6013_p10), [#allocation11], 528  }
 0x20c   : > { %7135 = vsyncadd (%p6013_p10), [#allocation11], 4294966768 }
 0x20d   : > { %7137 = dma.done.wait (%p6013_p10), [#allocation14], 48  }
 0x20e   : > { %7139 = vsyncadd (%p6013_p10), [#allocation14], 4294967248 }
 0x20f   : > { %7141 = dma.done.wait (%p6013_p10), [#allocation17], 528  }
 0x210   : > { %7143 = vsyncadd (%p6013_p10), [#allocation17], 4294966768 }
 0x211   : > { %7145 = dma.done.wait (%p6013_p10), [#allocation20], 528  }
 0x212   : > { %7147 = vsyncadd (%p6013_p10), [#allocation20], 4294966768 }
 0x213   : > { %7149 = dma.done.wait (%p6013_p10), [#allocation23], 48  }
 0x214   : > { %7151 = vsyncadd (%p6013_p10), [#allocation23], 4294967248 }
 0x215   : > { %7153 = dma.done.wait (%p6013_p10), [#allocation26], 528  }
 0x216   : > { %7155 = vsyncadd (%p6013_p10), [#allocation26], 4294966768 }
 0x217   : > { %7157 = dma.done.wait (%p6013_p10), [#allocation29], 528  }
 0x218   : > { %7159 = vsyncadd (%p6013_p10), [#allocation29], 4294966768 }
 0x219   : > { %7161 = dma.done.wait (%p6013_p10), [#allocation32], 48  }
 0x21a   : > { %7163 = vsyncadd (%p6013_p10), [#allocation32], 4294967248 }
 0x21b   : > { %7165 = dma.done.wait (%p6013_p10), [#allocation35], 272  }
 0x21c   : > { %7167 = vsyncadd (%p6013_p10), [#allocation35], 4294967024 }
 0x21d   : > { %7169 = dma.done.wait (%p6013_p10), [#allocation38], 544  }
 0x21e   : > { %7171 = vsyncadd (%p6013_p10), [#allocation38], 4294966752 }
 0x21f   : > { %7173 = dma.done.wait (%p6013_p10), [#allocation41], 32  }
 0x220   : > { %7175 = vsyncadd (%p6013_p10), [#allocation41], 4294967264 }
 0x221   : > { %7177 = dma.done.wait (%p6013_p10), [#allocation44], 32  }
 0x222   : > { %7179 = vsyncadd (%p6013_p10), [#allocation44], 4294967264 }
 0x223   : > { %7181 = dma.done.wait (%p6013_p10), [#allocation47], 16  }
 0x224   : > { %7183 = vsyncadd (%p6013_p10), [#allocation47], 4294967280  ;;  %s8973_s10 = sld [smem:[#allocation69_spill]]  ;;  %p1924_p2 = scmp.lt.s32.totalorder %s7543_s0, 1  ;;  %vm1980_vm0 = vcmask 261120   ;;  %vm2053_vm1 = vcmask 1047556  }
 0x225   : > { %s8974_s28 = sld [smem:[#allocation65_spill]]  ;;  %v6181_v10 = vld [vmem:[#allocation2] ss:$0 sm:$0xff]  ;;  %s7269_s3 = smov 108   ;;  %v7277_v22 = vmov 1983009808  }
 0x226   : > { %s8975_s5 = sld [smem:[#allocation66_spill]]  ;;  %s9001_s0 = smov (!%p1924_p2, %s7543_s0), 1  ;;  %v2056_v23 = vunpack.c.l.s4 %v7277_v22  ;;  %v7278_v28 = vmov 1934713408   ;;  %vm2659_vm2 = vcmask 31744   ;;  %vm2887_vm3 = vcmask 60416  }
 0x227   : > { %s8976_s14 = sld [smem:[#allocation67_spill]]  ;;  %s5778_s8 = sshll.u32 %s9001_s0, 3  ;;  %v2082_v29 = vunpack.c.l.s4 %v7278_v28  ;;  %vm3080_vm9 = vcmask 64512  }
 0x228   : > { %s8977_s12 = sld [smem:[#allocation64_spill]]  ;;  %s8905_s2 = sshll.u32 %s9001_s0, 2  ;;  %v8020_v26 = vunpack.c.0.s8 %v2056_v23 }
 0x229   : > { %s8978_s1 = sld [smem:[#allocation68_spill]]  ;;  %v8042_v44 = vunpack.c.0.s8 %v2082_v29 }
 0x22a   : > { %v1950_v0 = vld [vmem:[%s8973_s10 + $0x18] sm:$0xff]  ;;  %v1949_v1 = vld [vmem:[%s8973_s10 + $0x10] sm:$0xff]  ;;  %v1948_v2 = vld [vmem:[%s8973_s10 + $0x8] sm:$0xff] }
 0x22b   : > { %s7972_s6 = scalar_lea.vmem %s8974_s28, %s5778_s8  ;;  %2022 = vmatpush.msra.mxu1 %v1950_v0  ;;  %v1947_v5 = vld [vmem:[%s8973_s10] sm:$0xff]  ;;  %s7270_s28 = smov 112  }
 0x22c   : > { %s7976_s9 = scalar_lea.vmem %s8975_s5, %s9001_s0  ;;  %v1940_v6 = vld [vmem:[%s7972_s6] sm:$0xff]  ;;  %s7271_s5 = smov 124  }
 0x22d   : > { %v1945_v3 = vld [vmem:[%s8976_s14 + $0x18] sm:$0xff]  ;;  %v1944_v4 = vld [vmem:[%s8976_s14 + $0x10] sm:$0xff]  ;;  %2023 = vmatpush.msra.mxu1 %v1949_v1  ;;  %v1943_v7 = vld [vmem:[%s8976_s14 + $0x8] sm:$0xff]  ;;  %s7272_s8 = smov 104   ;;  %s7275_s10 = smov 100  }
 0x22e   : > { %1996 = vmatpush.msra.mxu0 %v1945_v3  ;;  %s7988_s11 = scalar_lea.vmem %s8977_s12, %s8905_s2  ;;  %v1942_v8 = vld [vmem:[%s8976_s14] sm:$0xff]  ;;  %s7273_s12 = smov 116  }
 0x22f   : > { %2024 = vmatpush.msra.mxu1 %v1948_v2  ;;  %v1939_v9 = vld [vmem:[%s7988_s11] sm:$0xf]  ;;  %s7274_s2 = smov 120  }
 0x230   : > { %1997 = vmatpush.msra.mxu0 %v1944_v4  ;;  %v6182_v13 = vld [vmem:[%s8978_s1] ss:$0 sm:$0xff]  ;;  %s7276_s1 = smov 96  }
 0x231   : > { %2025 = vmatpush.msra.mxu1 %v1947_v5 }
 0x232   : > { %1998 = vmatpush.msra.mxu0 %v1943_v7  ;;  %5781 = vmatmul.msk.f32.vlgmr.msra.gmra.mxu1 %vm1980_vm0, %v1940_v6 }
 0x234   : > { %1999 = vmatpush.msra.mxu0 %v1942_v8 }
 0x235   : > { %5780 = vmatmul.msk.f32.vlgmr.msra.gmra.mxu0 %vm1980_vm0, %v1939_v9 }
 0x2af   : > { %v2027_v11 = vpop.f32.mrf.mxu1 }
 0x2b0   : > { %v2028_v12 = vadd.f32 %v6181_v10, %v2027_v11 }
 0x2b2   : > { %2178 = vrot.lane.b32.xlu2 %v2028_v12, %s7269_s3  ;;  %2175 = vrot.lane.b32.xlu1 %v2028_v12, %s7270_s28  ;;  %v2001_v14 = vpop.f32.mrf.mxu0  ;;  %v2189_v30 = vrot.slane %v2028_v12, 4 }
 0x2b3   : > { %2166 = vrot.lane.b32.xlu0 %v2028_v12, %s7271_s5  ;;  %v7998_v15 = vadd.f32 %v6182_v13, %v2001_v14 }
 0x2ba   : > { %2181 = vrot.lane.b32.xlu2 %v2028_v12, %s7272_s8  ;;  %2172 = vrot.lane.b32.xlu1 %v2028_v12, %s7273_s12 }
 0x2bb   : > { %2169 = vrot.lane.b32.xlu0 %v2028_v12, %s7274_s2 }
 0x2c2   : > { %2184 = vrot.lane.b32.xlu1 %v2028_v12, %s7275_s10  ;;  %2037 = vrot.lane.b32.xlu2 %v7998_v15, %s7273_s12  ;;  %s8991_s12 = sld [smem:[#allocation81_spill]] }
 0x2c3   : > { %2034 = vrot.lane.b32.xlu0 %v7998_v15, %s7274_s2 }
 0x2ca   : > { %2031 = vrot.lane.b32.xlu1 %v7998_v15, %s7271_s5  ;;  %2040 = vrot.lane.b32.xlu2 %v7998_v15, %s7270_s28  ;;  %s8989_s5 = sld [smem:[#allocation76_spill]] }
 0x2cb   : > { %2046 = vrot.lane.b32.xlu0 %v7998_v15, %s7272_s8 }
 0x2d2   : > { %2043 = vrot.lane.b32.xlu1 %v7998_v15, %s7269_s3  ;;  %s8988_s3 = sld [smem:[#allocation74_spill]] }
 0x2d3   : > { %2049 = vrot.lane.b32.xlu0 %v7998_v15, %s7275_s10  ;;  %s8987_s10 = sld [smem:[#allocation71_spill]] }
 0x30c   : > { %v8010_v16 = vpop.permute.xlu2 %2178 }
 0x30d   : > { %v2225_v54 = vrot.slane %v8010_v16, 4 }
 0x314   : > { %v8012_v17 = vpop.permute.xlu2 %2181 }
 0x315   : > { %v6150_v18 = vpack.i.bf16 %v8012_v17, %v8010_v16  ;;  %v2211_v38 = vrot.slane %v8012_v17, 4 }
 0x31c   : > { %v2038_v59 = vpop.permute.xlu2 %2037 }
 0x31d   : > { %v2059_v8 = vrot.slane %v2038_v59, 4 }
 0x324   : > { %v2176_v19 = vpop.permute.xlu1 %2175 }
 0x325   : > { %v6145_v20 = vpack.i.bf16 %v2028_v12, %v2176_v19  ;;  %v8016_v21 = vpop.permute.xlu0 %2166  ;;  %v2213_v24 = vrot.slane %v2176_v19, 4  ;;  %v2212_v46 = vsel %vm2053_vm1, %v2211_v38, %v2176_v19 }
 0x326   : > { %v2201_v25 = vrot.slane %v8016_v21, 4  ;;  %v2218_v55 = vperm.slane %v2212_v46, %v8020_v26 }
 0x327   : > { %6146 = vrot.lane.b32.xlu0 %v6145_v20, %s7276_s1  ;;  %v2214_v39 = vsel %vm2053_vm1, %v8012_v17, %v2213_v24 }
 0x328   : > { %v2222_v49 = vperm.slane %v2214_v39, %v8020_v26  ;;  %v2261_v9 = vrot.slane %v2218_v55, 4 }
 0x32a   : > { %v2273_v0 = vrot.slane %v2222_v49, 4 }
 0x32c   : > { %v8022_v27 = vpop.permute.xlu1 %2172 }
 0x32d   : > { %v2199_v31 = vrot.slane %v8022_v27, 4  ;;  %v2202_v32 = vsel %vm2053_vm1, %v8022_v27, %v2201_v25  ;;  %v8027_v33 = vpop.permute.xlu0 %2169 }
 0x32e   : > { %v2210_v34 = vperm.slane %v2202_v32, %v8020_v26  ;;  %v2187_v35 = vrot.slane %v8027_v33, 4  ;;  %v6155_v36 = vpack.i.bf16 %v8027_v33, %v8016_v21  ;;  %v2190_v37 = vsel %vm2053_vm1, %v8027_v33, %v2189_v30 }
 0x32f   : > { %v2200_v40 = vsel %vm2053_vm1, %v2199_v31, %v8016_v21  ;;  %v2198_v41 = vperm.slane %v2190_v37, %v8020_v26 }
 0x330   : > { %v2206_v42 = vperm.slane %v2200_v40, %v8020_v26  ;;  %v2247_v43 = vrot.slane %v2210_v34, 4  ;;  %v2188_v45 = vsel %vm2053_vm1, %v2187_v35, %v2028_v12 }
 0x331   : > { %v2194_v47 = vperm.slane %v2188_v45, %v8020_v26  ;;  %v2249_v48 = vrot.slane %v2198_v41, 4 }
 0x332   : > { %v2235_v50 = vrot.slane %v2206_v42, 4  ;;  %v2248_v51 = vsel %vm2053_vm1, %v2247_v43, %v2198_v41 }
 0x333   : > { %v2237_v52 = vrot.slane %v2194_v47, 4  ;;  %v2250_v53 = vsel %vm2053_vm1, %v2210_v34, %v2249_v48  ;;  %v2254_v57 = vperm.slane %v2248_v51, %v8042_v44  ;;  %v2041_v51 = vpop.permute.xlu2 %2040 }
 0x334   : > { %v2236_v56 = vsel %vm2053_vm1, %v2235_v50, %v2194_v47  ;;  %v8054_v58 = vpop.permute.xlu1 %2184  ;;  %v2258_v61 = vperm.slane %v2250_v53, %v8042_v44 }
 0x335   : > { %v2238_v60 = vsel %vm2053_vm1, %v2206_v42, %v2237_v52  ;;  %v2223_v62 = vrot.slane %v8054_v58, 4  ;;  %v2035_v63 = vpop.permute.xlu0 %2034  ;;  %v2242_v1 = vperm.slane %v2236_v56, %v8042_v44  ;;  %v2226_v2 = vsel %vm2053_vm1, %v8054_v58, %v2225_v54 }
 0x336   : > { %v6160_v3 = vpack.i.bf16 %v8022_v27, %v8054_v58  ;;  %v2246_v4 = vperm.slane %v2238_v60, %v8042_v44  ;;  %v2234_v6 = vperm.slane %v2226_v2, %v8020_v26  ;;  %v2052_v7 = vrot.slane %v2035_v63, 4 }
 0x337   : > { %v2224_v5 = vsel %vm2053_vm1, %v2223_v62, %v8010_v16  ;;  %v2293_v10 = vrot.slane %v2254_v57, 4  ;;  %v2297_v12 = vrot.slane %v2258_v61, 4  ;;  %v2285_v25 = vrot.slane %v2242_v1, 4 }
 0x338   : > { %v2230_v11 = vperm.slane %v2224_v5, %v8020_v26  ;;  %v2271_v13 = vrot.slane %v2234_v6, 4  ;;  %v2274_v14 = vsel %vm2053_vm1, %v2234_v6, %v2273_v0  ;;  %v2054_v19 = vsel %vm2053_vm1, %v2052_v7, %v7998_v15 }
 0x339   : > { %v2282_v23 = vperm.slane %v2274_v14, %v8042_v44  ;;  %v2058_v24 = vperm.slane %v2054_v19, %v8020_v26  ;;  %v2289_v28 = vrot.slane %v2246_v4, 4 }
 0x33a   : > { %v2259_v20 = vrot.slane %v2230_v11, 4  ;;  %v2262_v22 = vsel %vm2053_vm1, %v2230_v11, %v2261_v9  ;;  %v2272_v30 = vsel %vm2053_vm1, %v2271_v13, %v2222_v49 }
 0x33b   : > { %v2270_v29 = vperm.slane %v2262_v22, %v8042_v44  ;;  %v2278_v32 = vperm.slane %v2272_v30, %v8042_v44  ;;  %v2295_v34 = vrot.slane %v2282_v23, 4  ;;  %v8080_v15 = vsel %vm2053_vm1, %v2282_v23, %v2297_v12 }
 0x33c   : > { %v2260_v31 = vsel %vm2053_vm1, %v2259_v20, %v2218_v55  ;;  %v2032_v35 = vpop.permute.xlu1 %2031  ;;  %v2335_v39 = vrot.slane %v8080_v15, 4  ;;  %v2079_v40 = vrot.slane %v2058_v24, 4 }
 0x33d   : > { %v2266_v37 = vperm.slane %v2260_v31, %v8042_v44  ;;  %v2287_v38 = vrot.slane %v2270_v29, 4  ;;  %v2047_v41 = vpop.permute.xlu0 %2046  ;;  %v2291_v42 = vrot.slane %v2278_v32, 4  ;;  %v8085_v43 = vsel %vm2053_vm1, %v2278_v32, %v2293_v10 }
 0x33e   : > { %v2296_v45 = vsel %vm2053_vm1, %v2295_v34, %v2258_v61  ;;  %v2060_v46 = vsel %vm2053_vm1, %v2059_v8, %v2032_v35  ;;  %v2337_v48 = vrot.slane %v8085_v43, 4  ;;  %v2065_v50 = vrot.slane %v2047_v41, 4 }
 0x33f   : > { %v2323_v47 = vrot.slane %v2296_v45, 4  ;;  %v2064_v49 = vperm.slane %v2060_v46, %v8020_v26  ;;  %v2283_v52 = vrot.slane %v2266_v37, 4  ;;  %v2286_v53 = vsel %vm2053_vm1, %v2266_v37, %v2285_v25 }
 0x340   : > { %v2288_v54 = vsel %vm2053_vm1, %v2287_v38, %v2246_v4  ;;  %v2290_v55 = vsel %vm2053_vm1, %v2270_v29, %v2289_v28  ;;  %v2066_v60 = vsel %vm2053_vm1, %v2065_v50, %v2041_v51  ;;  %v2292_v61 = vsel %vm2053_vm1, %v2291_v42, %v2254_v57 }
 0x341   : > { %v2077_v56 = vrot.slane %v2064_v49, 4  ;;  %v2080_v59 = vsel %vm2053_vm1, %v2064_v49, %v2079_v40  ;;  %v2070_v63 = vperm.slane %v2066_v60, %v8020_v26  ;;  %v2284_v0 = vsel %vm2053_vm1, %v2283_v52, %v2242_v1 }
 0x342   : > { %v8098_v62 = vperm.slane %v2080_v59, %v8042_v44  ;;  %v2299_v2 = vrot.slane %v2288_v54, 4  ;;  %v2301_v4 = vrot.slane %v2284_v0, 4  ;;  %v2311_v6 = vrot.slane %v2290_v55, 4 }
 0x343   : > { %v2078_v5 = vsel %vm2053_vm1, %v2077_v56, %v2058_v24  ;;  %v2313_v7 = vrot.slane %v2286_v53, 4  ;;  %v2091_v10 = vrot.slane %v2070_v63, 4  ;;  %v2324_v1 = vsel %vm2053_vm1, %v2323_v47, %v2292_v61 }
 0x344   : > { %v8104_v8 = vperm.slane %v2078_v5, %v8042_v44  ;;  %v2107_v9 = vrot.slane %v8098_v62, 4  ;;  %v2300_v57 = vsel %vm2053_vm1, %v2299_v2, %v2284_v0  ;;  %v2312_v13 = vsel %vm2053_vm1, %v2311_v6, %v2286_v53  ;;  %v2044_v24 = vpop.permute.xlu1 %2043 }
 0x345   : > { %v2050_v11 = vpop.permute.xlu0 %2049  ;;  %v2306_v12 = vperm.slane %v2300_v57, %v8020_v26  ;;  %v2325_v14 = vrot.slane %v2292_v61, 4  ;;  %v2318_v22 = vperm.slane %v2312_v13, %v8020_v26  ;;  %v2330_v23 = vperm.slane %v2324_v1, %v8020_v26 }
 0x346   : > { %v2103_v19 = vrot.slane %v8104_v8, 4  ;;  %v2071_v20 = vrot.slane %v2050_v11, 4  ;;  %v2336_v25 = vsel %vm2053_vm1, %v2335_v39, %v8085_v43  ;;  %v2302_v29 = vsel %vm2053_vm1, %v2288_v54, %v2301_v4 }
 0x347   : > { %v2349_v28 = vrot.slane %v2306_v12, 4  ;;  %v2314_v30 = vsel %vm2053_vm1, %v2290_v55, %v2313_v7  ;;  %v2342_v32 = vperm.slane %v2336_v25, %v8020_v26  ;;  %v2347_v34 = vrot.slane %v2318_v22, 4 }
 0x348   : > { %v2072_v31 = vsel %vm2053_vm1, %v2071_v20, %v2044_v24  ;;  %v2373_v35 = vrot.slane %v2330_v23, 4  ;;  %v2310_v40 = vperm.slane %v2302_v29, %v8020_v26  ;;  %v2322_v39 = vperm.slane %v2314_v30, %v8020_v26 }
 0x349   : > { %v2076_v37 = vperm.slane %v2072_v31, %v8020_v26  ;;  %v2350_v38 = vsel %vm2053_vm1, %v2318_v22, %v2349_v28  ;;  %v2348_v41 = vsel %vm2053_vm1, %v2347_v34, %v2306_v12  ;;  %v2371_v42 = vrot.slane %v2342_v32, 4 }
 0x34a   : > { %v2358_v43 = vperm.slane %v2350_v38, %v8042_v44  ;;  %v2374_v46 = vsel %vm2053_vm1, %v2342_v32, %v2373_v35  ;;  %v2354_v50 = vperm.slane %v2348_v41, %v8042_v44  ;;  %v2326_v54 = vsel %vm2053_vm1, %v2296_v45, %v2325_v14 }
 0x34b   : > { %v2089_v47 = vrot.slane %v2076_v37, 4  ;;  %v2092_v49 = vsel %vm2053_vm1, %v2076_v37, %v2091_v10  ;;  %v2382_v51 = vperm.slane %v2374_v46, %v8042_v44  ;;  %v2372_v53 = vsel %vm2053_vm1, %v2371_v42, %v2330_v23 }
 0x34c   : > { %v2100_v52 = vperm.slane %v2092_v49, %v8042_v44  ;;  %v2338_v55 = vsel %vm2053_vm1, %v8080_v15, %v2337_v48  ;;  %v2378_v59 = vperm.slane %v2372_v53, %v8042_v44  ;;  %v2397_v60 = vrot.slane %v2354_v50, 4 }
 0x34d   : > { %v2090_v56 = vsel %vm2053_vm1, %v2089_v47, %v2070_v63  ;;  %v2399_v61 = vrot.slane %v2382_v51, 4  ;;  %v2334_v4 = vperm.slane %v2326_v54, %v8020_v26  ;;  %v2346_v15 = vperm.slane %v2338_v55, %v8020_v26 }
 0x34e   : > { %v2096_v0 = vperm.slane %v2090_v56, %v8042_v44  ;;  %v2105_v2 = vrot.slane %v2100_v52, 4  ;;  %v2108_v5 = vsel %vm2053_vm1, %v2100_v52, %v2107_v9  ;;  %v2395_v6 = vrot.slane %v2378_v59, 4 }
 0x34f   : > { %v2398_v7 = vsel %vm2053_vm1, %v2378_v59, %v2397_v60  ;;  %v2400_v45 = vsel %vm2053_vm1, %v2399_v61, %v2358_v43  ;;  %v2359_v63 = vrot.slane %v2322_v39, 4  ;;  %v2361_v10 = vrot.slane %v2310_v40, 4 }
 0x350   : > { %v2101_v48 = vrot.slane %v2096_v0, 4  ;;  %5784 = vmatpush.xpose.msk.msra.mxu3 %vm2659_vm2, %v2398_v7  ;;  %v2385_v57 = vrot.slane %v2334_v4, 4  ;;  %v2396_v11 = vsel %vm2053_vm1, %v2395_v6, %v2354_v50  ;;  %v2383_v12 = vrot.slane %v2346_v15, 4 }
 0x351   : > { %v2401_v13 = vrot.slane %v2358_v43, 4  ;;  %v2104_v9 = vsel %vm2053_vm1, %v2096_v0, %v2103_v19  ;;  %5782 = vmatpush.xpose.msk.msra.mxu2 %vm2659_vm2, %v2396_v11  ;;  %v2360_v1 = vsel %vm2053_vm1, %v2359_v63, %v2310_v40  ;;  %v2106_v20 = vsel %vm2053_vm1, %v2105_v2, %v8098_v62 }
 0x352   : > { %v2102_v14 = vsel %vm2053_vm1, %v2101_v48, %v8104_v8  ;;  %v2121_v22 = vrot.slane %v2108_v5, 4  ;;  %v2366_v23 = vperm.slane %v2360_v1, %v8042_v44  ;;  %v2384_v24 = vsel %vm2053_vm1, %v2383_v12, %v2334_v4 }
 0x353   : > { %v2402_v25 = vsel %vm2053_vm1, %v2382_v51, %v2401_v13  ;;  %v2109_v19 = vrot.slane %v2106_v20, 4  ;;  %v2390_v28 = vperm.slane %v2384_v24, %v8042_v44  ;;  %v2111_v29 = vrot.slane %v2102_v14, 4  ;;  %v6180_v13 = vld [vmem:[%s7976_s9] ss:$0 sm:$0xff] }
 0x354   : > { %5788 = vmatpush.xpose.msk.msrb.mxu3 %vm2659_vm2, %v2402_v25  ;;  %v2122_v8 = vsel %vm2053_vm1, %v2121_v22, %v2104_v9  ;;  %v2123_v30 = vrot.slane %v2104_v9, 4  ;;  %v2405_v31 = vrot.slane %v2366_v23, 4  ;;  %v2362_v34 = vsel %vm2053_vm1, %v2322_v39, %v2361_v10 }
 0x355   : > { %5786 = vmatpush.xpose.msk.msrb.mxu2 %vm2659_vm2, %v2400_v45  ;;  %v2110_v62 = vsel %vm2053_vm1, %v2109_v19, %v2102_v14  ;;  %v2128_v32 = vperm.slane %v2122_v8, %v8020_v26  ;;  %v2403_v35 = vrot.slane %v2390_v28, 4  ;;  %v2370_v38 = vperm.slane %v2362_v34, %v8042_v44 }
 0x356   : > { %v2116_v37 = vperm.slane %v2110_v62, %v8020_v26  ;;  %v2386_v40 = vsel %vm2053_vm1, %v2346_v15, %v2385_v57  ;;  %v2406_v41 = vsel %vm2053_vm1, %v2390_v28, %v2405_v31  ;;  %v2112_v46 = vsel %vm2053_vm1, %v2106_v20, %v2111_v29 }
 0x357   : > { %v2133_v42 = vrot.slane %v2128_v32, 4  ;;  %v2394_v43 = vperm.slane %v2386_v40, %v8042_v44  ;;  %v2404_v47 = vsel %vm2053_vm1, %v2403_v35, %v2366_v23  ;;  %5792 = vmatpush.xpose.msk.msrb.mxu1 %vm2659_vm2, %v2406_v41  ;;  %v2124_v39 = vsel %vm2053_vm1, %v2108_v5, %v2123_v30 }
 0x358   : > { %v2135_v49 = vrot.slane %v2116_v37, 4  ;;  %5790 = vmatpush.xpose.msk.msrb.mxu0 %vm2659_vm2, %v2404_v47  ;;  %v2120_v52 = vperm.slane %v2112_v46, %v8020_v26  ;;  %v2132_v53 = vperm.slane %v2124_v39, %v8020_v26  ;;  %v2409_v56 = vrot.slane %v2370_v38, 4 }
 0x359   : > { %v2134_v50 = vsel %vm2053_vm1, %v2133_v42, %v2116_v37  ;;  %v2407_v51 = vrot.slane %v2394_v43, 4 }
 0x35a   : > { %v2140_v54 = vperm.slane %v2134_v50, %v8042_v44  ;;  %v2145_v55 = vrot.slane %v2132_v53, 4  ;;  %v2136_v59 = vsel %vm2053_vm1, %v2128_v32, %v2135_v49  ;;  %v2147_v6 = vrot.slane %v2120_v52, 4 }
 0x35b   : > { %v2408_v60 = vsel %vm2053_vm1, %v2407_v51, %v2370_v38  ;;  %v2144_v4 = vperm.slane %v2136_v59, %v8042_v44  ;;  %v2410_v7 = vsel %vm2053_vm1, %v2394_v43, %v2409_v56 }
 0x35c   : > { %5783 = vmatmul.msk.f32.vlgmr.msra.gmra.mxu2 %vm2659_vm2, %v2140_v54  ;;  %v2157_v61 = vrot.slane %v2140_v54, 4  ;;  %v2146_v0 = vsel %vm2053_vm1, %v2145_v55, %v2120_v52  ;;  %v2148_v63 = vsel %vm2053_vm1, %v2132_v53, %v2147_v6 }
 0x35d   : > { %5794 = vmatpush.xpose.msk.msra.mxu2 %vm2659_vm2, %v2408_v60  ;;  %v2152_v2 = vperm.slane %v2146_v0, %v8042_v44  ;;  %v2159_v48 = vrot.slane %v2144_v4, 4  ;;  %v2156_v57 = vperm.slane %v2148_v63, %v8042_v44 }
 0x35e   : > { %v2158_v5 = vsel %vm2053_vm1, 0.0, %v2157_v61 }
 0x35f   : > { %5785 = vmatmul.msk.f32.vlgmr.msra.gmra.mxu3 %vm2659_vm2, %v2158_v5  ;;  %5791 = vmatmul.msk.f32.vlgmr.msrb.gmra.mxu0 %vm2659_vm2, %v2152_v2  ;;  %v2161_v45 = vrot.slane %v2152_v2, 4  ;;  %v2160_v10 = vsel %vm2053_vm1, 0.0, %v2159_v48  ;;  %v2163_v11 = vrot.slane %v2156_v57, 4 }
 0x360   : > { %5796 = vmatpush.xpose.msk.msra.mxu3 %vm2659_vm2, %v2410_v7 }
 0x361   : > { %v2162_v15 = vsel %vm2053_vm1, 0.0, %v2161_v45  ;;  %v2164_v12 = vsel %vm2053_vm1, 0.0, %v2163_v11 }
 0x362   : > { %5793 = vmatmul.msk.f32.vlgmr.msrb.gmra.mxu1 %vm2659_vm2, %v2162_v15 }
 0x364   : > { %5787 = vmatmul.msk.f32.vlgmr.msrb.gmra.mxu2 %vm2659_vm2, %v2144_v4 }
 0x367   : > { %5789 = vmatmul.msk.f32.vlgmr.msrb.gmra.mxu3 %vm2659_vm2, %v2160_v10 }
 0x36c   : > { %5795 = vmatmul.msk.f32.vlgmr.msra.gmra.mxu2 %vm2659_vm2, %v2156_v57 }
 0x36f   : > { %5797 = vmatmul.msk.f32.vlgmr.msra.gmra.mxu3 %vm2659_vm2, %v2164_v12 }
 0x399   : > { %v8222_v56 = vpop.permute.xlu0 %6146 }
 0x3dc   : > { %v2787_v9 = vpop.f32.mrf.mxu0 }
 0x3dd   : > { %v2872_v1 = vmul.f32 0.5, %v2787_v9 }
 0x3df   : > { %v2683_v14 = vpop.f32.mrf.mxu2  ;;  %v2813_v20 = vpop.f32.mrf.mxu1  ;;  %v8199_v22 = vadd.f32 %v6180_v13, %v2872_v1  ;;  %v6148_v1 = vunpack.i.l.bf16 %v8222_v56 }
 0x3e0   : > { %v2873_v23 = vmul.f32 0.5, %v2813_v20  ;;  %v2868_v24 = vmul.f32 0.5, %v2683_v14 }
 0x3e1   : > { %v2900_v25 = vsel %vm2887_vm3, %v8199_v22, -inf }
 0x3e2   : > { %v2709_v19 = vpop.f32.mrf.mxu3  ;;  %2901 = vmax.xlane.f32.xlu1 %v2900_v25  ;;  %v2884_v28 = vadd.f32 %v6180_v13, %v2873_v23  ;;  %v2879_v30 = vadd.f32 %v6180_v13, %v2868_v24 }
 0x3e3   : > { %v2869_v29 = vmul.f32 0.5, %v2709_v19 }
 0x3e4   : > { %v2903_v8 = vsel %vm2887_vm3, %v2884_v28, -inf  ;;  %v2888_v32 = vsel %vm2887_vm3, %v2879_v30, -inf }
 0x3e5   : > { %2904 = vmax.xlane.f32.xlu2 %v2903_v8  ;;  %v2880_v62 = vadd.f32 %v6180_v13, %v2869_v29 }
 0x3e7   : > { %v2735_v31 = vpop.f32.mrf.mxu2  ;;  %v2891_v38 = vsel %vm2887_vm3, %v2880_v62, -inf }
 0x3e8   : > { %v2870_v37 = vmul.f32 0.5, %v2735_v31 }
 0x3ea   : > { %v2761_v34 = vpop.f32.mrf.mxu3  ;;  %2889 = vmax.xlane.f32.xlu1 %v2888_v32  ;;  %v2881_v42 = vadd.f32 %v6180_v13, %v2870_v37 }
 0x3eb   : > { %v2871_v35 = vmul.f32 0.5, %v2761_v34 }
 0x3ec   : > { %v2894_v39 = vsel %vm2887_vm3, %v2881_v42, -inf }
 0x3ed   : > { %v2882_v40 = vadd.f32 %v6180_v13, %v2871_v35  ;;  %2892 = vmax.xlane.f32.xlu2 %v2891_v38 }
 0x3ef   : > { %v2897_v41 = vsel %vm2887_vm3, %v2882_v40, -inf  ;;  %v2839_v43 = vpop.f32.mrf.mxu2 }
 0x3f0   : > { %2898 = vmax.xlane.f32.xlu0 %v2897_v41  ;;  %v2874_v49 = vmul.f32 0.5, %v2839_v43 }
 0x3f2   : > { %v2865_v46 = vpop.f32.mrf.mxu3  ;;  %v2885_v52 = vadd.f32 %v6180_v13, %v2874_v49 }
 0x3f3   : > { %v2875_v47 = vmul.f32 0.5, %v2865_v46 }
 0x3f4   : > { %v2906_v53 = vsel %vm2887_vm3, %v2885_v52, -inf }
 0x3f5   : > { %v2886_v50 = vadd.f32 %v6180_v13, %v2875_v47  ;;  %2895 = vmax.xlane.f32.xlu2 %v2894_v39 }
 0x3f7   : > { %v2909_v51 = vsel %vm2887_vm3, %v2886_v50, -inf }
 0x3f8   : > { %2910 = vmax.xlane.f32.xlu0 %v2909_v51 }
 0x3fd   : > { %2907 = vmax.xlane.f32.xlu2 %v2906_v53 }
 0x403   : > { %6151 = vrot.lane.b32.xlu1 %v6150_v18, %s7276_s1 }
 0x40c   : > { %6161 = vrot.lane.b32.xlu0 %v6160_v3, %s7276_s1 }
 0x415   : > { %6156 = vrot.lane.b32.xlu2 %v6155_v36, %s7276_s1 }
 0x455   : > { %v2902_v54 = vpop.xlane.xlu1 %2901 }
 0x456   : > { %v2916_v15 = vsub.f32 %v8199_v22, %v2902_v54  ;;  %v6149_v22 = vunpack.i.h.bf16 %v8222_v56 }
 0x458   : > { %v2905_v55 = vpop.xlane.xlu2 %2904  ;;  %v2928_v12 = vmul.f32 1.442695, %v2916_v15 }
 0x459   : > { %v2917_v5 = vsub.f32 %v2884_v28, %v2905_v55  ;;  %v2461_v28 = vrot.slane %v6148_v1, 4 }
 0x45b   : > { %v2930_v63 = vmul.f32 1.442695, %v2917_v5 }
 0x45d   : > { %v2890_v59 = vpop.xlane.xlu1 %2889 }
 0x45e   : > { %v2912_v60 = vsub.f32 %v2879_v30, %v2890_v59  ;;  %v2437_v30 = vrot.slane %v6149_v22, 4 }
 0x460   : > { %v2920_v61 = vmul.f32 1.442695, %v2912_v60  ;;  %v2893_v0 = vpop.xlane.xlu2 %2892 }
 0x461   : > { %v2913_v18 = vsub.f32 %v2880_v62, %v2893_v0 }
 0x462   : > { %6201 = vpow2.f32 %v2920_v61 }
 0x463   : > { %v2899_v16 = vpop.xlane.xlu0 %2898  ;;  %v2922_v58 = vmul.f32 1.442695, %v2913_v18 }
 0x464   : > { %v2915_v17 = vsub.f32 %v2882_v40, %v2899_v16 }
 0x466   : > { %v2926_v2 = vmul.f32 1.442695, %v2915_v17 }
 0x468   : > { %6203 = vpow2.f32 %v2926_v2  ;;  %v8224_v27 = vpop.eup %6201  ;;  %v2896_v3 = vpop.xlane.xlu2 %2895 }
 0x469   : > { %v2914_v21 = vsub.f32 %v2881_v42, %v2896_v3  ;;  %v2936_v33 = vsel %vm2887_vm3, %v8224_v27, 0.0  ;;  %6205 = vpow2.f32 %v2922_v58 }
 0x46a   : > { %2937 = vadd.xlane.f32.xlu2 %v2936_v33 }
 0x46b   : > { %v2911_v36 = vpop.xlane.xlu0 %2910  ;;  %v2924_v4 = vmul.f32 1.442695, %v2914_v21 }
 0x46c   : > { %v2919_v6 = vsub.f32 %v2886_v50, %v2911_v36 }
 0x46d   : > { %6207 = vpow2.f32 %v2924_v4 }
 0x46e   : > { %v8228_v7 = vpop.eup %6203  ;;  %v2934_v45 = vmul.f32 1.442695, %v2919_v6 }
 0x46f   : > { %v2945_v48 = vsel %vm2887_vm3, %v8228_v7, 0.0  ;;  %v8233_v11 = vpop.eup %6205 }
 0x470   : > { %6209 = vpow2.f32 %v2934_v45  ;;  %2946 = vadd.xlane.f32.xlu0 %v2945_v48  ;;  %v2908_v10 = vpop.xlane.xlu2 %2907  ;;  %v2939_v25 = vsel %vm2887_vm3, %v8233_v11, 0.0 }
 0x471   : > { %v2918_v57 = vsub.f32 %v2885_v52, %v2908_v10  ;;  %6211 = vpow2.f32 %v2930_v63 }
 0x473   : > { %v8235_v13 = vpop.eup %6207  ;;  %v2932_v9 = vmul.f32 1.442695, %v2918_v57 }
 0x474   : > { %v2942_v14 = vsel %vm2887_vm3, %v8235_v13, 0.0 }
 0x475   : > { %6213 = vpow2.f32 %v2932_v9  ;;  %v6152_v23 = vpop.permute.xlu1 %6151  ;;  %2943 = vadd.xlane.f32.xlu1 %v2942_v14 }
 0x476   : > { %v8240_v20 = vpop.eup %6209  ;;  %6215 = vpow2.f32 %v2928_v12  ;;  %v6154_v24 = vunpack.i.h.bf16 %v6152_v23  ;;  %v6153_v37 = vunpack.i.l.bf16 %v6152_v23 }
 0x477   : > { %v2957_v19 = vsel %vm2887_vm3, %v8240_v20, 0.0  ;;  %v8247_v8 = vpop.eup %6211 }
 0x478   : > { %2940 = vadd.xlane.f32.xlu0 %v2939_v25  ;;  %2958 = vadd.xlane.f32.xlu2 %v2957_v19  ;;  %v6157_v29 = vpop.permute.xlu2 %6156  ;;  %v2459_v31 = vrot.slane %v6154_v24, 4  ;;  %v2462_v32 = vsel %vm2053_vm1, %v6154_v24, %v2461_v28  ;;  %v2951_v43 = vsel %vm2887_vm3, %v8247_v8, 0.0  ;;  %v2473_v55 = vrot.slane %v6153_v37, 4 }
 0x479   : > { %v6159_v62 = vunpack.i.h.bf16 %v6157_v29  ;;  %v6158_v34 = vunpack.i.l.bf16 %v6157_v29  ;;  %v2470_v47 = vperm.slane %v2462_v32, %v8020_v26 }
 0x47a   : > { %v2460_v46 = vsel %vm2053_vm1, %v2459_v31, %v6148_v1 }
 0x47b   : > { %v8250_v35 = vpop.eup %6213  ;;  %v2435_v38 = vrot.slane %v6159_v62, 4  ;;  %v2438_v40 = vsel %vm2053_vm1, %v6159_v62, %v2437_v30  ;;  %v2449_v52 = vrot.slane %v6158_v34, 4  ;;  %v2466_v59 = vperm.slane %v2460_v46, %v8020_v26 }
 0x47c   : > { %v8253_v41 = vpop.eup %6215  ;;  %v2954_v42 = vsel %vm2887_vm3, %v8250_v35, 0.0  ;;  %v2446_v39 = vperm.slane %v2438_v40, %v8020_v26  ;;  %v2521_v16 = vrot.slane %v2470_v47, 4 }
 0x47d   : > { %v2436_v49 = vsel %vm2053_vm1, %v2435_v38, %v6149_v22  ;;  %2955 = vadd.xlane.f32.xlu1 %v2954_v42  ;;  %v2948_v56 = vsel %vm2887_vm3, %v8253_v41, 0.0  ;;  %v2509_v45 = vrot.slane %v2466_v59, 4 }
 0x47e   : > { %v6162_v50 = vpop.permute.xlu0 %6161  ;;  %v2442_v51 = vperm.slane %v2436_v49, %v8020_v26  ;;  %v2497_v17 = vrot.slane %v2446_v39, 4 }
 0x47f   : > { %v6164_v53 = vunpack.i.h.bf16 %v6162_v50  ;;  %v6163_v54 = vunpack.i.l.bf16 %v6162_v50 }
 0x480   : > { %2952 = vadd.xlane.f32.xlu0 %v2951_v43  ;;  %v2485_v58 = vrot.slane %v2442_v51, 4 }
 0x481   : > { %v2447_v60 = vrot.slane %v6164_v53, 4  ;;  %v2450_v61 = vsel %vm2053_vm1, %v6164_v53, %v2449_v52  ;;  %v2471_v0 = vrot.slane %v6163_v54, 4  ;;  %v2474_v2 = vsel %vm2053_vm1, %v6163_v54, %v2473_v55 }
 0x482   : > { %v2458_v18 = vperm.slane %v2450_v61, %v8020_v26  ;;  %v2482_v33 = vperm.slane %v2474_v2, %v8020_v26 }
 0x483   : > { %v2448_v3 = vsel %vm2053_vm1, %v2447_v60, %v6158_v34  ;;  %v2472_v21 = vsel %vm2053_vm1, %v2471_v0, %v6153_v37 }
 0x484   : > { %v2454_v36 = vperm.slane %v2448_v3, %v8020_v26  ;;  %v2495_v5 = vrot.slane %v2458_v18, 4  ;;  %v2478_v4 = vperm.slane %v2472_v21, %v8020_v26  ;;  %v2498_v6 = vsel %vm2053_vm1, %v2458_v18, %v2497_v17 }
 0x485   : > { %v2506_v15 = vperm.slane %v2498_v6, %v8042_v44  ;;  %v2519_v48 = vrot.slane %v2482_v33, 4  ;;  %v2522_v63 = vsel %vm2053_vm1, %v2482_v33, %v2521_v16  ;;  %2949 = vadd.xlane.f32.xlu1 %v2948_v56 }
 0x486   : > { %v2483_v10 = vrot.slane %v2454_v36, 4  ;;  %v2486_v57 = vsel %vm2053_vm1, %v2454_v36, %v2485_v58  ;;  %v2496_v12 = vsel %vm2053_vm1, %v2495_v5, %v2446_v39  ;;  %v2507_v9 = vrot.slane %v2478_v4, 4 }
 0x487   : > { %v2494_v1 = vperm.slane %v2486_v57, %v8042_v44  ;;  %v2502_v14 = vperm.slane %v2496_v12, %v8042_v44  ;;  %v2510_v22 = vsel %vm2053_vm1, %v2478_v4, %v2509_v45  ;;  %v2520_v23 = vsel %vm2053_vm1, %v2519_v48, %v2470_v47 }
 0x488   : > { %v2484_v24 = vsel %vm2053_vm1, %v2483_v10, %v2442_v51  ;;  %v2508_v25 = vsel %vm2053_vm1, %v2507_v9, %v2466_v59  ;;  %v2518_v19 = vperm.slane %v2510_v22, %v8042_v44  ;;  %v2526_v28 = vperm.slane %v2520_v23, %v8042_v44 }
 0x489   : > { %v2490_v29 = vperm.slane %v2484_v24, %v8042_v44  ;;  %v2514_v30 = vperm.slane %v2508_v25, %v8042_v44  ;;  %v2530_v31 = vperm.slane %v2522_v63, %v8042_v44  ;;  %v2537_v62 = vrot.slane %v2494_v1, 4 }
 0x48a   : > { %v2535_v32 = vrot.slane %v2518_v19, 4  ;;  %v2539_v34 = vrot.slane %v2526_v28, 4  ;;  %v2541_v37 = vrot.slane %v2502_v14, 4  ;;  %v2545_v38 = vrot.slane %v2506_v15, 4 }
 0x48b   : > { %v2531_v40 = vrot.slane %v2514_v30, 4  ;;  %v2533_v42 = vrot.slane %v2490_v29, 4  ;;  %v2538_v43 = vsel %vm2053_vm1, %v2518_v19, %v2537_v62  ;;  %v2543_v46 = vrot.slane %v2530_v31, 4 }
 0x48c   : > { %v2536_v47 = vsel %vm2053_vm1, %v2535_v32, %v2494_v1  ;;  %v2542_v49 = vsel %vm2053_vm1, %v2526_v28, %v2541_v37  ;;  %v2546_v39 = vsel %vm2053_vm1, %v2530_v31, %v2545_v38  ;;  %v2559_v50 = vrot.slane %v2538_v43, 4 }
 0x48d   : > { %v2544_v51 = vsel %vm2053_vm1, %v2543_v46, %v2506_v15  ;;  %v2583_v52 = vrot.slane %v2546_v39, 4  ;;  %v2585_v53 = vrot.slane %v2542_v49, 4  ;;  %v2532_v54 = vsel %vm2053_vm1, %v2531_v40, %v2490_v29 }
 0x48e   : > { %v2571_v55 = vrot.slane %v2544_v51, 4  ;;  %v2534_v56 = vsel %vm2053_vm1, %v2514_v30, %v2533_v42  ;;  %v2540_v59 = vsel %vm2053_vm1, %v2539_v34, %v2502_v14  ;;  %v2547_v60 = vrot.slane %v2536_v47, 4 }
 0x48f   : > { %v2549_v61 = vrot.slane %v2532_v54, 4  ;;  %v2560_v0 = vsel %vm2053_vm1, %v2559_v50, %v2534_v56  ;;  %v2561_v16 = vrot.slane %v2534_v56, 4  ;;  %v2573_v17 = vrot.slane %v2540_v59, 4 }
 0x490   : > { %v2548_v18 = vsel %vm2053_vm1, %v2547_v60, %v2532_v54  ;;  %v2566_v2 = vperm.slane %v2560_v0, %v8020_v26  ;;  %v2572_v58 = vsel %vm2053_vm1, %v2571_v55, %v2540_v59  ;;  %v2584_v3 = vsel %vm2053_vm1, %v2583_v52, %v2542_v49 }
 0x491   : > { %v2554_v21 = vperm.slane %v2548_v18, %v8020_v26  ;;  %v2578_v33 = vperm.slane %v2572_v58, %v8020_v26  ;;  %v2590_v36 = vperm.slane %v2584_v3, %v8020_v26  ;;  %v2550_v5 = vsel %vm2053_vm1, %v2536_v47, %v2549_v61 }
 0x492   : > { %v2595_v4 = vrot.slane %v2566_v2, 4  ;;  %v2558_v6 = vperm.slane %v2550_v5, %v8020_v26  ;;  %v2562_v45 = vsel %vm2053_vm1, %v2538_v43, %v2561_v16  ;;  %v2574_v15 = vsel %vm2053_vm1, %v2544_v51, %v2573_v17 }
 0x493   : > { %v2619_v48 = vrot.slane %v2590_v36, 4  ;;  %v2597_v63 = vrot.slane %v2554_v21, 4  ;;  %v2621_v10 = vrot.slane %v2578_v33, 4  ;;  %v2570_v57 = vperm.slane %v2562_v45, %v8020_v26 }
 0x494   : > { %v2596_v12 = vsel %vm2053_vm1, %v2595_v4, %v2554_v21  ;;  %v2582_v9 = vperm.slane %v2574_v15, %v8020_v26  ;;  %v2586_v1 = vsel %vm2053_vm1, %v2546_v39, %v2585_v53  ;;  %v2609_v14 = vrot.slane %v2558_v6, 4 }
 0x495   : > { %v2602_v22 = vperm.slane %v2596_v12, %v8042_v44  ;;  %v2620_v23 = vsel %vm2053_vm1, %v2619_v48, %v2578_v33  ;;  %v2598_v24 = vsel %vm2053_vm1, %v2566_v2, %v2597_v63  ;;  %v2622_v25 = vsel %vm2053_vm1, %v2590_v36, %v2621_v10 }
 0x496   : > { %v2626_v19 = vperm.slane %v2620_v23, %v8042_v44  ;;  %v2606_v28 = vperm.slane %v2598_v24, %v8042_v44  ;;  %v2630_v29 = vperm.slane %v2622_v25, %v8042_v44  ;;  %v2594_v30 = vperm.slane %v2586_v1, %v8020_v26 }
 0x497   : > { %v2645_v31 = vrot.slane %v2602_v22, 4  ;;  %v2607_v62 = vrot.slane %v2570_v57, 4  ;;  %v2610_v32 = vsel %vm2053_vm1, %v2570_v57, %v2609_v14  ;;  %v2633_v34 = vrot.slane %v2582_v9, 4 }
 0x498   : > { %v2643_v37 = vrot.slane %v2626_v19, 4  ;;  %v2647_v38 = vrot.slane %v2630_v29, 4  ;;  %v2649_v40 = vrot.slane %v2606_v28, 4  ;;  %v2631_v42 = vrot.slane %v2594_v30, 4 }
 0x499   : > { %v2646_v43 = vsel %vm2053_vm1, %v2626_v19, %v2645_v31  ;;  %v2608_v46 = vsel %vm2053_vm1, %v2607_v62, %v2558_v6  ;;  %v2618_v47 = vperm.slane %v2610_v32, %v8042_v44  ;;  %v2634_v49 = vsel %vm2053_vm1, %v2594_v30, %v2633_v34 }
 0x49a   : > { %v2644_v39 = vsel %vm2053_vm1, %v2643_v37, %v2602_v22  ;;  %v2648_v50 = vsel %vm2053_vm1, %v2647_v38, %v2606_v28  ;;  %3122 = vmatpush.msra.mxu1 %v2646_v43  ;;  %v2650_v51 = vsel %vm2053_vm1, %v2630_v29, %v2649_v40  ;;  %v2614_v52 = vperm.slane %v2608_v46, %v8042_v44 }
 0x49b   : > { %3099 = vmatpush.msra.mxu0 %v2644_v39  ;;  %3145 = vmatpush.msrb.mxu2 %v2648_v50  ;;  %v2632_v53 = vsel %vm2053_vm1, %v2631_v42, %v2582_v9  ;;  %v2642_v54 = vperm.slane %v2634_v49, %v8042_v44  ;;  %v2657_v55 = vrot.slane %v2618_v47, 4 }
 0x49c   : > { %3168 = vmatpush.msrb.mxu3 %v2650_v51  ;;  %v2638_v56 = vperm.slane %v2632_v53, %v8042_v44  ;;  %v2653_v59 = vrot.slane %v2614_v52, 4 }
 0x49d   : > { %v2655_v60 = vrot.slane %v2642_v54, 4  ;;  %v2658_v61 = vsel %vm2053_vm1, %v2642_v54, %v2657_v55 }
 0x49e   : > { %v2651_v0 = vrot.slane %v2638_v56, 4  ;;  %v2654_v16 = vsel %vm2053_vm1, %v2638_v56, %v2653_v59  ;;  %3260 = vmatpush.msra.mxu3 %v2658_v61 }
 0x49f   : > { %v2656_v17 = vsel %vm2053_vm1, %v2655_v60, %v2618_v47  ;;  %3214 = vmatpush.msrb.mxu1 %v2654_v16 }
 0x4a0   : > { %v2652_v18 = vsel %vm2053_vm1, %v2651_v0, %v2614_v52  ;;  %3237 = vmatpush.msra.mxu2 %v2656_v17 }
 0x4a1   : > { %3191 = vmatpush.msrb.mxu0 %v2652_v18 }
 0x4dd   : > { %v2938_v2 = vpop.xlane.xlu2 %2937 }
 0x4de   : > { %6217 = vrcp.f32 %v2938_v2  ;;  %v2971_v36 = vand.u32 2147483648, %v2938_v2  ;;  %v2969_v45 = vand.u32 2147483647, %v2938_v2  ;;  %vm2965_vm5 = vweird.f32 %v2938_v2 }
 0x4e0   : > { %v2972_v12 = vor.u32 1.1754944e-38, %v2971_v36  ;;  %vm2970_vm7 = vcmp.eq.f32.partialorder %v2969_v45, 8.507059e+37 }
 0x4e3   : > { %v2947_v58 = vpop.xlane.xlu0 %2946 }
 0x4e4   : > { %6219 = vrcp.f32 %v2947_v58  ;;  %v6218_v3 = vpop.eup %6217  ;;  %v3014_v57 = vand.u32 2147483647, %v2947_v58  ;;  %v3016_v1 = vand.u32 2147483648, %v2947_v58  ;;  %vm3010_vm10 = vweird.f32 %v2947_v58 }
 0x4e5   : > { %v2961_v21 = vmul.f32 %v6218_v3, %v2938_v2  ;;  %vm2966_vm4 = vweird.f32 %v6218_v3 }
 0x4e6   : > { %vm2967_vm6 = vmor %vm2965_vm5, %vm2966_vm4  ;;  %vm8349_vm11 = vcmp.eq.f32.partialorder %v3014_v57, 8.507059e+37  ;;  %v3017_v30 = vor.u32 1.1754944e-38, %v3016_v1 }
 0x4e7   : > { %v2962_v33 = vsub.f32 1.0, %v2961_v21 }
 0x4e8   : > { %v8339_v5 = vpop.xlane.xlu1 %2943 }
 0x4e9   : > { %v2963_v6 = vmul.f32 %v6218_v3, %v2962_v33  ;;  %6221 = vrcp.f32 %v8339_v5  ;;  %v2999_v22 = vand.u32 2147483647, %v8339_v5  ;;  %vm2995_vm12 = vweird.f32 %v8339_v5 }
 0x4ea   : > { %v6220_v4 = vpop.eup %6219  ;;  %v3001_v37 = vand.u32 2147483648, %v8339_v5 }
 0x4eb   : > { %v3006_v15 = vmul.f32 %v6220_v4, %v2947_v58  ;;  %v8342_v48 = vpop.xlane.xlu2 %2958  ;;  %v8344_v63 = vpop.xlane.xlu0 %2940  ;;  %v2964_v10 = vadd.f32 %v6218_v3, %v2963_v6  ;;  %vm3011_vm8 = vweird.f32 %v6220_v4  ;;  %vm8358_vm14 = vcmp.eq.f32.partialorder %v2999_v22, 8.507059e+37 }
 0x4ec   : > { %6223 = vrcp.f32 %v8342_v48  ;;  %vm3012_vm13 = vmor %vm3010_vm10, %vm3011_vm8  ;;  %vm3070_vm15 = vweird.f32 %v8342_v48  ;;  %v3074_v42 = vand.u32 2147483647, %v8342_v48  ;;  %v3076_v49 = vand.u32 2147483648, %v8342_v48 }
 0x4ed   : > { %v3007_v9 = vsub.f32 1.0, %v3006_v15  ;;  %v2968_v14 = vsel %vm2967_vm6, %v6218_v3, %v2964_v10  ;;  %6225 = vrcp.f32 %v8344_v63  ;;  %v2984_v39 = vand.u32 2147483647, %v8344_v63 }
 0x4ee   : > { %v2973_v23 = vsel %vm2970_vm7, %v2972_v12, %v2968_v14  ;;  %v3002_v53 = vor.u32 1.1754944e-38, %v3001_v37  ;;  %vm2980_vm6 = vweird.f32 %v8344_v63  ;;  %v2986_v54 = vand.u32 2147483648, %v8344_v63 }
 0x4ef   : > { %v3008_v24 = vmul.f32 %v6220_v4, %v3007_v9  ;;  %v6222_v25 = vpop.eup %6221  ;;  %v2974_v28 = vmul.f32 %v8224_v27, %v2973_v23  ;;  %vm8381_vm8 = vcmp.eq.f32.partialorder %v3074_v42, 8.507059e+37  ;;  %v3077_v16 = vor.u32 1.1754944e-38, %v3076_v49 }
 0x4f0   : > { %v2991_v31 = vmul.f32 %v6222_v25, %v8339_v5  ;;  %v8356_v62 = vpop.xlane.xlu1 %2955  ;;  %vm2996_vm4 = vweird.f32 %v6222_v25  ;;  %v2987_v36 = vor.u32 1.1754944e-38, %v2986_v54  ;;  %v1959_v54 = vld [vmem:[%s8987_s10 + $0x1c] sm:$0xf] }
 0x4f1   : > { %v3009_v29 = vadd.f32 %v6220_v4, %v3008_v24  ;;  %6227 = vrcp.f32 %v8356_v62  ;;  %5798 = vmatmul.msk.f32.vlgmr.msra.gmra.mxu0 %vm3080_vm9, %v2974_v28  ;;  %vm2997_vm7 = vmor %vm2995_vm12, %vm2996_vm4  ;;  %v3061_v10 = vand.u32 2147483648, %v8356_v62 }
 0x4f2   : > { %v6224_v32 = vpop.eup %6223  ;;  %v2992_v38 = vsub.f32 1.0, %v2991_v31 }
 0x4f3   : > { %v3013_v27 = vsel %vm3012_vm13, %v6220_v4, %v3009_v29  ;;  %v3066_v40 = vmul.f32 %v6224_v32, %v8342_v48  ;;  %v8368_v43 = vpop.xlane.xlu0 %2952  ;;  %v6226_v46 = vpop.eup %6225  ;;  %vm3071_vm5 = vweird.f32 %v6224_v32  ;;  %vm3055_vm13 = vweird.f32 %v8356_v62 }
 0x4f4   : > { %v3018_v47 = vsel %vm8349_vm11, %v3017_v30, %v3013_v27  ;;  %6229 = vrcp.f32 %v8368_v43  ;;  %v2993_v50 = vmul.f32 %v6222_v25, %v2992_v38  ;;  %v2976_v52 = vmul.f32 %v6226_v46, %v8344_v63  ;;  %vm3072_vm12 = vmor %vm3070_vm15, %vm3071_vm5 }
 0x4f5   : > { %v3067_v51 = vsub.f32 1.0, %v3066_v40  ;;  %v3019_v60 = vmul.f32 %v8228_v7, %v3018_v47  ;;  %vm2981_vm10 = vweird.f32 %v6226_v46  ;;  %vm8385_vm11 = vcmp.eq.f32.partialorder %v2984_v39, 8.507059e+37  ;;  %v1954_v39 = vld [vmem:[%s8987_s10 + $0x8] sm:$0xf] }
 0x4f6   : > { %v2994_v55 = vadd.f32 %v6222_v25, %v2993_v50  ;;  %v2977_v59 = vsub.f32 1.0, %v2976_v52  ;;  %v3059_v48 = vand.u32 2147483647, %v8356_v62  ;;  %v3044_v22 = vand.u32 2147483647, %v8368_v43 }
 0x4f7   : > { %v3068_v56 = vmul.f32 %v6224_v32, %v3067_v51  ;;  %v6228_v61 = vpop.eup %6227  ;;  %5801 = vmatmul.msk.f32.vlgmr.msrb.gmra.mxu3 %vm3080_vm9, %v3019_v60  ;;  %v3046_v23 = vand.u32 2147483648, %v8368_v43  ;;  %v1955_v50 = vld [vmem:[%s8987_s10 + $0xc] sm:$0xf]  ;;  %v1953_v51 = vld [vmem:[%s8987_s10 + $0x4] sm:$0xf] }
 0x4f8   : > { %v2998_v18 = vsel %vm2997_vm7, %v6222_v25, %v2994_v55  ;;  %v2978_v58 = vmul.f32 %v6226_v46, %v2977_v59  ;;  %v3051_v3 = vmul.f32 %v6228_v61, %v8356_v62  ;;  %v2950_v7 = vpop.xlane.xlu1 %2949  ;;  %vm3056_vm4 = vweird.f32 %v6228_v61  ;;  %v1958_v52 = vld [vmem:[%s8987_s10 + $0x18] sm:$0xf]  ;;  %v1957_v55 = vld [vmem:[%s8987_s10 + $0x14] sm:$0xf] }
 0x4f9   : > { %v3069_v2 = vadd.f32 %v6224_v32, %v3068_v56  ;;  %v3003_v33 = vsel %vm8358_vm14, %v3002_v53, %v2998_v18  ;;  %6231 = vrcp.f32 %v2950_v7  ;;  %vm2982_vm14 = vmor %vm2980_vm6, %vm2981_vm10  ;;  %vm3060_vm6 = vcmp.eq.f32.partialorder %v3059_v48, 8.507059e+37  ;;  %v1956_v53 = vld [vmem:[%s8987_s10 + $0x10] sm:$0xf] }
 0x4fa   : > { %v6230_v21 = vpop.eup %6229  ;;  %v2979_v4 = vadd.f32 %v6226_v46, %v2978_v58  ;;  %v3052_v6 = vsub.f32 1.0, %v3051_v3  ;;  %v3004_v1 = vmul.f32 %v8235_v13, %v3003_v33  ;;  %vm3057_vm5 = vmor %vm3055_vm13, %vm3056_vm4  ;;  %v3062_v13 = vor.u32 1.1754944e-38, %v3061_v10 }
 0x4fb   : > { %v3073_v5 = vsel %vm3072_vm12, %v6224_v32, %v3069_v2  ;;  %v3036_v45 = vmul.f32 %v6230_v21, %v8368_v43  ;;  %vm3041_vm15 = vweird.f32 %v6230_v21  ;;  %vm3040_vm7 = vweird.f32 %v8368_v43 }
 0x4fc   : > { %v3078_v15 = vsel %vm8381_vm8, %v3077_v16, %v3073_v5  ;;  %v2983_v57 = vsel %vm2982_vm14, %v6226_v46, %v2979_v4  ;;  %v3053_v12 = vmul.f32 %v6228_v61, %v3052_v6  ;;  %5800 = vmatmul.msk.f32.vlgmr.msrb.gmra.mxu2 %vm3080_vm9, %v3004_v1  ;;  %vm3042_vm8 = vmor %vm3040_vm7, %vm3041_vm15  ;;  %v3047_v32 = vor.u32 1.1754944e-38, %v3046_v23  ;;  %v6183_v23 = vld [vmem:[#allocation4] ss:$0 sm:$0xff] }
 0x4fd   : > { %v3037_v9 = vsub.f32 1.0, %v3036_v45  ;;  %v2988_v14 = vsel %vm8385_vm11, %v2987_v36, %v2983_v57  ;;  %v3079_v63 = vmul.f32 %v8240_v20, %v3078_v15  ;;  %vm3045_vm10 = vcmp.eq.f32.partialorder %v3044_v22, 8.507059e+37 }
 0x4fe   : > { %v3054_v24 = vadd.f32 %v6228_v61, %v3053_v12  ;;  %v2989_v19 = vmul.f32 %v8233_v11, %v2988_v14  ;;  %v3031_v27 = vand.u32 2147483648, %v2950_v7  ;;  %v3029_v40 = vand.u32 2147483647, %v2950_v7 }
 0x4ff   : > { %v3038_v25 = vmul.f32 %v6230_v21, %v3037_v9  ;;  %v6232_v28 = vpop.eup %6231  ;;  %5805 = vmatmul.msk.f32.vlgmr.msra.gmra.mxu3 %vm3080_vm9, %v3079_v63  ;;  %vm3025_vm12 = vweird.f32 %v2950_v7  ;;  %vm3268_vm4 = vcmask 1043456   ;;  %vm3474_vm15 = vcmask 257024  }
 0x500   : > { %v3058_v29 = vsel %vm3057_vm5, %v6228_v61, %v3054_v24  ;;  %v3021_v31 = vmul.f32 %v6232_v28, %v2950_v7  ;;  %5799 = vmatmul.msk.f32.vlgmr.msra.gmra.mxu1 %vm3080_vm9, %v2989_v19  ;;  %vm3026_vm11 = vweird.f32 %v6232_v28  ;;  %v3032_v46 = vor.u32 1.1754944e-38, %v3031_v27  ;;  %5810 = vmatpush.msk.msrb.mxu2 %vm3268_vm4, %v1954_v39  ;;  %v6273_v19 = vld [vmem:[%s7988_s11] sm:$0xf]  ;;  %s8990_s11 = sld [smem:[#allocation73_spill]] }
 0x501   : > { %v3039_v30 = vadd.f32 %v6230_v21, %v3038_v25  ;;  %v3063_v20 = vsel %vm3060_vm6, %v3062_v13, %v3058_v29  ;;  %vm3027_vm13 = vmor %vm3025_vm12, %vm3026_vm11  ;;  %vm3030_vm14 = vcmp.eq.f32.partialorder %v3029_v40, 8.507059e+37  ;;  %5812 = vmatpush.msk.msrb.mxu3 %vm3268_vm4, %v1955_v50  ;;  %5808 = vmatpush.msk.msra.mxu1 %vm3268_vm4, %v1953_v51  ;;  %v7279_v29 = vmov 32.0   ;;  %v1971_v51 = vld [vmem:[%s8989_s5 + $0x20] sm:$0xff] }
 0x502   : > { %v3022_v34 = vsub.f32 1.0, %v3021_v31  ;;  %v3064_v62 = vmul.f32 %v8250_v35, %v3063_v20  ;;  %6233 = vrcp.f32 %v7279_v29 }
 0x503   : > { %v3043_v11 = vsel %vm3042_vm8, %v6230_v21, %v3039_v30  ;;  %5820 = vmatpush.msk.msra.mxu3 %vm3268_vm4, %v1959_v54  ;;  %vm3558_vm8 = vcmask 523264  }
 0x504   : > { %v3048_v37 = vsel %vm3045_vm10, %v3047_v32, %v3043_v11  ;;  %v3023_v38 = vmul.f32 %v6232_v28, %v3022_v34  ;;  %5804 = vmatmul.msk.f32.vlgmr.msra.gmra.mxu2 %vm3080_vm9, %v3064_v62 }
 0x505   : > { %v3049_v42 = vmul.f32 %v8247_v8, %v3048_v37  ;;  %v1952_v8 = vld [vmem:[%s8987_s10] sm:$0xf]  ;;  %5818 = vmatpush.msk.msra.mxu2 %vm3268_vm4, %v1958_v52 }
 0x506   : > { %v3024_v43 = vadd.f32 %v6232_v28, %v3023_v38  ;;  %5806 = vmatpush.msk.msra.mxu0 %vm3268_vm4, %v1952_v8  ;;  %v1972_v8 = vld [vmem:[%s8989_s5 + $0x28] sm:$0xff] }
 0x508   : > { %v3028_v47 = vsel %vm3027_vm13, %v6232_v28, %v3024_v43  ;;  %5803 = vmatmul.msk.f32.vlgmr.msrb.gmra.mxu1 %vm3080_vm9, %v3049_v42  ;;  %v6234_v30 = vpop.eup %6233  ;;  %v1965_v42 = vld [vmem:[%s8988_s3 + $0x18] sm:$0xff]  ;;  %v1964_v43 = vld [vmem:[%s8988_s3 + $0x10] sm:$0xff] }
 0x509   : > { %v3033_v35 = vsel %vm3030_vm14, %v3032_v46, %v3028_v47  ;;  %5816 = vmatpush.msk.msrb.mxu1 %vm3268_vm4, %v1957_v55  ;;  %v3499_v31 = vmul.f32 32.0, %v6234_v30  ;;  %v1963_v46 = vld [vmem:[%s8988_s3 + $0x8] sm:$0xff]  ;;  %v1962_v47 = vld [vmem:[%s8988_s3] sm:$0xff] }
 0x50a   : > { %v3034_v49 = vmul.f32 %v8253_v41, %v3033_v35  ;;  %v1974_v35 = vld [vmem:[%s8989_s5 + $0x38] sm:$0xff] }
 0x50b   : > { %v3500_v20 = vsub.f32 1.0, %v3499_v31 }
 0x50c   : > { %5802 = vmatmul.msk.f32.vlgmr.msrb.gmra.mxu0 %vm3080_vm9, %v3034_v49  ;;  %v1973_v49 = vld [vmem:[%s8989_s5 + $0x30] sm:$0xff] }
 0x50d   : > { %5814 = vmatpush.msk.msrb.mxu0 %vm3268_vm4, %v1956_v53  ;;  %v3501_v32 = vmul.f32 %v6234_v30, %v3500_v20  ;;  %v1970_v53 = vld [vmem:[%s8989_s5 + $0x18] sm:$0xff] }
 0x50f   : > { %v3502_v11 = vadd.f32 %v6234_v30, %v3501_v32 }
 0x56e   : > { %v3101_v41 = vpop.f32.mrf.mxu0 }
 0x56f   : > { %5807 = vmatmul.msk.f32.vlgmr.msra.gmra.mxu0 %vm2659_vm2, %v3101_v41 }
 0x570   : > { %3546 = vmatpush.msra.mxu0 %v1965_v42 }
 0x572   : > { %3547 = vmatpush.msra.mxu0 %v1964_v43 }
 0x574   : > { %3548 = vmatpush.msra.mxu0 %v1963_v46 }
 0x576   : > { %3549 = vmatpush.msra.mxu0 %v1962_v47 }
 0x57a   : > { %v3170_v56 = vpop.f32.mrf.mxu3 }
 0x57b   : > { %5813 = vmatmul.msk.f32.vlgmr.msrb.gmra.mxu3 %vm2659_vm2, %v3170_v56 }
 0x57d   : > { %v3124_v59 = vpop.f32.mrf.mxu1 }
 0x57e   : > { %5809 = vmatmul.msk.f32.vlgmr.msra.gmra.mxu1 %vm2659_vm2, %v3124_v59  ;;  %v1961_v59 = vld [vmem:[%s8990_s11] sm:$0x3]  ;;  %s8992_s11 = sld [smem:[#allocation79_spill]] }
 0x57f   : > { %v3147_v60 = vpop.f32.mrf.mxu2  ;;  %3570 = vmatpush.msra.mxu1 %v1974_v35 }
 0x580   : > { %5811 = vmatmul.msk.f32.vlgmr.msrb.gmra.mxu2 %vm2659_vm2, %v3147_v60 }
 0x581   : > { %3571 = vmatpush.msra.mxu1 %v1973_v49 }
 0x582   : > { %v3262_v61 = vpop.f32.mrf.mxu3 }
 0x583   : > { %5821 = vmatmul.msk.f32.vlgmr.msra.gmra.mxu3 %vm2659_vm2, %v3262_v61  ;;  %3572 = vmatpush.msra.mxu1 %v1972_v8 }
 0x584   : > { %v3612_v29 = vld [vmem:[%s8992_s11 + $0x18] sm:$0xff]  ;;  %v3610_v31 = vld [vmem:[%s8992_s11 + $0x8] sm:$0xff]  ;;  %v3609_v20 = vld [vmem:[%s8992_s11] sm:$0xff] }
 0x585   : > { %v3216_v0 = vpop.f32.mrf.mxu1  ;;  %3573 = vmatpush.msra.mxu1 %v1971_v51  ;;  %3654 = vmatpush.msrb.mxu2 %v3612_v29 }
 0x586   : > { %5817 = vmatmul.msk.f32.vlgmr.msrb.gmra.mxu1 %vm2659_vm2, %v3216_v0  ;;  %v3524_v0 = vperm.slane %v1961_v59, 0 }
 0x587   : > { %v3239_v16 = vpop.f32.mrf.mxu2  ;;  %3574 = vmatpush.msra.mxu1 %v1970_v53 }
 0x588   : > { %5819 = vmatmul.msk.f32.vlgmr.msra.gmra.mxu2 %vm2659_vm2, %v3239_v16 }
 0x589   : > { %v3193_v17 = vpop.f32.mrf.mxu0 }
 0x58a   : > { %5815 = vmatmul.msk.f32.vlgmr.msrb.gmra.mxu0 %vm2659_vm2, %v3193_v17  ;;  %vm3503_vm2 = vweird.f32 %v6234_v30 }
 0x58b   : > { %v8451_v34 = vsel %vm3503_vm2, %v6234_v30, %v3502_v11  ;;  %v3611_v30 = vld [vmem:[%s8992_s11 + $0x10] sm:$0xff] }
 0x58c   : > { %3655 = vmatpush.msrb.mxu2 %v3611_v30 }
 0x58e   : > { %3656 = vmatpush.msrb.mxu2 %v3610_v31 }
 0x590   : > { %3657 = vmatpush.msrb.mxu2 %v3609_v20 }
 0x5ec   : > { %v3289_v18 = vpop.f32.mrf.mxu0 }
 0x5ed   : > { %v3475_v7 = vsel %vm3474_vm15, %v3289_v18, 0.0  ;;  %v3526_v18 = vperm.slane %v1961_v59, 1 }
 0x5fb   : > { %v3315_v2 = vpop.f32.mrf.mxu1 }
 0x5fc   : > { %v3476_v58 = vsel %vm3474_vm15, %v3315_v2, 0.0 }
 0x5fd   : > { %v3477_v21 = vadd.f32 %v3476_v58, %v3475_v7  ;;  %v1968_v7 = vld [vmem:[%s8989_s5 + $0x8] sm:$0xff] }
 0x5fe   : > { %v3367_v3 = vpop.f32.mrf.mxu3 }
 0x5ff   : > { %v3480_v6 = vsel %vm3474_vm15, %v3367_v3, 0.0  ;;  %v1969_v3 = vld [vmem:[%s8989_s5 + $0x10] sm:$0xff] }
 0x600   : > { %3575 = vmatpush.msra.mxu1 %v1969_v3 }
 0x602   : > { %3576 = vmatpush.msra.mxu1 %v1968_v7 }
 0x603   : > { %v3341_v33 = vpop.f32.mrf.mxu2  ;;  %v3419_v15 = vpop.f32.mrf.mxu1 }
 0x604   : > { %v3478_v36 = vsel %vm3474_vm15, %v3341_v33, 0.0  ;;  %v3484_v57 = vsel %vm3474_vm15, %v3419_v15, 0.0  ;;  %v6184_v33 = vld [vmem:[#allocation6] ss:$0 sm:$0xff]  ;;  %v6185_v15 = vld [vmem:[#allocation7] ss:$0 sm:$0xff] }
 0x605   : > { %v3479_v5 = vadd.f32 %v3478_v36, %v3477_v21  ;;  %v1967_v21 = vld [vmem:[%s8989_s5] sm:$0xff] }
 0x606   : > { %v3471_v12 = vpop.f32.mrf.mxu3  ;;  %3577 = vmatpush.msra.mxu1 %v1967_v21 }
 0x607   : > { %v3393_v4 = vpop.f32.mrf.mxu0  ;;  %v3481_v48 = vadd.f32 %v3480_v6, %v3479_v5  ;;  %v3488_v63 = vsel %vm3474_vm15, %v3471_v12, 0.0  ;;  %v3617_v6 = vld [vmem:[%s8991_s12 + $0x18] sm:$0xff] }
 0x608   : > { %v3482_v45 = vsel %vm3474_vm15, %v3393_v4, 0.0  ;;  %3677 = vmatpush.msrb.mxu3 %v3617_v6 }
 0x609   : > { %v3483_v10 = vadd.f32 %v3482_v45, %v3481_v48  ;;  %v3616_v45 = vld [vmem:[%s8991_s12 + $0x10] sm:$0xff] }
 0x60a   : > { %3678 = vmatpush.msrb.mxu3 %v3616_v45 }
 0x60b   : > { %v3445_v9 = vpop.f32.mrf.mxu2  ;;  %v3485_v1 = vadd.f32 %v3484_v57, %v3483_v10 }
 0x60c   : > { %v3486_v14 = vsel %vm3474_vm15, %v3445_v9, 0.0  ;;  %v3615_v9 = vld [vmem:[%s8991_s12 + $0x8] sm:$0xff] }
 0x60d   : > { %v3487_v22 = vadd.f32 %v3486_v14, %v3485_v1  ;;  %v3614_v1 = vld [vmem:[%s8991_s12] sm:$0xff]  ;;  %3679 = vmatpush.msrb.mxu3 %v3615_v9 }
 0x60e   : > { %v8477_v14 = vld [vmem:[%s7972_s6] sm:$0xff]  ;;  %s8993_s6 = sld [smem:[#allocation78_spill]] }
 0x60f   : > { %v3489_v24 = vadd.f32 %v3488_v63, %v3487_v22  ;;  %3680 = vmatpush.msrb.mxu3 %v3614_v1 }
 0x610   : > { %5825 = vmatmul.msk.f32.vlgmr.msrb.gmra.mxu3 %vm1980_vm0, %v8477_v14 }
 0x611   : > { %v3493_v25 = vadd.f32 %v6183_v23, %v3489_v24 }
 0x613   : > { %v3494_v28 = vadd.f32 %v6273_v19, %v3493_v25  ;;  %v6186_v19 = vld [vmem:[#allocation10] ss:$0 sm:$0xff] }
 0x614   : > { %v1976_v42 = vld [vmem:[%s8993_s6] sm:$0x3]  ;;  %s8998_s6 = sld [smem:[#allocation103_spill]] }
 0x615   : > { %v3495_v13 = vsel %vm3474_vm15, %v3494_v28, 0.0  ;;  %v3605_v47 = vperm.slane %v1976_v42, 0  ;;  %v3607_v8 = vperm.slane %v1976_v42, 1 }
 0x616   : > { %3496 = vadd.xlane.f32.xlu2 %v3495_v13 }
 0x689   : > { %v3497_v62 = vpop.xlane.xlu2 %3496 }
 0x68a   : > { %v3505_v37 = vmul.f32 %v8451_v34, %v3497_v62 }
 0x68c   : > { %v3506_v27 = vsub.f32 %v3494_v28, %v3505_v37 }
 0x68e   : > { %v3507_v38 = vmul.f32 %v3506_v27, %v3506_v27 }
 0x690   : > { %v3508_v40 = vsel %vm3474_vm15, %v3507_v38, 0.0 }
 0x691   : > { %3509 = vadd.xlane.f32.xlu1 %v3508_v40 }
 0x693   : > { %v3682_v28 = vpop.f32.mrf.mxu3 }
 0x694   : > { %v8483_v13 = vadd.f32 %v6186_v19, %v3682_v28 }
 0x696   : > { %v3762_v51 = vrot.slane %v8483_v13, 4 }
 0x6aa   : > { %3754 = vrot.lane.b32.xlu1 %v8483_v13, %s7270_s28 }
 0x704   : > { %v3510_v39 = vpop.xlane.xlu1 %3509 }
 0x705   : > { %v3511_v50 = vmul.f32 %v3510_v39, %v8451_v34 }
 0x707   : > { %v3512_v52 = vadd.f32 1e-05, %v3511_v50 }
 0x709   : > { %6235 = vrsqrt.f32 %v3512_v52  ;;  %vm3519_vm6 = vweird.f32 %v3512_v52 }
 0x70f   : > { %v6236_v54 = vpop.eup %6235 }
 0x710   : > { %v3514_v55 = vmul.f32 %v6236_v54, %v3512_v52  ;;  %vm3520_vm5 = vweird.f32 %v6236_v54 }
 0x711   : > { %vm3521_vm7 = vmor %vm3519_vm6, %vm3520_vm5 }
 0x712   : > { %v3515_v41 = vmul.f32 %v6236_v54, %v3514_v55 }
 0x714   : > { %v3516_v56 = vmul.f32 0.5, %v3515_v41 }
 0x716   : > { %v3517_v60 = vsub.f32 1.5, %v3516_v56 }
 0x718   : > { %v3518_v61 = vmul.f32 %v6236_v54, %v3517_v60 }
 0x71a   : > { %v3522_v16 = vsel %vm3521_vm7, %v6236_v54, %v3518_v61 }
 0x71b   : > { %v3523_v17 = vmul.f32 %v3522_v16, %v3506_v27 }
 0x71c   : > { %v8504_v53 = vpop.permute.xlu1 %3754 }
 0x71d   : > { %v3525_v2 = vmul.f32 %v3524_v0, %v3523_v17  ;;  %v3760_v54 = vrot.slane %v8504_v53, 4  ;;  %v3763_v41 = vsel %vm2053_vm1, %v8504_v53, %v3762_v51 }
 0x71e   : > { %v3771_v60 = vperm.slane %v3763_v41, %v8020_v26 }
 0x71f   : > { %v3527_v58 = vadd.f32 %v3526_v18, %v3525_v2  ;;  %v3761_v55 = vsel %vm2053_vm1, %v3760_v54, %v8483_v13 }
 0x720   : > { %v3767_v56 = vperm.slane %v3761_v55, %v8020_v26  ;;  %v3798_v2 = vrot.slane %v3771_v60, 4 }
 0x721   : > { %5822 = vmatmul.msk.f32.vlgmr.msra.gmra.mxu0 %vm1980_vm0, %v3527_v58 }
 0x722   : > { %v3786_v0 = vrot.slane %v3767_v56, 4 }
 0x79e   : > { %v3551_v36 = vpop.f32.mrf.mxu0 }
 0x79f   : > { %v3552_v5 = vadd.f32 %v6184_v33, %v3551_v36 }
 0x7a1   : > { %v3554_v4 = vmax.f32 %v3552_v5, 0.0 }
 0x7a3   : > { %5823 = vmatmul.msk.f32.vlgmr.msra.gmra.mxu1 %vm3558_vm8, %v3554_v4 }
 0x820   : > { %v3579_v48 = vpop.f32.mrf.mxu1 }
 0x821   : > { %v3580_v10 = vadd.f32 %v6185_v15, %v3579_v48 }
 0x823   : > { %v3582_v57 = vadd.f32 %v3580_v10, %v3527_v58 }
 0x825   : > { %v3583_v12 = vsel %vm3474_vm15, %v3582_v57, 0.0 }
 0x826   : > { %3584 = vadd.xlane.f32.xlu0 %v3583_v12 }
 0x83a   : > { %3757 = vrot.lane.b32.xlu0 %v8483_v13, %s7272_s8 }
 0x842   : > { %3751 = vrot.lane.b32.xlu0 %v8483_v13, %s7274_s2 }
 0x899   : > { %v3585_v22 = vpop.xlane.xlu0 %3584 }
 0x89a   : > { %v3586_v23 = vmul.f32 %v3585_v22, %v8451_v34 }
 0x89c   : > { %v3587_v63 = vsub.f32 %v3582_v57, %v3586_v23 }
 0x89e   : > { %v3588_v24 = vmul.f32 %v3587_v63, %v3587_v63 }
 0x8a0   : > { %v3589_v25 = vsel %vm3474_vm15, %v3588_v24, 0.0 }
 0x8a1   : > { %3590 = vadd.xlane.f32.xlu2 %v3589_v25 }
 0x8ac   : > { %v8502_v52 = vpop.permute.xlu0 %3757 }
 0x8ad   : > { %v3772_v59 = vrot.slane %v8502_v52, 4 }
 0x8b4   : > { %v8514_v61 = vpop.permute.xlu0 %3751 }
 0x8b5   : > { %v3773_v16 = vsel %vm2053_vm1, %v3772_v59, %v8514_v61  ;;  %v3774_v17 = vrot.slane %v8514_v61, 4 }
 0x8b6   : > { %v3779_v18 = vperm.slane %v3773_v16, %v8020_v26 }
 0x8b7   : > { %v3775_v58 = vsel %vm2053_vm1, %v8502_v52, %v3774_v17 }
 0x8b8   : > { %v3783_v3 = vperm.slane %v3775_v58, %v8020_v26  ;;  %v3784_v7 = vrot.slane %v3779_v18, 4  ;;  %v3787_v21 = vsel %vm2053_vm1, %v3779_v18, %v3786_v0  ;;  %v6187_v0 = vld [vmem:[#allocation9] ss:$0 sm:$0xff] }
 0x8b9   : > { %v3795_v33 = vperm.slane %v3787_v21, %v8042_v44 }
 0x8ba   : > { %v3796_v36 = vrot.slane %v3783_v3, 4  ;;  %v3785_v5 = vsel %vm2053_vm1, %v3784_v7, %v3767_v56  ;;  %v3799_v4 = vsel %vm2053_vm1, %v3783_v3, %v3798_v2 }
 0x8bb   : > { %v3791_v6 = vperm.slane %v3785_v5, %v8042_v44  ;;  %v3807_v45 = vperm.slane %v3799_v4, %v8042_v44  ;;  %v3810_v15 = vrot.slane %v3795_v33, 4 }
 0x8bc   : > { %v3797_v48 = vsel %vm2053_vm1, %v3796_v36, %v3771_v60 }
 0x8bd   : > { %v3803_v10 = vperm.slane %v3797_v48, %v8042_v44  ;;  %v3808_v57 = vrot.slane %v3791_v6, 4  ;;  %v3811_v12 = vsel %vm2053_vm1, 0.0, %v3810_v15  ;;  %v3814_v9 = vrot.slane %v3807_v45, 4 }
 0x8be   : > { %v3821_v1 = vrot.slane %v3811_v12, 4  ;;  %v3816_v28 = vsel %vm2053_vm1, %v3810_v15, %v3791_v6 }
 0x8bf   : > { %v3809_v22 = vsel %vm2053_vm1, 0.0, %v3808_v57  ;;  %v3812_v23 = vrot.slane %v3803_v10, 4  ;;  %v3827_v24 = vsel %vm2053_vm1, %v3814_v9, %v3803_v10  ;;  %v3820_v31 = vperm.slane %v3816_v28, %v8020_v26 }
 0x8c0   : > { %v3831_v25 = vperm.slane %v3827_v24, %v8020_v26  ;;  %v3822_v29 = vsel %vm2053_vm1, %v3821_v1, %v3809_v22 }
 0x8c1   : > { %v3813_v30 = vsel %vm2053_vm1, 0.0, %v3812_v23  ;;  %v3826_v20 = vperm.slane %v3822_v29, %v8020_v26 }
 0x914   : > { %v3591_v32 = vpop.xlane.xlu2 %3590 }
 0x915   : > { %v3592_v11 = vmul.f32 %v3591_v32, %v8451_v34 }
 0x917   : > { %v3593_v62 = vadd.f32 1e-05, %v3592_v11  ;;  %v3852_v11 = vrot.slane %v3831_v25, 4 }
 0x919   : > { %6237 = vrsqrt.f32 %v3593_v62  ;;  %vm3600_vm11 = vweird.f32 %v3593_v62 }
 0x91f   : > { %v6238_v37 = vpop.eup %6237 }
 0x920   : > { %v3595_v27 = vmul.f32 %v6238_v37, %v3593_v62  ;;  %vm3601_vm10 = vweird.f32 %v6238_v37 }
 0x921   : > { %vm3602_vm12 = vmor %vm3600_vm11, %vm3601_vm10 }
 0x922   : > { %v3596_v38 = vmul.f32 %v6238_v37, %v3595_v27  ;;  %v3840_v27 = vrot.slane %v3820_v31, 4 }
 0x924   : > { %v3597_v40 = vmul.f32 0.5, %v3596_v38  ;;  %v3841_v42 = vsel %vm2053_vm1, %v3826_v20, %v3840_v27 }
 0x926   : > { %v3598_v43 = vsub.f32 1.5, %v3597_v40 }
 0x928   : > { %v3599_v46 = vmul.f32 %v6238_v37, %v3598_v43 }
 0x92a   : > { %v3603_v35 = vsel %vm3602_vm12, %v6238_v37, %v3599_v46  ;;  %v3838_v37 = vrot.slane %v3826_v20, 4 }
 0x92b   : > { %v3604_v49 = vmul.f32 %v3603_v35, %v3587_v63  ;;  %v3815_v63 = vsel %vm2053_vm1, 0.0, %v3814_v9 }
 0x92c   : > { %v3832_v19 = vrot.slane %v3815_v63, 4  ;;  %v3839_v38 = vsel %vm2053_vm1, %v3838_v37, %v3820_v31 }
 0x92d   : > { %v3606_v39 = vmul.f32 %v3605_v47, %v3604_v49  ;;  %v3845_v46 = vperm.slane %v3839_v38, %v8042_v44  ;;  %v3849_v47 = vperm.slane %v3841_v42, %v8042_v44 }
 0x92e   : > { %v3833_v32 = vsel %vm2053_vm1, %v3832_v19, %v3813_v30 }
 0x92f   : > { %v8497_v50 = vadd.f32 %v3607_v8, %v3606_v39  ;;  %v3837_v62 = vperm.slane %v3833_v32, %v8020_v26  ;;  %v3864_v39 = vrot.slane %v3845_v46, 4  ;;  %v3868_v54 = vrot.slane %v3849_v47, 4 }
 0x931   : > { %5824 = vmatmul.msk.f32.vlgmr.msrb.gmra.mxu2 %vm1980_vm0, %v8497_v50  ;;  %v3850_v40 = vrot.slane %v3837_v62, 4  ;;  %v3853_v43 = vsel %vm2053_vm1, %v3837_v62, %v3852_v11 }
 0x932   : > { %v3861_v35 = vperm.slane %v3853_v43, %v8042_v44 }
 0x933   : > { %v3851_v49 = vsel %vm2053_vm1, %v3850_v40, %v3831_v25  ;;  %v8587_v40 = vld [vmem:[%s7976_s9] ss:$0 sm:$0xff]  ;;  %s8994_s9 = sld [smem:[#allocation90_spill]] }
 0x934   : > { %v3857_v8 = vperm.slane %v3851_v49, %v8042_v44  ;;  %v3866_v51 = vrot.slane %v3861_v35, 4  ;;  %v3869_v59 = vsel %vm2053_vm1, %v3861_v35, %v3868_v54 }
 0x936   : > { %v3862_v55 = vrot.slane %v3857_v8, 4  ;;  %v3865_v41 = vsel %vm2053_vm1, %v3857_v8, %v3864_v39  ;;  %v3867_v56 = vsel %vm2053_vm1, %v3866_v51, %v3849_v47 }
 0x937   : > { %5828 = vmatpush.xpose.msk.msra.mxu2 %vm3080_vm9, %v3865_v41  ;;  %5830 = vmatpush.xpose.msk.msra.mxu3 %vm3080_vm9, %v3867_v56 }
 0x938   : > { %v3863_v60 = vsel %vm2053_vm1, %v3862_v55, %v3845_v46 }
 0x939   : > { %5826 = vmatpush.xpose.msk.msrb.mxu0 %vm3080_vm9, %v3863_v60  ;;  %v6170_v60 = vpack.i.bf16 %v8514_v61, %v8502_v52 }
 0x93d   : > { %5832 = vmatpush.xpose.msk.msra.mxu0 %vm3080_vm9, %v3869_v59 }
 0x9b4   : > { %v3659_v16 = vpop.f32.mrf.mxu2 }
 0x9b5   : > { %v3660_v17 = vadd.f32 %v6187_v0, %v3659_v16  ;;  %v6165_v0 = vpack.i.bf16 %v8483_v13, %v8504_v53 }
 0x9b7   : > { %3692 = vrot.lane.b32.xlu1 %v3660_v17, %s7272_s8  ;;  %3689 = vrot.lane.b32.xlu2 %v3660_v17, %s7270_s28  ;;  %s7281_s8 = smov 2  }
 0x9bf   : > { %3686 = vrot.lane.b32.xlu2 %v3660_v17, %s7274_s2  ;;  %s8995_s2 = sld [smem:[#allocation95_spill]] }
 0xa11   : > { %v3690_v18 = vpop.permute.xlu2 %3689 }
 0xa12   : > { %v3695_v2 = vrot.slane %v3690_v18, 4 }
 0xa14   : > { %v3696_v58 = vsel %vm2053_vm1, %v3695_v2, %v3660_v17 }
 0xa15   : > { %v3700_v3 = vperm.slane %v3696_v58, %v8020_v26 }
 0xa17   : > { %v3709_v5 = vrot.slane %v3700_v3, 4 }
 0xa19   : > { %v3687_v33 = vpop.permute.xlu2 %3686 }
 0xa29   : > { %v3693_v7 = vpop.permute.xlu1 %3692 }
 0xa2a   : > { %v3701_v21 = vrot.slane %v3693_v7, 4 }
 0xa2c   : > { %v3702_v36 = vsel %vm2053_vm1, %v3701_v21, %v3687_v33 }
 0xa2d   : > { %v3706_v4 = vperm.slane %v3702_v36, %v8020_v26 }
 0xa2f   : > { %v3707_v6 = vrot.slane %v3706_v4, 4  ;;  %v3710_v45 = vsel %vm2053_vm1, %v3706_v4, %v3709_v5 }
 0xa30   : > { %v3718_v15 = vperm.slane %v3710_v45, %v8042_v44 }
 0xa31   : > { %v3708_v48 = vsel %vm2053_vm1, %v3707_v6, %v3700_v3 }
 0xa32   : > { %v3714_v10 = vperm.slane %v3708_v48, %v8042_v44  ;;  %v3721_v57 = vrot.slane %v3718_v15, 4 }
 0xa34   : > { %v3719_v12 = vrot.slane %v3714_v10, 4  ;;  %v3722_v9 = vsel %vm2053_vm1, 0.0, %v3721_v57  ;;  %v3723_v1 = vsel %vm2053_vm1, %v3721_v57, %v3714_v10 }
 0xa35   : > { %v3727_v22 = vperm.slane %v3723_v1, %v8020_v26  ;;  %v3728_v23 = vrot.slane %v3722_v9, 4 }
 0xa36   : > { %v3720_v63 = vsel %vm2053_vm1, 0.0, %v3719_v12 }
 0xa37   : > { %v3729_v24 = vsel %vm2053_vm1, %v3728_v23, %v3720_v63  ;;  %v3736_v25 = vrot.slane %v3727_v22, 4 }
 0xa38   : > { %v3733_v19 = vperm.slane %v3729_v24, %v8020_v26 }
 0xa3a   : > { %v3737_v28 = vsel %vm2053_vm1, %v3733_v19, %v3736_v25  ;;  %v3734_v29 = vrot.slane %v3733_v19, 4 }
 0xa3b   : > { %v3745_v30 = vperm.slane %v3737_v28, %v8042_v44 }
 0xa3c   : > { %v3735_v31 = vsel %vm2053_vm1, %v3734_v29, %v3727_v22 }
 0xa3d   : > { %5831 = vmatmul.msk.f32.vlgmr.msra.gmra.mxu3 %vm3080_vm9, %v3745_v30  ;;  %v3741_v20 = vperm.slane %v3735_v31, %v8042_v44  ;;  %v3748_v62 = vrot.slane %v3745_v30, 4 }
 0xa3f   : > { %5827 = vmatmul.msk.f32.vlgmr.msrb.gmra.mxu0 %vm3080_vm9, %v3741_v20  ;;  %v3746_v32 = vrot.slane %v3741_v20, 4  ;;  %v3749_v37 = vsel %vm2053_vm1, 0.0, %v3748_v62 }
 0xa41   : > { %v3747_v11 = vsel %vm2053_vm1, 0.0, %v3746_v32 }
 0xa42   : > { %5829 = vmatmul.msk.f32.vlgmr.msra.gmra.mxu2 %vm3080_vm9, %v3747_v11 }
 0xa47   : > { %5833 = vmatmul.msk.f32.vlgmr.msra.gmra.mxu0 %vm3080_vm9, %v3749_v37 }
 0xabc   : > { %v4015_v27 = vpop.f32.mrf.mxu0 }
 0xabd   : > { %v4096_v38 = vmul.f32 0.35355338, %v4015_v27 }
 0xabf   : > { %v4100_v42 = vadd.f32 %v8587_v40, %v4096_v38 }
 0xac0   : > { %v4067_v43 = vpop.f32.mrf.mxu3 }
 0xac1   : > { %v4098_v46 = vmul.f32 0.35355338, %v4067_v43  ;;  %v4104_v47 = vsel %vm2887_vm3, %v4100_v42, -inf }
 0xac2   : > { %4105 = vmax.xlane.f32.xlu2 %v4104_v47 }
 0xac3   : > { %v4102_v35 = vadd.f32 %v8587_v40, %v4098_v46 }
 0xac4   : > { %v4093_v51 = vpop.f32.mrf.mxu0 }
 0xac5   : > { %v4041_v49 = vpop.f32.mrf.mxu2  ;;  %v4110_v8 = vsel %vm2887_vm3, %v4102_v35, -inf  ;;  %v4099_v55 = vmul.f32 0.35355338, %v4093_v51 }
 0xac6   : > { %v4097_v39 = vmul.f32 0.35355338, %v4041_v49  ;;  %4111 = vmax.xlane.f32.xlu1 %v4110_v8 }
 0xac7   : > { %v4103_v56 = vadd.f32 %v8587_v40, %v4099_v55 }
 0xac8   : > { %v4101_v54 = vadd.f32 %v8587_v40, %v4097_v39 }
 0xac9   : > { %v4113_v59 = vsel %vm2887_vm3, %v4103_v56, -inf }
 0xaca   : > { %v4107_v41 = vsel %vm2887_vm3, %v4101_v54, -inf }
 0xacb   : > { %4108 = vmax.xlane.f32.xlu0 %v4107_v41 }
 0xad3   : > { %4114 = vmax.xlane.f32.xlu0 %v4113_v59 }
 0xada   : > { %6171 = vrot.lane.b32.xlu2 %v6170_v60, %s7276_s1 }
 0xadf   : > { %6166 = vrot.lane.b32.xlu1 %v6165_v0, %s7276_s1 }
 0xb35   : > { %v4106_v16 = vpop.xlane.xlu2 %4105 }
 0xb36   : > { %v4116_v4 = vsub.f32 %v4100_v42, %v4106_v16 }
 0xb38   : > { %v4120_v15 = vmul.f32 1.442695, %v4116_v4 }
 0xb39   : > { %v4112_v17 = vpop.xlane.xlu1 %4111 }
 0xb3a   : > { %v4118_v58 = vsub.f32 %v4102_v35, %v4112_v17 }
 0xb3c   : > { %v4124_v7 = vmul.f32 1.442695, %v4118_v58 }
 0xb3d   : > { %v6172_v21 = vpop.permute.xlu2 %6171 }
 0xb3e   : > { %v4109_v18 = vpop.xlane.xlu0 %4108  ;;  %v6174_v5 = vunpack.i.h.bf16 %v6172_v21  ;;  %v6173_v52 = vunpack.i.l.bf16 %v6172_v21 }
 0xb3f   : > { %v4117_v2 = vsub.f32 %v4101_v54, %v4109_v18 }
 0xb40   : > { %v3896_v6 = vrot.slane %v6174_v5, 4  ;;  %v3894_v45 = vrot.slane %v6173_v52, 4 }
 0xb41   : > { %v4122_v3 = vmul.f32 1.442695, %v4117_v2 }
 0xb42   : > { %v3895_v10 = vsel %vm2053_vm1, %v3894_v45, %v6174_v5  ;;  %v3897_v57 = vsel %vm2053_vm1, %v6173_v52, %v3896_v6 }
 0xb43   : > { %6239 = vpow2.f32 %v4122_v3  ;;  %v3901_v24 = vperm.slane %v3895_v10, %v8020_v26  ;;  %v3905_v25 = vperm.slane %v3897_v57, %v8020_v26 }
 0xb44   : > { %6241 = vpow2.f32 %v4124_v7 }
 0xb45   : > { %v3906_v20 = vrot.slane %v3901_v24, 4  ;;  %v3918_v32 = vrot.slane %v3905_v25, 4 }
 0xb46   : > { %v4115_v33 = vpop.xlane.xlu0 %4114 }
 0xb47   : > { %v4119_v36 = vsub.f32 %v4103_v56, %v4115_v33 }
 0xb49   : > { %v8603_v61 = vpop.eup %6239  ;;  %v4126_v13 = vmul.f32 1.442695, %v4119_v36 }
 0xb4a   : > { %v4131_v53 = vsel %vm2887_vm3, %v8603_v61, 0.0  ;;  %v8607_v48 = vpop.eup %6241 }
 0xb4b   : > { %6243 = vpow2.f32 %v4126_v13  ;;  %4132 = vadd.xlane.f32.xlu0 %v4131_v53  ;;  %v4134_v23 = vsel %vm2887_vm3, %v8607_v48, 0.0 }
 0xb4c   : > { %6245 = vpow2.f32 %v4120_v15 }
 0xb51   : > { %v8611_v12 = vpop.eup %6243  ;;  %v6167_v9 = vpop.permute.xlu1 %6166 }
 0xb52   : > { %v6169_v1 = vunpack.i.h.bf16 %v6167_v9  ;;  %v6168_v22 = vunpack.i.l.bf16 %v6167_v9  ;;  %v4137_v63 = vsel %vm2887_vm3, %v8611_v12, 0.0  ;;  %v8621_v31 = vpop.eup %6245 }
 0xb53   : > { %4135 = vadd.xlane.f32.xlu0 %v4134_v23  ;;  %4138 = vadd.xlane.f32.xlu1 %v4137_v63  ;;  %v4128_v47 = vsel %vm2887_vm3, %v8621_v31, 0.0 }
 0xb54   : > { %v3884_v19 = vrot.slane %v6169_v1, 4  ;;  %v3882_v28 = vrot.slane %v6168_v22, 4 }
 0xb56   : > { %v3883_v29 = vsel %vm2053_vm1, %v3882_v28, %v6169_v1  ;;  %v3885_v30 = vsel %vm2053_vm1, %v6168_v22, %v3884_v19 }
 0xb57   : > { %v3889_v11 = vperm.slane %v3883_v29, %v8020_v26  ;;  %v3893_v62 = vperm.slane %v3885_v30, %v8020_v26 }
 0xb59   : > { %v3907_v37 = vsel %vm2053_vm1, %v3906_v20, %v3889_v11  ;;  %v3908_v27 = vrot.slane %v3889_v11, 4  ;;  %v3919_v38 = vsel %vm2053_vm1, %v3918_v32, %v3893_v62  ;;  %v3920_v42 = vrot.slane %v3893_v62, 4  ;;  %v3620_v20 = vld [vmem:[#allocation12 + $0x8] sm:$0xff] }
 0xb5a   : > { %v3913_v43 = vperm.slane %v3907_v37, %v8042_v44  ;;  %v3925_v46 = vperm.slane %v3919_v38, %v8042_v44 }
 0xb5b   : > { %v3909_v35 = vsel %vm2053_vm1, %v3901_v24, %v3908_v27  ;;  %v3921_v49 = vsel %vm2053_vm1, %v3905_v25, %v3920_v42  ;;  %4129 = vadd.xlane.f32.xlu0 %v4128_v47 }
 0xb5c   : > { %v3917_v8 = vperm.slane %v3909_v35, %v8042_v44  ;;  %v3929_v39 = vperm.slane %v3921_v49, %v8042_v44  ;;  %v3930_v51 = vrot.slane %v3913_v43, 4  ;;  %v3934_v55 = vrot.slane %v3925_v46, 4 }
 0xb5e   : > { %v3932_v54 = vrot.slane %v3917_v8, 4  ;;  %v3936_v41 = vrot.slane %v3929_v39, 4  ;;  %v3935_v58 = vsel %vm2053_vm1, 0.0, %v3934_v55  ;;  %v3931_v3 = vsel %vm2053_vm1, 0.0, %v3930_v51 }
 0xb60   : > { %v3933_v56 = vsel %vm2053_vm1, 0.0, %v3932_v54  ;;  %v3937_v59 = vsel %vm2053_vm1, 0.0, %v3936_v41  ;;  %v3949_v60 = vsel %vm2053_vm1, %v3936_v41, %v3925_v46  ;;  %v3938_v0 = vsel %vm2053_vm1, %v3932_v54, %v3913_v43 }
 0xb61   : > { %v3943_v16 = vrot.slane %v3933_v56, 4  ;;  %v3954_v17 = vrot.slane %v3937_v59, 4  ;;  %v3942_v18 = vperm.slane %v3938_v0, %v8020_v26  ;;  %v3953_v2 = vperm.slane %v3949_v60, %v8020_v26 }
 0xb63   : > { %v3944_v7 = vsel %vm2053_vm1, %v3943_v16, %v3931_v3  ;;  %v3955_v21 = vsel %vm2053_vm1, %v3954_v17, %v3935_v58  ;;  %v3962_v33 = vrot.slane %v3942_v18, 4  ;;  %v3974_v36 = vrot.slane %v3953_v2, 4 }
 0xb64   : > { %v3948_v5 = vperm.slane %v3944_v7, %v8020_v26  ;;  %v3959_v52 = vperm.slane %v3955_v21, %v8020_v26 }
 0xb66   : > { %v3963_v4 = vsel %vm2053_vm1, %v3948_v5, %v3962_v33  ;;  %v3975_v13 = vsel %vm2053_vm1, %v3959_v52, %v3974_v36  ;;  %v3960_v53 = vrot.slane %v3948_v5, 4  ;;  %v3972_v6 = vrot.slane %v3959_v52, 4 }
 0xb67   : > { %v3971_v45 = vperm.slane %v3963_v4, %v8042_v44  ;;  %v3983_v15 = vperm.slane %v3975_v13, %v8042_v44 }
 0xb68   : > { %v3961_v10 = vsel %vm2053_vm1, %v3960_v53, %v3942_v18  ;;  %v3973_v57 = vsel %vm2053_vm1, %v3972_v6, %v3953_v2 }
 0xb69   : > { %v3988_v9 = vrot.slane %v3983_v15, 4  ;;  %v3990_v1 = vrot.slane %v3971_v45, 4  ;;  %v3967_v22 = vperm.slane %v3961_v10, %v8042_v44  ;;  %v3979_v23 = vperm.slane %v3973_v57, %v8042_v44 }
 0xb6b   : > { %v3989_v63 = vsel %vm2053_vm1, %v3988_v9, %v3971_v45  ;;  %v3991_v24 = vsel %vm2053_vm1, %v3983_v15, %v3990_v1  ;;  %v3984_v25 = vrot.slane %v3979_v23, 4  ;;  %v3986_v19 = vrot.slane %v3967_v22, 4 }
 0xb6c   : > { %4264 = vmatpush.msrb.mxu3 %v3989_v63  ;;  %4287 = vmatpush.msrb.mxu0 %v3991_v24  ;;  %v3619_v63 = vld [vmem:[#allocation12] sm:$0xff] }
 0xb6d   : > { %v3985_v28 = vsel %vm2053_vm1, %v3984_v25, %v3967_v22  ;;  %v3987_v29 = vsel %vm2053_vm1, %v3979_v23, %v3986_v19 }
 0xb6e   : > { %4218 = vmatpush.msrb.mxu1 %v3985_v28  ;;  %4241 = vmatpush.msrb.mxu2 %v3987_v29 }
 0xb70   : > { %4333 = vmatpush.msra.mxu2 %v3620_v20  ;;  %4310 = vmatpush.msra.mxu1 %v3619_v63  ;;  %v4509_v63 = vld [vmem:[#allocation25 + $0x10] sm:$0xff] }
 0xbbe   : > { %v4133_v30 = vpop.xlane.xlu0 %4132 }
 0xbbf   : > { %6247 = vrcp.f32 %v4133_v30  ;;  %v4166_v38 = vand.u32 2147483648, %v4133_v30  ;;  %v4164_v43 = vand.u32 2147483647, %v4133_v30  ;;  %vm4160_vm14 = vweird.f32 %v4133_v30 }
 0xbc1   : > { %v4167_v35 = vor.u32 1.1754944e-38, %v4166_v38  ;;  %vm4165_vm2 = vcmp.eq.f32.partialorder %v4164_v43, 8.507059e+37  ;;  %v6188_v38 = vld [vmem:[#allocation13] ss:$0 sm:$0xff] }
 0xbc5   : > { %v6248_v32 = vpop.eup %6247 }
 0xbc6   : > { %v4156_v11 = vmul.f32 %v6248_v32, %v4133_v30  ;;  %v4139_v62 = vpop.xlane.xlu1 %4138  ;;  %v4136_v37 = vpop.xlane.xlu0 %4135  ;;  %vm4161_vm13 = vweird.f32 %v6248_v32 }
 0xbc7   : > { %6249 = vrcp.f32 %v4139_v62  ;;  %vm4162_vm4 = vmor %vm4160_vm14, %vm4161_vm13  ;;  %v4196_v56 = vand.u32 2147483648, %v4139_v62  ;;  %v4194_v16 = vand.u32 2147483647, %v4139_v62  ;;  %v4181_v17 = vand.u32 2147483648, %v4136_v37 }
 0xbc8   : > { %v4157_v27 = vsub.f32 1.0, %v4156_v11  ;;  %6251 = vrcp.f32 %v4136_v37  ;;  %v4179_v2 = vand.u32 2147483647, %v4136_v37  ;;  %vm4190_vm7 = vweird.f32 %v4139_v62 }
 0xbc9   : > { %v4197_v7 = vor.u32 1.1754944e-38, %v4196_v56  ;;  %vm4175_vm11 = vweird.f32 %v4136_v37  ;;  %vm4195_vm12 = vcmp.eq.f32.partialorder %v4194_v16, 8.507059e+37  ;;  %v3626_v56 = vld [vmem:[#allocation16 + $0x8] sm:$0xff] }
 0xbca   : > { %v4158_v42 = vmul.f32 %v6248_v32, %v4157_v27  ;;  %vm4180_vm14 = vcmp.eq.f32.partialorder %v4179_v2, 8.507059e+37 }
 0xbcc   : > { %v4159_v46 = vadd.f32 %v6248_v32, %v4158_v42 }
 0xbcd   : > { %v6250_v47 = vpop.eup %6249 }
 0xbce   : > { %v6252_v49 = vpop.eup %6251  ;;  %v4163_v8 = vsel %vm4162_vm4, %v6248_v32, %v4159_v46  ;;  %v4186_v39 = vmul.f32 %v6250_v47, %v4139_v62  ;;  %v4130_v51 = vpop.xlane.xlu0 %4129  ;;  %vm4191_vm5 = vweird.f32 %v6250_v47 }
 0xbcf   : > { %v4168_v54 = vsel %vm4165_vm2, %v4167_v35, %v4163_v8  ;;  %v4171_v55 = vmul.f32 %v6252_v49, %v4136_v37  ;;  %6253 = vrcp.f32 %v4130_v51  ;;  %vm4176_vm6 = vweird.f32 %v6252_v49  ;;  %vm4192_vm10 = vmor %vm4190_vm7, %vm4191_vm5 }
 0xbd0   : > { %v4187_v41 = vsub.f32 1.0, %v4186_v39  ;;  %v4169_v60 = vmul.f32 %v8603_v61, %v4168_v54  ;;  %vm4177_vm13 = vmor %vm4175_vm11, %vm4176_vm6  ;;  %v4182_v61 = vor.u32 1.1754944e-38, %v4181_v17  ;;  %v4151_v6 = vand.u32 2147483648, %v4130_v51 }
 0xbd1   : > { %v4172_v59 = vsub.f32 1.0, %v4171_v55  ;;  %v4149_v10 = vand.u32 2147483647, %v4130_v51  ;;  %vm4145_vm2 = vweird.f32 %v4130_v51  ;;  %v3628_v55 = vld [vmem:[#allocation16 + $0x18] sm:$0xff] }
 0xbd2   : > { %v4188_v0 = vmul.f32 %v6250_v47, %v4187_v41  ;;  %5835 = vmatmul.msk.f32.vlgmr.msrb.gmra.mxu2 %vm3080_vm9, %v4169_v60  ;;  %v4152_v9 = vor.u32 1.1754944e-38, %v4151_v6  ;;  %v3627_v41 = vld [vmem:[#allocation16 + $0x10] sm:$0xff]  ;;  %v3633_v60 = vld [vmem:[#allocation19 + $0x18] sm:$0xff]  ;;  %v3630_v6 = vld [vmem:[#allocation19] sm:$0xff] }
 0xbd3   : > { %v4173_v18 = vmul.f32 %v6252_v49, %v4172_v59  ;;  %vm4150_vm6 = vcmp.eq.f32.partialorder %v4149_v10, 8.507059e+37  ;;  %v3625_v59 = vld [vmem:[#allocation16] sm:$0xff]  ;;  %4467 = vmatpush.msrb.mxu2 %v3633_v60 }
 0xbd4   : > { %v4189_v58 = vadd.f32 %v6250_v47, %v4188_v0  ;;  %v3632_v0 = vld [vmem:[#allocation19 + $0x10] sm:$0xff] }
 0xbd5   : > { %v6254_v3 = vpop.eup %6253  ;;  %v4174_v21 = vadd.f32 %v6252_v49, %v4173_v18  ;;  %4468 = vmatpush.msrb.mxu2 %v3632_v0 }
 0xbd6   : > { %v4193_v33 = vsel %vm4192_vm10, %v6250_v47, %v4189_v58  ;;  %v4141_v36 = vmul.f32 %v6254_v3, %v4130_v51  ;;  %vm4146_vm4 = vweird.f32 %v6254_v3 }
 0xbd7   : > { %v4198_v5 = vsel %vm4195_vm12, %v4197_v7, %v4193_v33  ;;  %v4178_v52 = vsel %vm4177_vm13, %v6252_v49, %v4174_v21  ;;  %vm4147_vm5 = vmor %vm4145_vm2, %vm4146_vm4  ;;  %v3624_v7 = vld [vmem:[#allocation15] sm:$0x3]  ;;  %vm4813_vm4 = vcmask 130048  }
 0xbd8   : > { %v4183_v4 = vsel %vm4180_vm14, %v4182_v61, %v4178_v52  ;;  %v4142_v13 = vsub.f32 1.0, %v4141_v36  ;;  %v4199_v53 = vmul.f32 %v8611_v12, %v4198_v5  ;;  %v3621_v12 = vld [vmem:[#allocation12 + $0x10] sm:$0xff]  ;;  %v4418_v61 = vperm.slane %v3624_v7, 0 }
 0xbd9   : > { %v4184_v45 = vmul.f32 %v8607_v48, %v4183_v4  ;;  %v3622_v48 = vld [vmem:[#allocation12 + $0x18] sm:$0xff]  ;;  %4356 = vmatpush.msra.mxu3 %v3621_v12  ;;  %v4420_v52 = vperm.slane %v3624_v7, 1 }
 0xbda   : > { %v4143_v15 = vmul.f32 %v6254_v3, %v4142_v13  ;;  %5837 = vmatmul.msk.f32.vlgmr.msrb.gmra.mxu0 %vm3080_vm9, %v4199_v53  ;;  %v3631_v53 = vld [vmem:[#allocation19 + $0x8] sm:$0xff] }
 0xbdb   : > { %5836 = vmatmul.msk.f32.vlgmr.msrb.gmra.mxu3 %vm3080_vm9, %v4184_v45  ;;  %4379 = vmatpush.msra.mxu0 %v3622_v48  ;;  %v6189_v45 = vld [vmem:[#allocation18] ss:$0 sm:$0xff] }
 0xbdc   : > { %v4144_v57 = vadd.f32 %v6254_v3, %v4143_v15  ;;  %4469 = vmatpush.msrb.mxu2 %v3631_v53  ;;  %v4510_v48 = vld [vmem:[#allocation25 + $0x18] sm:$0xff] }
 0xbdd   : > { %4568 = vmatpush.msrb.mxu0 %v4510_v48 }
 0xbde   : > { %v4148_v1 = vsel %vm4147_vm5, %v6254_v3, %v4144_v57  ;;  %4470 = vmatpush.msrb.mxu2 %v3630_v6 }
 0xbdf   : > { %v4153_v22 = vsel %vm4150_vm6, %v4152_v9, %v4148_v1  ;;  %v6190_v9 = vld [vmem:[#allocation21] ss:$0 sm:$0xff]  ;;  %4569 = vmatpush.msrb.mxu0 %v4509_v63 }
 0xbe0   : > { %v4154_v23 = vmul.f32 %v8621_v31, %v4153_v22 }
 0xbe2   : > { %5834 = vmatmul.msk.f32.vlgmr.msrb.gmra.mxu1 %vm3080_vm9, %v4154_v23 }
 0xbe3   : > { %4440 = vmatpush.msrb.mxu1 %v3628_v55 }
 0xbe5   : > { %4441 = vmatpush.msrb.mxu1 %v3627_v41 }
 0xbe7   : > { %4442 = vmatpush.msrb.mxu1 %v3626_v56 }
 0xbe9   : > { %4443 = vmatpush.msrb.mxu1 %v3625_v59 }
 0xc55   : > { %v4243_v24 = vpop.f32.mrf.mxu2 }
 0xc56   : > { %5839 = vmatmul.msk.f32.vlgmr.msra.gmra.mxu2 %vm3080_vm9, %v4243_v24  ;;  %v4508_v24 = vld [vmem:[#allocation25 + $0x8] sm:$0xff] }
 0xc57   : > { %v4289_v25 = vpop.f32.mrf.mxu0  ;;  %4570 = vmatpush.msrb.mxu0 %v4508_v24 }
 0xc58   : > { %5841 = vmatmul.msk.f32.vlgmr.msra.gmra.mxu0 %vm3080_vm9, %v4289_v25  ;;  %v4507_v25 = vld [vmem:[#allocation25] sm:$0xff] }
 0xc59   : > { %4571 = vmatpush.msrb.mxu0 %v4507_v25 }
 0xc5e   : > { %v4266_v19 = vpop.f32.mrf.mxu3 }
 0xc5f   : > { %5840 = vmatmul.msk.f32.vlgmr.msra.gmra.mxu3 %vm3080_vm9, %v4266_v19  ;;  %v4220_v28 = vpop.f32.mrf.mxu1 }
 0xc60   : > { %5838 = vmatmul.msk.f32.vlgmr.msra.gmra.mxu1 %vm3080_vm9, %v4220_v28  ;;  %5845 = vmatmul.msk.f32.vlgmr.msrb.gmra.mxu0 %vm1980_vm0, %v8477_v14 }
 0xcd5   : > { %v4381_v32 = vpop.f32.mrf.mxu0 }
 0xcd6   : > { %v4389_v42 = vsel %vm3474_vm15, %v4381_v32, 0.0  ;;  %v4504_v32 = vld [vmem:[%s8994_s9 + $0x10] sm:$0xff] }
 0xcd9   : > { %v4335_v29 = vpop.f32.mrf.mxu2 }
 0xcda   : > { %v4385_v20 = vsel %vm3474_vm15, %v4335_v29, 0.0 }
 0xcdd   : > { %v4312_v31 = vpop.f32.mrf.mxu1 }
 0xcde   : > { %v4384_v30 = vsel %vm3474_vm15, %v4312_v31, 0.0 }
 0xcdf   : > { %v4386_v11 = vadd.f32 %v4385_v20, %v4384_v30  ;;  %v4505_v20 = vld [vmem:[%s8994_s9 + $0x18] sm:$0xff] }
 0xce0   : > { %4545 = vmatpush.msrb.mxu3 %v4505_v20 }
 0xce2   : > { %v4358_v62 = vpop.f32.mrf.mxu3  ;;  %4546 = vmatpush.msrb.mxu3 %v4504_v32 }
 0xce3   : > { %v4387_v37 = vsel %vm3474_vm15, %v4358_v62, 0.0  ;;  %v4573_v62 = vpop.f32.mrf.mxu0 }
 0xce4   : > { %v4388_v27 = vadd.f32 %v4387_v37, %v4386_v11  ;;  %v6191_v11 = vld [vmem:[#allocation27] ss:$0 sm:$0xff] }
 0xce5   : > { %v8689_v37 = vadd.f32 %v6191_v11, %v4573_v62 }
 0xce6   : > { %v4390_v43 = vadd.f32 %v4389_v42, %v4388_v27  ;;  %v4503_v27 = vld [vmem:[%s8994_s9 + $0x8] sm:$0xff] }
 0xce7   : > { %4547 = vmatpush.msrb.mxu3 %v4503_v27  ;;  %v4627_v0 = vrot.slane %v8689_v37, 4 }
 0xce8   : > { %v4394_v46 = vadd.f32 %v6188_v38, %v4390_v43  ;;  %v4502_v38 = vld [vmem:[%s8994_s9] sm:$0xff] }
 0xce9   : > { %4548 = vmatpush.msrb.mxu3 %v4502_v38 }
 0xcea   : > { %v4395_v47 = vadd.f32 %v4394_v46, %v8497_v50 }
 0xcec   : > { %v4396_v35 = vsel %vm3474_vm15, %v4395_v47, 0.0 }
 0xced   : > { %4397 = vadd.xlane.f32.xlu2 %v4396_v35 }
 0xd60   : > { %v4398_v49 = vpop.xlane.xlu2 %4397 }
 0xd61   : > { %v4399_v8 = vmul.f32 %v4398_v49, %v8451_v34 }
 0xd63   : > { %v4400_v39 = vsub.f32 %v4395_v47, %v4399_v8  ;;  %v3635_v8 = vld [vmem:[#allocation22] sm:$0x3] }
 0xd64   : > { %v4500_v56 = vperm.slane %v3635_v8, 1 }
 0xd65   : > { %v4401_v51 = vmul.f32 %v4400_v39, %v4400_v39 }
 0xd67   : > { %v4402_v54 = vsel %vm3474_vm15, %v4401_v51, 0.0 }
 0xd68   : > { %4403 = vadd.xlane.f32.xlu0 %v4402_v54  ;;  %v4498_v54 = vperm.slane %v3635_v8, 0 }
 0xddb   : > { %v4404_v50 = vpop.xlane.xlu0 %4403 }
 0xddc   : > { %v4405_v16 = vmul.f32 %v4404_v50, %v8451_v34  ;;  %v4628_v50 = vsel %vm2053_vm1, 0.0, %v4627_v0 }
 0xdde   : > { %v4406_v17 = vadd.f32 1e-05, %v4405_v16  ;;  %v4632_v16 = vperm.slane %v8689_v37, %v8020_v26 }
 0xde0   : > { %6255 = vrsqrt.f32 %v4406_v17  ;;  %vm4413_vm10 = vweird.f32 %v4406_v17 }
 0xde6   : > { %v6256_v18 = vpop.eup %6255 }
 0xde7   : > { %v4408_v2 = vmul.f32 %v6256_v18, %v4406_v17  ;;  %vm4414_vm7 = vweird.f32 %v6256_v18  ;;  %v4636_v17 = vperm.slane %v4628_v50, %v8020_v26 }
 0xde8   : > { %vm4415_vm11 = vmor %vm4413_vm10, %vm4414_vm7 }
 0xde9   : > { %v4409_v58 = vmul.f32 %v6256_v18, %v4408_v2  ;;  %v4661_v7 = vrot.slane %v4636_v17, 4 }
 0xdeb   : > { %v4410_v3 = vmul.f32 0.5, %v4409_v58 }
 0xded   : > { %v4411_v21 = vsub.f32 1.5, %v4410_v3 }
 0xdef   : > { %v4412_v33 = vmul.f32 %v6256_v18, %v4411_v21 }
 0xdf1   : > { %v4416_v36 = vsel %vm4415_vm11, %v6256_v18, %v4412_v33  ;;  %v4649_v18 = vrot.slane %v4632_v16, 4 }
 0xdf2   : > { %v4417_v5 = vmul.f32 %v4416_v36, %v4400_v39 }
 0xdf4   : > { %v4419_v4 = vmul.f32 %v4418_v61, %v4417_v5 }
 0xdf6   : > { %v4421_v13 = vadd.f32 %v4420_v52, %v4419_v4 }
 0xdf8   : > { %5842 = vmatmul.msk.f32.vlgmr.msrb.gmra.mxu1 %vm1980_vm0, %v4421_v13 }
 0xe75   : > { %v4445_v15 = vpop.f32.mrf.mxu1 }
 0xe76   : > { %v4446_v10 = vadd.f32 %v6189_v45, %v4445_v15 }
 0xe78   : > { %v4448_v57 = vmax.f32 %v4446_v10, 0.0 }
 0xe7a   : > { %5843 = vmatmul.msk.f32.vlgmr.msrb.gmra.mxu2 %vm1980_vm0, %v4448_v57 }
 0xefd   : > { %v4472_v1 = vpop.f32.mrf.mxu2 }
 0xefe   : > { %v4473_v22 = vadd.f32 %v6190_v9, %v4472_v1 }
 0xf00   : > { %v4475_v23 = vadd.f32 %v4473_v22, %v4421_v13 }
 0xf02   : > { %v4476_v12 = vsel %vm3474_vm15, %v4475_v23, 0.0 }
 0xf03   : > { %4477 = vadd.xlane.f32.xlu0 %v4476_v12 }
 0xf76   : > { %v4478_v19 = vpop.xlane.xlu0 %4477 }
 0xf77   : > { %v4479_v28 = vmul.f32 %v4478_v19, %v8451_v34 }
 0xf79   : > { %v4480_v31 = vsub.f32 %v4475_v23, %v4479_v28 }
 0xf7b   : > { %v4481_v29 = vmul.f32 %v4480_v31, %v4480_v31 }
 0xf7d   : > { %v4482_v30 = vsel %vm3474_vm15, %v4481_v29, 0.0 }
 0xf7e   : > { %4483 = vadd.xlane.f32.xlu0 %v4482_v30 }
 0xf92   : > { %4624 = vrot.lane.b32.xlu0 %v8689_v37, %s7270_s28 }
 0xff1   : > { %v4484_v14 = vpop.xlane.xlu0 %4483 }
 0xff2   : > { %v4485_v42 = vmul.f32 %v4484_v14, %v8451_v34 }
 0xff4   : > { %v4486_v43 = vadd.f32 1e-05, %v4485_v42 }
 0xff6   : > { %6257 = vrsqrt.f32 %v4486_v43  ;;  %vm4493_vm13 = vweird.f32 %v4486_v43 }
 0xffc   : > { %v6258_v46 = vpop.eup %6257 }
 0xffd   : > { %v4488_v47 = vmul.f32 %v6258_v46, %v4486_v43  ;;  %vm4494_vm12 = vweird.f32 %v6258_v46 }
 0xffe   : > { %vm4495_vm14 = vmor %vm4493_vm13, %vm4494_vm12 }
 0xfff   : > { %v4489_v35 = vmul.f32 %v6258_v46, %v4488_v47 }
0x1001   : > { %v4490_v49 = vmul.f32 0.5, %v4489_v35 }
0x1003   : > { %v4491_v39 = vsub.f32 1.5, %v4490_v49  ;;  %v6192_v49 = vld [vmem:[#allocation24] ss:$0 sm:$0xff] }
0x1004   : > { %v8705_v2 = vpop.permute.xlu0 %4624 }
0x1005   : > { %v4492_v51 = vmul.f32 %v6258_v46, %v4491_v39  ;;  %v4637_v58 = vrot.slane %v8705_v2, 4  ;;  %v4642_v3 = vperm.slane %v8705_v2, %v8020_v26 }
0x1007   : > { %v4496_v55 = vsel %vm4495_vm14, %v6258_v46, %v4492_v51  ;;  %v4638_v21 = vsel %vm2053_vm1, 0.0, %v4637_v58  ;;  %v4647_v33 = vrot.slane %v4642_v3, 4  ;;  %v4650_v61 = vsel %vm2053_vm1, %v4642_v3, %v4649_v18 }
0x1008   : > { %v4497_v41 = vmul.f32 %v4496_v55, %v4480_v31  ;;  %v4646_v36 = vperm.slane %v4638_v21, %v8020_v26  ;;  %v4658_v5 = vperm.slane %v4650_v61, %v8042_v44 }
0x1009   : > { %v4648_v52 = vsel %vm2053_vm1, %v4647_v33, %v4632_v16 }
0x100a   : > { %v4499_v59 = vmul.f32 %v4498_v54, %v4497_v41  ;;  %v4659_v4 = vrot.slane %v4646_v36, 4  ;;  %v4662_v13 = vsel %vm2053_vm1, %v4646_v36, %v4661_v7  ;;  %v4654_v6 = vperm.slane %v4648_v52, %v8042_v44 }
0x100b   : > { %v4670_v53 = vperm.slane %v4662_v13, %v8042_v44  ;;  %v4673_v15 = vrot.slane %v4658_v5, 4 }
0x100c   : > { %v8696_v60 = vadd.f32 %v4500_v56, %v4499_v59  ;;  %v4660_v45 = vsel %vm2053_vm1, %v4659_v4, %v4636_v17  ;;  %v4671_v9 = vrot.slane %v4654_v6, 4 }
0x100d   : > { %v4666_v10 = vperm.slane %v4660_v45, %v8042_v44  ;;  %v4677_v57 = vrot.slane %v4670_v53, 4  ;;  %v4674_v1 = vsel %vm2053_vm1, 0.0, %v4673_v15  ;;  %v4679_v25 = vsel %vm2053_vm1, %v4673_v15, %v4654_v6 }
0x100e   : > { %5844 = vmatmul.msk.f32.vlgmr.msrb.gmra.mxu3 %vm1980_vm0, %v8696_v60  ;;  %v4684_v12 = vrot.slane %v4674_v1, 4  ;;  %v4672_v48 = vsel %vm2053_vm1, 0.0, %v4671_v9  ;;  %v4683_v31 = vperm.slane %v4679_v25, %v8020_v26 }
0x100f   : > { %v4675_v22 = vrot.slane %v4666_v10, 4  ;;  %v4678_v23 = vsel %vm2053_vm1, 0.0, %v4677_v57  ;;  %v4690_v28 = vsel %vm2053_vm1, %v4677_v57, %v4666_v10 }
0x1010   : > { %v4695_v63 = vrot.slane %v4678_v23, 4  ;;  %v4685_v19 = vsel %vm2053_vm1, %v4684_v12, %v4672_v48  ;;  %v4694_v20 = vperm.slane %v4690_v28, %v8020_v26  ;;  %v6175_v23 = vpack.i.bf16 %v8705_v2, %v8689_v37 }
0x1011   : > { %v4676_v24 = vsel %vm2053_vm1, 0.0, %v4675_v22  ;;  %v4689_v29 = vperm.slane %v4685_v19, %v8020_v26 }
0x1012   : > { %v4696_v30 = vsel %vm2053_vm1, %v4695_v63, %v4676_v24 }
0x1013   : > { %v4700_v32 = vperm.slane %v4696_v30, %v8020_v26  ;;  %v4701_v11 = vrot.slane %v4689_v29, 4 }
0x1015   : > { %v4707_v62 = vrot.slane %v4700_v32, 4  ;;  %v4702_v27 = vsel %vm2053_vm1, %v4701_v11, %v4683_v31 }
0x1016   : > { %v4706_v38 = vperm.slane %v4702_v27, %v8042_v44 }
0x1017   : > { %v4708_v14 = vsel %vm2053_vm1, %v4707_v62, %v4694_v20 }
0x1018   : > { %v4712_v42 = vperm.slane %v4708_v14, %v8042_v44  ;;  %v4715_v43 = vrot.slane %v4706_v38, 4 }
0x101a   : > { %v4713_v46 = vrot.slane %v4712_v42, 4  ;;  %v4716_v47 = vsel %vm2053_vm1, %v4712_v42, %v4715_v43 }
0x101b   : > { %5848 = vmatpush.xpose.msk.msra.mxu2 %vm4813_vm4, %v4716_v47 }
0x101c   : > { %v4714_v35 = vsel %vm2053_vm1, %v4713_v46, %v4706_v38 }
0x101d   : > { %5846 = vmatpush.xpose.msk.msra.mxu1 %vm4813_vm4, %v4714_v35 }
0x1091   : > { %v4550_v8 = vpop.f32.mrf.mxu3 }
0x1092   : > { %v4551_v39 = vadd.f32 %v6192_v49, %v4550_v8 }
0x1094   : > { %4577 = vrot.lane.b32.xlu1 %v4551_v39, %s7270_s28  ;;  %v4582_v51 = vperm.slane %v4551_v39, %v8020_v26  ;;  %s8996_s28 = sld [smem:[#allocation100_spill]] }
0x1096   : > { %v4590_v55 = vrot.slane %v4582_v51, 4 }
0x1106   : > { %v4578_v54 = vpop.permute.xlu1 %4577 }
0x1107   : > { %v4587_v41 = vperm.slane %v4578_v54, %v8020_v26 }
0x1109   : > { %v4588_v56 = vrot.slane %v4587_v41, 4  ;;  %v4591_v59 = vsel %vm2053_vm1, %v4587_v41, %v4590_v55 }
0x110a   : > { %v4599_v0 = vperm.slane %v4591_v59, %v8042_v44 }
0x110b   : > { %v4589_v50 = vsel %vm2053_vm1, %v4588_v56, %v4582_v51 }
0x110c   : > { %v4595_v16 = vperm.slane %v4589_v50, %v8042_v44  ;;  %v4602_v17 = vrot.slane %v4599_v0, 4 }
0x110e   : > { %v4600_v18 = vrot.slane %v4595_v16, 4  ;;  %v4603_v58 = vsel %vm2053_vm1, 0.0, %v4602_v17  ;;  %v4604_v21 = vsel %vm2053_vm1, %v4602_v17, %v4595_v16 }
0x110f   : > { %v4609_v3 = vrot.slane %v4603_v58, 4  ;;  %v4608_v36 = vperm.slane %v4604_v21, %v8020_v26 }
0x1110   : > { %v4601_v7 = vsel %vm2053_vm1, 0.0, %v4600_v18 }
0x1111   : > { %v4610_v33 = vsel %vm2053_vm1, %v4609_v3, %v4601_v7 }
0x1112   : > { %v4614_v61 = vperm.slane %v4610_v33, %v8020_v26 }
0x1114   : > { %v4615_v5 = vrot.slane %v4614_v61, 4 }
0x1116   : > { %v4616_v52 = vsel %vm2053_vm1, %v4615_v5, %v4608_v36 }
0x1117   : > { %v4620_v4 = vperm.slane %v4616_v52, %v8042_v44 }
0x1119   : > { %5847 = vmatmul.msk.f32.vlgmr.msra.gmra.mxu1 %vm4813_vm4, %v4620_v4  ;;  %v4621_v13 = vrot.slane %v4620_v4, 4 }
0x111b   : > { %v4622_v53 = vsel %vm2053_vm1, 0.0, %v4621_v13 }
0x111c   : > { %5849 = vmatmul.msk.f32.vlgmr.msra.gmra.mxu2 %vm4813_vm4, %v4622_v53 }
0x1196   : > { %v4837_v6 = vpop.f32.mrf.mxu1 }
0x1197   : > { %v4866_v45 = vmul.f32 0.25, %v4837_v6 }
0x1199   : > { %v4868_v15 = vadd.f32 %v8587_v40, %v4866_v45 }
0x119b   : > { %v4870_v10 = vsel %vm2887_vm3, %v4868_v15, -inf }
0x119c   : > { %4871 = vmax.xlane.f32.xlu2 %v4870_v10 }
0x119f   : > { %v4863_v57 = vpop.f32.mrf.mxu2 }
0x11a0   : > { %v4867_v9 = vmul.f32 0.25, %v4863_v57 }
0x11a2   : > { %v4869_v1 = vadd.f32 %v8587_v40, %v4867_v9 }
0x11a4   : > { %v4873_v22 = vsel %vm2887_vm3, %v4869_v1, -inf }
0x11a5   : > { %4874 = vmax.xlane.f32.xlu0 %v4873_v22 }
0x11b4   : > { %6176 = vrot.lane.b32.xlu2 %v6175_v23, %s7276_s1  ;;  %s8997_s1 = sld [smem:[#allocation102_spill]] }
0x120f   : > { %v4872_v12 = vpop.xlane.xlu2 %4871 }
0x1210   : > { %v4876_v48 = vsub.f32 %v4868_v15, %v4872_v12 }
0x1212   : > { %v4878_v63 = vmul.f32 1.442695, %v4876_v48  ;;  %v4515_v48 = vld [vmem:[#allocation28 + $0x18] sm:$0xff] }
0x1213   : > { %5004 = vmatpush.msrb.mxu2 %v4515_v48 }
0x1214   : > { %6259 = vpow2.f32 %v4878_v63  ;;  %v4513_v63 = vld [vmem:[#allocation28 + $0x8] sm:$0xff] }
0x1215   : > { %4981 = vmatpush.msrb.mxu1 %v4513_v63 }
0x1217   : > { %v6177_v24 = vpop.permute.xlu2 %6176 }
0x1218   : > { %v6179_v25 = vunpack.i.h.bf16 %v6177_v24  ;;  %v6178_v19 = vunpack.i.l.bf16 %v6177_v24  ;;  %v4875_v28 = vpop.xlane.xlu0 %4874 }
0x1219   : > { %v4877_v31 = vsub.f32 %v4869_v1, %v4875_v28 }
0x121a   : > { %v8765_v29 = vpop.eup %6259  ;;  %v4733_v40 = vrot.slane %v6179_v25, 4  ;;  %v4738_v30 = vperm.slane %v6179_v25, %v8020_v26  ;;  %v4723_v20 = vrot.slane %v6178_v19, 4  ;;  %v4728_v32 = vperm.slane %v6178_v19, %v8020_v26 }
0x121b   : > { %v4880_v37 = vmul.f32 1.442695, %v4877_v31  ;;  %v4882_v2 = vsel %vm2887_vm3, %v8765_v29, 0.0 }
0x121c   : > { %v4734_v11 = vsel %vm2053_vm1, 0.0, %v4733_v40  ;;  %v4743_v62 = vrot.slane %v4738_v30, 4  ;;  %v4724_v27 = vsel %vm2053_vm1, 0.0, %v4723_v20  ;;  %v4745_v38 = vrot.slane %v4728_v32, 4  ;;  %4883 = vadd.xlane.f32.xlu1 %v4882_v2 }
0x121d   : > { %v4742_v14 = vperm.slane %v4734_v11, %v8020_v26  ;;  %v4732_v42 = vperm.slane %v4724_v27, %v8020_v26  ;;  %6261 = vpow2.f32 %v4880_v37 }
0x121e   : > { %v4744_v43 = vsel %vm2053_vm1, %v4743_v62, %v4728_v32  ;;  %v4746_v46 = vsel %vm2053_vm1, %v4738_v30, %v4745_v38 }
0x121f   : > { %v4755_v47 = vrot.slane %v4742_v14, 4  ;;  %v4750_v35 = vperm.slane %v4744_v43, %v8042_v44  ;;  %v4754_v49 = vperm.slane %v4746_v46, %v8042_v44  ;;  %v4757_v8 = vrot.slane %v4732_v42, 4 }
0x1221   : > { %v4756_v39 = vsel %vm2053_vm1, %v4755_v47, %v4732_v42  ;;  %v4758_v51 = vsel %vm2053_vm1, %v4742_v14, %v4757_v8  ;;  %v4767_v54 = vrot.slane %v4750_v35, 4  ;;  %v4769_v55 = vrot.slane %v4754_v49, 4 }
0x1222   : > { %v4762_v41 = vperm.slane %v4756_v39, %v8042_v44  ;;  %v4766_v56 = vperm.slane %v4758_v51, %v8042_v44  ;;  %v4512_v51 = vld [vmem:[#allocation28] sm:$0xff] }
0x1223   : > { %v8783_v59 = vpop.eup %6261  ;;  %v4770_v0 = vsel %vm2053_vm1, 0.0, %v4769_v55  ;;  %v4768_v18 = vsel %vm2053_vm1, 0.0, %v4767_v54  ;;  %v4775_v7 = vsel %vm2053_vm1, %v4769_v55, %v4750_v35  ;;  %v4514_v54 = vld [vmem:[#allocation28 + $0x10] sm:$0xff]  ;;  %4982 = vmatpush.msrb.mxu1 %v4512_v51 }
0x1224   : > { %v4771_v50 = vrot.slane %v4762_v41, 4  ;;  %v4773_v16 = vrot.slane %v4766_v56, 4  ;;  %v4780_v17 = vrot.slane %v4770_v0, 4  ;;  %v4885_v58 = vsel %vm2887_vm3, %v8783_v59, 0.0  ;;  %5005 = vmatpush.msrb.mxu2 %v4514_v54  ;;  %v6193_v0 = vld [vmem:[#allocation30] ss:$0 sm:$0xff] }
0x1225   : > { %4886 = vadd.xlane.f32.xlu2 %v4885_v58  ;;  %v4779_v5 = vperm.slane %v4775_v7, %v8020_v26  ;;  %v5138_v51 = vld [vmem:[#allocation39 + $0x18] sm:$0xff]  ;;  %v5137_v54 = vld [vmem:[#allocation39 + $0x10] sm:$0xff] }
0x1226   : > { %v4774_v3 = vsel %vm2053_vm1, 0.0, %v4773_v16  ;;  %v4781_v21 = vsel %vm2053_vm1, %v4780_v17, %v4768_v18  ;;  %v4772_v36 = vsel %vm2053_vm1, 0.0, %v4771_v50  ;;  %v4786_v52 = vsel %vm2053_vm1, %v4773_v16, %v4762_v41  ;;  %5177 = vmatpush.msra.mxu1 %v5138_v51 }
0x1227   : > { %v4791_v33 = vrot.slane %v4774_v3, 4  ;;  %v4785_v61 = vperm.slane %v4781_v21, %v8020_v26  ;;  %v4790_v45 = vperm.slane %v4786_v52, %v8020_v26  ;;  %v4520_v52 = vld [vmem:[%s8995_s2 + $0x10] sm:$0xff] }
0x1228   : > { %5178 = vmatpush.msra.mxu1 %v5137_v54 }
0x1229   : > { %v4792_v4 = vsel %vm2053_vm1, %v4791_v33, %v4772_v36  ;;  %v4797_v13 = vrot.slane %v4785_v61, 4 }
0x122a   : > { %v4796_v53 = vperm.slane %v4792_v4, %v8020_v26  ;;  %v4519_v4 = vld [vmem:[%s8995_s2 + $0x8] sm:$0xff] }
0x122b   : > { %v4798_v6 = vsel %vm2053_vm1, %v4797_v13, %v4779_v5  ;;  %v4521_v5 = vld [vmem:[%s8995_s2 + $0x18] sm:$0xff]  ;;  %v4518_v13 = vld [vmem:[%s8995_s2] sm:$0xff] }
0x122c   : > { %v4802_v15 = vperm.slane %v4798_v6, %v8042_v44  ;;  %v4803_v10 = vrot.slane %v4796_v53, 4  ;;  %v4524_v53 = vld [vmem:[#allocation34 + $0x8] sm:$0xff] }
0x122e   : > { %v4804_v57 = vsel %vm2053_vm1, %v4803_v10, %v4790_v45  ;;  %v4811_v9 = vrot.slane %v4802_v15, 4 }
0x122f   : > { %v4808_v1 = vperm.slane %v4804_v57, %v8042_v44 }
0x1231   : > { %v4812_v22 = vsel %vm2053_vm1, %v4808_v1, %v4811_v9  ;;  %v4809_v23 = vrot.slane %v4808_v1, 4  ;;  %v4517_v1 = vld [vmem:[#allocation31] sm:$0x3] }
0x1232   : > { %4959 = vmatpush.msra.mxu0 %v4812_v22 }
0x1233   : > { %v4810_v12 = vsel %vm2053_vm1, %v4809_v23, %v4802_v15 }
0x1234   : > { %4936 = vmatpush.msra.mxu3 %v4810_v12  ;;  %5091 = vmatpush.msrb.mxu0 %v4524_v53  ;;  %v5040_v12 = vperm.slane %v4517_v1, 0 }
0x1236   : > { %5062 = vmatpush.msrb.mxu3 %v4521_v5 }
0x1238   : > { %5063 = vmatpush.msrb.mxu3 %v4520_v52 }
0x123a   : > { %5064 = vmatpush.msrb.mxu3 %v4519_v4 }
0x123c   : > { %5065 = vmatpush.msrb.mxu3 %v4518_v13 }
0x128f   : > { %v4884_v26 = vpop.xlane.xlu1 %4883 }
0x1290   : > { %6263 = vrcp.f32 %v4884_v26  ;;  %v4899_v31 = vand.u32 2147483648, %v4884_v26  ;;  %v4897_v40 = vand.u32 2147483647, %v4884_v26  ;;  %vm4893_vm5 = vweird.f32 %v4884_v26 }
0x1292   : > { %v4900_v20 = vor.u32 1.1754944e-38, %v4899_v31  ;;  %vm4898_vm1 = vcmp.eq.f32.partialorder %v4897_v40, 8.507059e+37 }
0x1296   : > { %v6264_v24 = vpop.eup %6263 }
0x1297   : > { %v4889_v25 = vmul.f32 %v6264_v24, %v4884_v26  ;;  %vm4894_vm2 = vweird.f32 %v6264_v24  ;;  %v5042_v26 = vperm.slane %v4517_v1, 1 }
0x1298   : > { %v4887_v28 = vpop.xlane.xlu2 %4886  ;;  %vm4895_vm6 = vmor %vm4893_vm5, %vm4894_vm2 }
0x1299   : > { %v4890_v19 = vsub.f32 1.0, %v4889_v25  ;;  %6265 = vrcp.f32 %v4887_v28  ;;  %v4914_v38 = vand.u32 2147483648, %v4887_v28  ;;  %v4912_v42 = vand.u32 2147483647, %v4887_v28 }
0x129a   : > { %vm4908_vm10 = vweird.f32 %v4887_v28 }
0x129b   : > { %v4891_v44 = vmul.f32 %v6264_v24, %v4890_v19  ;;  %v4915_v46 = vor.u32 1.1754944e-38, %v4914_v38  ;;  %vm4913_vm12 = vcmp.eq.f32.partialorder %v4912_v42, 8.507059e+37  ;;  %v4523_v19 = vld [vmem:[#allocation34] sm:$0xff] }
0x129c   : > { %5092 = vmatpush.msrb.mxu0 %v4523_v19  ;;  %v5154_v19 = vld [vmem:[%s8998_s6] sm:$0xff] }
0x129d   : > { %v4892_v30 = vadd.f32 %v6264_v24, %v4891_v44 }
0x129f   : > { %v4896_v32 = vsel %vm4895_vm6, %v6264_v24, %v4892_v30  ;;  %v6266_v37 = vpop.eup %6265  ;;  %v7280_v30 = vmov 2.0  }
0x12a0   : > { %v4901_v2 = vsel %vm4898_vm1, %v4900_v20, %v4896_v32  ;;  %v4904_v11 = vmul.f32 %v6266_v37, %v4887_v28  ;;  %vm4909_vm7 = vweird.f32 %v6266_v37  ;;  %v6194_v28 = vld [vmem:[#allocation33] ss:$0 sm:$0xff]  ;;  %v6195_v20 = vld [vmem:[#allocation36] ss:$0 sm:$0xff] }
0x12a1   : > { %v4902_v62 = vmul.f32 %v8765_v29, %v4901_v2  ;;  %vm4910_vm11 = vmor %vm4908_vm10, %vm4909_vm7 }
0x12a2   : > { %v4905_v27 = vsub.f32 1.0, %v4904_v11 }
0x12a3   : > { %5850 = vmatmul.msk.f32.vlgmr.msra.gmra.mxu3 %vm3080_vm9, %v4902_v62  ;;  %v5124_v29 = vsel %vm2887_vm3, %v4902_v62, 0.0 }
0x12a4   : > { %v4906_v14 = vmul.f32 %v6266_v37, %v4905_v27 }
0x12a6   : > { %v4907_v43 = vadd.f32 %v6266_v37, %v4906_v14 }
0x12a8   : > { %v4911_v47 = vsel %vm4910_vm11, %v6266_v37, %v4907_v43 }
0x12a9   : > { %v4916_v35 = vsel %vm4913_vm12, %v4915_v46, %v4911_v47 }
0x12aa   : > { %v4917_v49 = vmul.f32 %v8783_v59, %v4916_v35 }
0x12ac   : > { %5851 = vmatmul.msk.f32.vlgmr.msra.gmra.mxu0 %vm3080_vm9, %v4917_v49  ;;  %v5125_v8 = vsel %vm2887_vm3, %v4917_v49, 0.0 }
0x12ad   : > { %v8811_v39 = vadd.f32 %v5125_v8, %v5124_v29 }
0x1326   : > { %v4938_v55 = vpop.f32.mrf.mxu3 }
0x1327   : > { %5852 = vmatmul.msk.f32.vlgmr.msrb.gmra.mxu1 %vm4813_vm4, %v4938_v55  ;;  %v5136_v55 = vld [vmem:[#allocation39 + $0x8] sm:$0xff] }
0x1328   : > { %5179 = vmatpush.msra.mxu1 %v5136_v55 }
0x1329   : > { %v4961_v41 = vpop.f32.mrf.mxu0 }
0x132a   : > { %5853 = vmatmul.msk.f32.vlgmr.msrb.gmra.mxu2 %vm4813_vm4, %v4961_v41  ;;  %v5147_v41 = vld [vmem:[%s8996_s28 + $0x38] sm:$0xff] }
0x132b   : > { %5200 = vmatpush.msra.mxu2 %v5147_v41 }
0x13a4   : > { %v4984_v56 = vpop.f32.mrf.mxu1 }
0x13a5   : > { %v5010_v50 = vsel %vm3474_vm15, %v4984_v56, 0.0  ;;  %v5146_v56 = vld [vmem:[%s8996_s28 + $0x30] sm:$0xff] }
0x13a6   : > { %5201 = vmatpush.msra.mxu2 %v5146_v56 }
0x13ad   : > { %v5007_v59 = vpop.f32.mrf.mxu2 }
0x13ae   : > { %v5011_v16 = vsel %vm3474_vm15, %v5007_v59, 0.0  ;;  %v5145_v59 = vld [vmem:[%s8996_s28 + $0x28] sm:$0xff] }
0x13af   : > { %v5012_v17 = vadd.f32 %v5011_v16, %v5010_v50  ;;  %v5144_v16 = vld [vmem:[%s8996_s28 + $0x20] sm:$0xff]  ;;  %5202 = vmatpush.msra.mxu2 %v5145_v59 }
0x13b1   : > { %v5016_v18 = vadd.f32 %v6193_v0, %v5012_v17  ;;  %5203 = vmatpush.msra.mxu2 %v5144_v16 }
0x13b3   : > { %v5017_v58 = vadd.f32 %v5016_v18, %v8696_v60  ;;  %v5143_v18 = vld [vmem:[%s8996_s28 + $0x18] sm:$0xff] }
0x13b4   : > { %5204 = vmatpush.msra.mxu2 %v5143_v18 }
0x13b5   : > { %v5018_v3 = vsel %vm3474_vm15, %v5017_v58, 0.0 }
0x13b6   : > { %5019 = vadd.xlane.f32.xlu0 %v5018_v3 }
0x1429   : > { %v5020_v7 = vpop.xlane.xlu0 %5019 }
0x142a   : > { %v5021_v21 = vmul.f32 %v5020_v7, %v8451_v34 }
0x142c   : > { %v5022_v33 = vsub.f32 %v5017_v58, %v5021_v21 }
0x142e   : > { %v5023_v61 = vmul.f32 %v5022_v33, %v5022_v33 }
0x1430   : > { %v5024_v36 = vsel %vm3474_vm15, %v5023_v61, 0.0 }
0x1431   : > { %5025 = vadd.xlane.f32.xlu0 %v5024_v36 }
0x14a4   : > { %v5026_v60 = vpop.xlane.xlu0 %5025 }
0x14a5   : > { %v5027_v6 = vmul.f32 %v5026_v60, %v8451_v34  ;;  %v5142_v60 = vld [vmem:[%s8996_s28 + $0x10] sm:$0xff] }
0x14a6   : > { %5205 = vmatpush.msra.mxu2 %v5142_v60 }
0x14a7   : > { %v5028_v45 = vadd.f32 1e-05, %v5027_v6  ;;  %v5141_v6 = vld [vmem:[%s8996_s28 + $0x8] sm:$0xff] }
0x14a8   : > { %5206 = vmatpush.msra.mxu2 %v5141_v6 }
0x14a9   : > { %6267 = vrsqrt.f32 %v5028_v45  ;;  %vm5035_vm13 = vweird.f32 %v5028_v45 }
0x14aa   : > { %6269 = vrcp.f32 %v7280_v30 }
0x14af   : > { %v6268_v15 = vpop.eup %6267 }
0x14b0   : > { %v5030_v10 = vmul.f32 %v6268_v15, %v5028_v45  ;;  %vm5036_vm3 = vweird.f32 %v6268_v15  ;;  %v6270_v2 = vpop.eup %6269  ;;  %v5140_v45 = vld [vmem:[%s8996_s28] sm:$0xff] }
0x14b1   : > { %vm5037_vm14 = vmor %vm5035_vm13, %vm5036_vm3  ;;  %v5128_v27 = vmul.f32 2.0, %v6270_v2  ;;  %vm5132_vm2 = vweird.f32 %v6270_v2  ;;  %5207 = vmatpush.msra.mxu2 %v5140_v45 }
0x14b2   : > { %v5031_v57 = vmul.f32 %v6268_v15, %v5030_v10  ;;  %v5151_v10 = vld [vmem:[%s8997_s1 + $0x10] sm:$0xff] }
0x14b3   : > { %v5129_v38 = vsub.f32 1.0, %v5128_v27 }
0x14b4   : > { %v5032_v9 = vmul.f32 0.5, %v5031_v57  ;;  %v6196_v57 = vld [vmem:[#allocation40] ss:$0 sm:$0xff] }
0x14b5   : > { %v5130_v14 = vmul.f32 %v6270_v2, %v5129_v38 }
0x14b6   : > { %v5033_v22 = vsub.f32 1.5, %v5032_v9 }
0x14b7   : > { %v5131_v42 = vadd.f32 %v6270_v2, %v5130_v14 }
0x14b8   : > { %v5034_v23 = vmul.f32 %v6268_v15, %v5033_v22 }
0x14b9   : > { %v5133_v43 = vsel %vm5132_vm2, %v6270_v2, %v5131_v42 }
0x14ba   : > { %v5038_v48 = vsel %vm5037_vm14, %v6268_v15, %v5034_v23  ;;  %v5134_v46 = vmul.f32 %v5133_v43, %v8811_v39  ;;  %v5135_v39 = vld [vmem:[#allocation39] sm:$0xff]  ;;  %v5150_v23 = vld [vmem:[%s8997_s1 + $0x8] sm:$0xff] }
0x14bb   : > { %v5039_v63 = vmul.f32 %v5038_v48, %v5022_v33  ;;  %5180 = vmatpush.msra.mxu1 %v5135_v39  ;;  %v4526_v33 = vld [vmem:[#allocation37] sm:$0x3]  ;;  %v5152_v15 = vld [vmem:[%s8997_s1 + $0x18] sm:$0xff]  ;;  %v5155_v48 = vld [vmem:[%s8998_s6 + $0x8] sm:$0xff] }
0x14bc   : > { %v5120_v36 = vperm.slane %v4526_v33, 0  ;;  %v5122_v4 = vperm.slane %v4526_v33, 1  ;;  %5231 = vmatpush.msra.mxu3 %v5152_v15  ;;  %5260 = vmatpush.msra.mxu0 %v5155_v48 }
0x14bd   : > { %v5041_v24 = vmul.f32 %v5040_v12, %v5039_v63  ;;  %v5149_v12 = vld [vmem:[%s8997_s1] sm:$0xff]  ;;  %v6197_v63 = vld [vmem:[#allocation42] ss:$0 sm:$0xff] }
0x14be   : > { %5232 = vmatpush.msra.mxu3 %v5151_v10  ;;  %5261 = vmatpush.msra.mxu0 %v5154_v19 }
0x14bf   : > { %v5043_v25 = vadd.f32 %v5042_v26, %v5041_v24 }
0x14c0   : > { %5233 = vmatpush.msra.mxu3 %v5150_v23 }
0x14c1   : > { %5854 = vmatmul.msk.f32.vlgmr.msrb.gmra.mxu3 %vm1980_vm0, %v5043_v25 }
0x14c2   : > { %5234 = vmatpush.msra.mxu3 %v5149_v12 }
0x1544   : > { %v5067_v31 = vpop.f32.mrf.mxu3 }
0x1545   : > { %v5068_v44 = vadd.f32 %v6194_v28, %v5067_v31  ;;  %v5157_v28 = vld [vmem:[%s7525_s19] sm:$0xff]  ;;  %v6198_v31 = vld [vmem:[#allocation43] ss:$0 sm:$0xff] }
0x1546   : > { %5288 = vmatpush.msrb.mxu1 %v5157_v28 }
0x1547   : > { %v5070_v40 = vmax.f32 %v5068_v44, 0.0 }
0x1549   : > { %5855 = vmatmul.msk.f32.vlgmr.msrb.gmra.mxu0 %vm4813_vm4, %v5070_v40 }
0x15c6   : > { %v5094_v32 = vpop.f32.mrf.mxu0 }
0x15c7   : > { %v5095_v37 = vadd.f32 %v6195_v20, %v5094_v32  ;;  %v6199_v20 = vld [vmem:[#allocation45] ss:$0 sm:$0xff] }
0x15c9   : > { %v5097_v11 = vadd.f32 %v5095_v37, %v5043_v25 }
0x15cb   : > { %v5098_v62 = vsel %vm3474_vm15, %v5097_v11, 0.0 }
0x15cc   : > { %5099 = vadd.xlane.f32.xlu0 %v5098_v62 }
0x15e0   : > { %5294 = vrot.lane.b32.xlu0 %v5134_v46, %s7281_s8  ;;  %s8999_s8 = sshll.u32 %s9001_s0, 2 }
0x15e1   : > { %s1938_s1 = scalar_lea.vmem %s7535_s4, %s8999_s8 }
0x163f   : > { %v5100_v47 = vpop.xlane.xlu0 %5099 }
0x1640   : > { %v5101_v35 = vmul.f32 %v5100_v47, %v8451_v34 }
0x1642   : > { %v5102_v49 = vsub.f32 %v5097_v11, %v5101_v35  ;;  %v6200_v11 = vld [vmem:[#allocation46] ss:$0 sm:$0xff] }
0x1644   : > { %v5103_v29 = vmul.f32 %v5102_v49, %v5102_v49 }
0x1646   : > { %v5104_v8 = vsel %vm3474_vm15, %v5103_v29, 0.0 }
0x1647   : > { %5105 = vadd.xlane.f32.xlu1 %v5104_v8 }
0x1652   : > { %v5295_v38 = vpop.permute.xlu0 %5294 }
0x16ba   : > { %v5106_v0 = vpop.xlane.xlu1 %5105 }
0x16bb   : > { %v5107_v50 = vmul.f32 %v5106_v0, %v8451_v34 }
0x16bd   : > { %v5108_v17 = vadd.f32 1e-05, %v5107_v50 }
0x16bf   : > { %6271 = vrsqrt.f32 %v5108_v17  ;;  %vm5115_vm5 = vweird.f32 %v5108_v17 }
0x16c5   : > { %v6272_v58 = vpop.eup %6271 }
0x16c6   : > { %v5110_v3 = vmul.f32 %v6272_v58, %v5108_v17  ;;  %vm5116_vm15 = vweird.f32 %v6272_v58 }
0x16c7   : > { %vm5117_vm6 = vmor %vm5115_vm5, %vm5116_vm15 }
0x16c8   : > { %v5111_v7 = vmul.f32 %v6272_v58, %v5110_v3 }
0x16ca   : > { %v5112_v21 = vmul.f32 0.5, %v5111_v7 }
0x16cc   : > { %v5113_v61 = vsub.f32 1.5, %v5112_v21 }
0x16ce   : > { %v5114_v34 = vmul.f32 %v6272_v58, %v5113_v61 }
0x16d0   : > { %v5118_v5 = vsel %vm5117_vm6, %v6272_v58, %v5114_v34 }
0x16d1   : > { %v5119_v52 = vmul.f32 %v5118_v5, %v5102_v49 }
0x16d3   : > { %v5121_v13 = vmul.f32 %v5120_v36, %v5119_v52 }
0x16d5   : > { %v5123_v53 = vadd.f32 %v5122_v4, %v5121_v13 }
0x16d7   : > { %5856 = vmatmul.msk.f32.vlgmr.msra.gmra.mxu1 %vm1980_vm0, %v5123_v53 }
0x1754   : > { %v5182_v9 = vpop.f32.mrf.mxu1 }
0x1755   : > { %v5183_v1 = vadd.f32 %v6196_v57, %v5182_v9 }
0x1757   : > { %v5185_v22 = vmax.f32 %v5183_v1, 0.0 }
0x1759   : > { %5857 = vmatmul.msk.f32.vlgmr.msra.gmra.mxu2 %vm3558_vm8, %v5185_v22  ;;  %vm5299_vm8 = vcmask 76800  }
0x17dc   : > { %v5209_v26 = vpop.f32.mrf.mxu2 }
0x17dd   : > { %v5210_v24 = vadd.f32 %v6197_v63, %v5209_v26 }
0x17df   : > { %v5212_v25 = vmax.f32 %v5210_v24, 0.0 }
0x17e1   : > { %5858 = vmatmul.msk.f32.vlgmr.msra.gmra.mxu3 %vm1980_vm0, %v5212_v25  ;;  %vm5297_vm0 = vcmask 15360  }
0x1864   : > { %v5236_v44 = vpop.f32.mrf.mxu3 }
0x1865   : > { %v5237_v40 = vadd.f32 %v6198_v31, %v5236_v44 }
0x1867   : > { %v5239_v30 = vmax.f32 %v5237_v40, 0.0 }
0x1869   : > { %5859 = vmatmul.msk.f32.vlgmr.msra.gmra.mxu0 %vm4813_vm4, %v5239_v30 }
0x18e6   : > { %v5263_v32 = vpop.f32.mrf.mxu0 }
0x18e7   : > { %v5264_v37 = vadd.f32 %v6199_v20, %v5263_v32 }
0x18e9   : > { %v5266_v2 = vmax.f32 %v5264_v37, 0.0 }
0x18eb   : > { %5860 = vmatmul.msk.f32.vlgmr.msrb.gmra.mxu1 %vm3080_vm9, %v5266_v2 }
0x1968   : > { %v5290_v62 = vpop.f32.mrf.mxu1 }
0x1969   : > { %v5291_v27 = vadd.f32 %v6200_v11, %v5290_v62 }
0x196b   : > { %v5298_v14 = vsel %vm5297_vm0, %v5291_v27, %v5295_v38 }
0x196c   : > { %5300 = vst.msk [vmem:[%s1938_s1] sm:$0xf] %vm5299_vm8, %v5298_v14 }
0x196d PF: > { %s125_s7 = sadd.s32 1, %s7186_s7  }
0x196e   : > { %p122_p3 = scmp.ge.s32.totalorder %s125_s7, 4  }
0x1970   :  { %124 = sbr.rel (!%p122_p3) target bundleno = 111 (0x6f), region = 422 }
0x1975   :  { %5320 = vsyncpa [#allocation3], 1 }
0x1976   :  { %5322 = vsyncpa [#allocation3 + $0x1], 1 }
0x1977   :  { %5323 = vsyncpa [#allocation5], 1 }
0x1978   :  { %5324 = vsyncpa [#allocation8], 1 }
0x1979   :  { %5325 = vsyncpa [#allocation11], 1 }
0x197a   :  { %5326 = vsyncpa [#allocation14], 1 }
0x197b   :  { %5327 = vsyncpa [#allocation17], 1 }
0x197c   :  { %5328 = vsyncpa [#allocation20], 1 }
0x197d   :  { %5329 = vsyncpa [#allocation23], 1 }
0x197e   :  { %5330 = vsyncpa [#allocation26], 1 }
0x197f   :  { %5331 = vsyncpa [#allocation29], 1 }
0x1980   :  { %5332 = vsyncpa [#allocation32], 1 }
0x1981   :  { %5333 = vsyncpa [#allocation35], 1 }
0x1982   :  { %5334 = vsyncpa [#allocation38], 1 }
0x1983   :  { %5335 = vsyncpa [#allocation41], 1 }
0x1984   :  { %5336 = vsyncpa [#allocation44], 1 }
0x1985   :  { %5337 = vsyncpa [#allocation47], 1 }

</bundles_post_ra>
